<compile_context>
chip_gen: v7x
topology: tpu7x:2x2x1
jax: 0.10.0
libtpu: 0.0.40
codegen_flags: <defaults>
</compile_context>

<pallas_src>
import functools

import jax
import jax.numpy as jnp
from jax import lax
from jax.experimental import pallas as pl
from jax.experimental.pallas import tpu as pltpu


def _layernorm(x, gamma, beta, eps):
    # PyTorch LayerNorm: biased variance, eps inside sqrt.
    mean = jnp.mean(x, axis=-1, keepdims=True)
    var = jnp.mean((x - mean) ** 2, axis=-1, keepdims=True)
    return (x - mean) * lax.rsqrt(var + eps) * gamma + beta


def _gelu_exact(x):
    # F.gelu default = exact erf-based GELU.
    return 0.5 * x * (1.0 + lax.erf(x / jnp.sqrt(2.0).astype(x.dtype)))


def encoder_layer_kernel(x_ref, wq_ref, wk_ref, wv_ref, fcw_ref, fcb_ref,
                         ln1g_ref, ln1b_ref, w1_ref, b1_ref, w2_ref, b2_ref,
                         ln2g_ref, ln2b_ref,
                         out_ref, attn_ref,
                         xn_scr, acc_scr, *, d_k, eps):
    h = pl.program_id(1)
    bf16 = jnp.bfloat16

    # ---- per-batch init (head 0): pre-norm, fold residual + fc bias once ----
    @pl.when(h == 0)
    def _init():
        x = x_ref[0].astype(jnp.float32)                       # (S, D)
        xn = _layernorm(x, ln1g_ref[...], ln1b_ref[...], eps)
        xn_scr[...] = xn.astype(bf16)
        acc_scr[...] = x + fcb_ref[...]                        # residual + fc bias

    xn_bf = xn_scr[...]                                        # (S, D) bf16

    # ---- per-head attention (bf16 operands, f32 accumulation on the MXU) ----
    q = jnp.dot(xn_bf, wq_ref[0], preferred_element_type=jnp.float32)  # (S, dk)
    k = jnp.dot(xn_bf, wk_ref[0], preferred_element_type=jnp.float32)  # (S, dk)
    v = jnp.dot(xn_bf, wv_ref[0], preferred_element_type=jnp.float32)  # (S, dv)

    s = lax.dot_general(q.astype(bf16), k.astype(bf16),
                        (((1,), (1,)), ((), ())),
                        preferred_element_type=jnp.float32)    # (S, S)
    s = s * (1.0 / (d_k ** 0.5))
    # TODO(synk): slf_attn_mask (masked_fill with -1e9) would be applied here.
    s = s - jnp.max(s, axis=-1, keepdims=True)
    e = jnp.exp(s)
    p = e * pl.reciprocal(jnp.sum(e, axis=-1, keepdims=True), approx=True)
    attn_ref[0, 0] = p.astype(attn_ref.dtype)                  # per-head writeback

    o = jnp.dot(p.astype(bf16), v.astype(bf16),
                preferred_element_type=jnp.float32)            # (S, dv)
    # Output projection for this head's slice of fc, accumulated in f32.
    acc_scr[...] += jnp.dot(o.astype(bf16), fcw_ref[0],
                            preferred_element_type=jnp.float32)

    # ---- finalize (last head): PositionwiseFeedForward, pre-norm ----
    @pl.when(h == pl.num_programs(1) - 1)
    def _finalize():
        attn_out = acc_scr[...]                                # (S, D) f32
        yn = _layernorm(attn_out, ln2g_ref[...], ln2b_ref[...], eps)
        h1 = jnp.dot(yn.astype(bf16), w1_ref[...],
                     preferred_element_type=jnp.float32) + b1_ref[...]
        h1 = _gelu_exact(h1)
        y = jnp.dot(h1.astype(bf16), w2_ref[...],
                    preferred_element_type=jnp.float32) + b2_ref[...]
        out_ref[0] = (y + attn_out).astype(out_ref.dtype)


def encoder_layer(x, params, *, n_head, d_k, d_v, eps=1e-6,
                  attn_dtype=jnp.float32):
    B, S, D = x.shape
    bf16 = jnp.bfloat16

    # One-time wrapper-side layout plumbing: head-blocked bf16 weights.
    wq3 = params["wq"].reshape(D, n_head, d_k).transpose(1, 0, 2).astype(bf16)
    wk3 = params["wk"].reshape(D, n_head, d_k).transpose(1, 0, 2).astype(bf16)
    wv3 = params["wv"].reshape(D, n_head, d_v).transpose(1, 0, 2).astype(bf16)
    fcw3 = params["fcw"].reshape(n_head, d_v, D).astype(bf16)
    w1_bf = params["w1"].astype(bf16)
    w2_bf = params["w2"].astype(bf16)

    kernel = functools.partial(encoder_layer_kernel, d_k=d_k, eps=eps)

    def head_block(shape):
        nd = len(shape)
        return pl.BlockSpec((1,) + tuple(shape[1:]),
                            lambda b, h, nd=nd: (h,) + (0,) * (nd - 1))

    def shared(shape):
        nd = len(shape)
        return pl.BlockSpec(tuple(shape), lambda b, h, nd=nd: (0,) * nd)

    in_specs = [
        pl.BlockSpec((1, S, D), lambda b, h: (b, 0, 0)),       # x (resident per b)
        head_block(wq3.shape), head_block(wk3.shape), head_block(wv3.shape),
        head_block(fcw3.shape),
        shared(params["fcb"].shape),
        shared(params["ln1g"].shape), shared(params["ln1b"].shape),
        shared(w1_bf.shape), shared(params["b1"].shape),
        shared(w2_bf.shape), shared(params["b2"].shape),
        shared(params["ln2g"].shape), shared(params["ln2b"].shape),
    ]
    out_specs = (
        pl.BlockSpec((1, S, D), lambda b, h: (b, 0, 0)),       # enc_output
        pl.BlockSpec((1, 1, S, S), lambda b, h: (b, h, 0, 0)), # attn, per head
    )
    out_shape = (
        jax.ShapeDtypeStruct((B, S, D), jnp.float32),
        jax.ShapeDtypeStruct((B, n_head, S, S), attn_dtype),
    )

    return pl.pallas_call(
        kernel,
        out_shape=out_shape,
        grid_spec=pltpu.PrefetchScalarGridSpec(
            num_scalar_prefetch=0,
            grid=(B, n_head),
            in_specs=in_specs,
            out_specs=out_specs,
            scratch_shapes=[
                pltpu.VMEM((S, D), jnp.bfloat16),   # LN1(x), shared across heads
                pltpu.VMEM((S, D), jnp.float32),    # attention-output accumulator
            ],
        ),
        compiler_params=pltpu.CompilerParams(
            dimension_semantics=("parallel", "arbitrary"),
            # Explicit scoped-VMEM budget (re-derive / block S for real sizes;
            # v7x has 64 MiB physical, v5e's default scoped limit is 16 MiB).
            vmem_limit_bytes=64 * 1024 * 1024,
        ),
    )(x, wq3, wk3, wv3, fcw3, params["fcb"],
      params["ln1g"], params["ln1b"], w1_bf, params["b1"],
      w2_bf, params["b2"], params["ln2g"], params["ln2b"])


def reference_encoder_layer(x, params, *, n_head, d_k, d_v, eps=1e-6):
    """Pure-JAX f32 reference reproducing the PyTorch forward (eval mode)."""
    B, S, D = x.shape
    residual = x
    xn = _layernorm(x, params["ln1g"], params["ln1b"], eps)
    q = (xn @ params["wq"]).reshape(B, S, n_head, d_k).transpose(0, 2, 1, 3)
    k = (xn @ params["wk"]).reshape(B, S, n_head, d_k).transpose(0, 2, 1, 3)
    v = (xn @ params["wv"]).reshape(B, S, n_head, d_v).transpose(0, 2, 1, 3)
    s = jnp.einsum("bhqd,bhkd->bhqk", q / (d_k ** 0.5), k)
    attn = jax.nn.softmax(s, axis=-1)
    o = jnp.einsum("bhqk,bhkd->bhqd", attn, v).transpose(0, 2, 1, 3).reshape(B, S, n_head * d_v)
    o = o @ params["fcw"] + params["fcb"]
    o = o + residual
    residual2 = o
    yn = _layernorm(o, params["ln2g"], params["ln2b"], eps)
    h1 = _gelu_exact(yn @ params["w1"] + params["b1"])
    y = h1 @ params["w2"] + params["b2"] + residual2
    return y, attn


if __name__ == "__main__":
    # Small but lane-dense shapes (S and d_model multiples of 128).
    B, S = 2, 128
    d_model, d_inner = 128, 256
    n_head, d_k, d_v = 4, 32, 32

    key = jax.random.PRNGKey(0)
    ks = jax.random.split(key, 12)
    f32 = jnp.float32

    params = {
        "wq":  0.1 * jax.random.normal(ks[0], (d_model, n_head * d_k), f32),
        "wk":  0.1 * jax.random.normal(ks[1], (d_model, n_head * d_k), f32),
        "wv":  0.1 * jax.random.normal(ks[2], (d_model, n_head * d_v), f32),
        "fcw": 0.1 * jax.random.normal(ks[3], (n_head * d_v, d_model), f32),
        "fcb": 0.01 * jax.random.normal(ks[4], (1, d_model), f32),
        "ln1g": 1.0 + 0.05 * jax.random.normal(ks[5], (1, d_model), f32),
        "ln1b": 0.05 * jax.random.normal(ks[6], (1, d_model), f32),
        "w1":  0.1 * jax.random.normal(ks[7], (d_model, d_inner), f32),
        "b1":  0.01 * jax.random.normal(ks[8], (1, d_inner), f32),
        "w2":  0.1 * jax.random.normal(ks[9], (d_inner, d_model), f32),
        "b2":  0.01 * jax.random.normal(ks[10], (1, d_model), f32),
        "ln2g": 1.0 + 0.05 * jax.random.normal(ks[11], (1, d_model), f32),
        "ln2b": jnp.zeros((1, d_model), f32),
    }

    x = jax.random.normal(jax.random.PRNGKey(42), (B, S, d_model), f32)

    enc_out, enc_attn = encoder_layer(x, params, n_head=n_head, d_k=d_k, d_v=d_v)
    jax.block_until_ready((enc_out, enc_attn))

    ref_out, ref_attn = reference_encoder_layer(x, params, n_head=n_head, d_k=d_k, d_v=d_v)

    assert enc_out.shape == (B, S, d_model)
    assert enc_attn.shape == (B, n_head, S, S)
    # Loose-ish tolerances: kernel uses bf16 MXU operands (f32 accumulation) and
    # an approximate EUP reciprocal in the softmax; reference is pure f32.
    assert jnp.allclose(enc_out, ref_out, rtol=5e-2, atol=5e-2)
    assert jnp.allclose(enc_attn, ref_attn, rtol=2e-2, atol=2e-2)

    print("KERNEL_OK")
</pallas_src>

<mosaic_0001>
module attributes {stable_mosaic.version = 11 : i64} {
  func.func @encoder_layer_kernel(%arg0: i32, %arg1: i32, %arg2: memref<1x128x128xf32, #tpu.memory_space<vmem>>, %arg3: memref<1x128x32xbf16, #tpu.memory_space<vmem>>, %arg4: memref<1x128x32xbf16, #tpu.memory_space<vmem>>, %arg5: memref<1x128x32xbf16, #tpu.memory_space<vmem>>, %arg6: memref<1x32x128xbf16, #tpu.memory_space<vmem>>, %arg7: memref<1x128xf32, #tpu.memory_space<vmem>>, %arg8: memref<1x128xf32, #tpu.memory_space<vmem>>, %arg9: memref<1x128xf32, #tpu.memory_space<vmem>>, %arg10: memref<128x256xbf16, #tpu.memory_space<vmem>>, %arg11: memref<1x256xf32, #tpu.memory_space<vmem>>, %arg12: memref<256x128xbf16, #tpu.memory_space<vmem>>, %arg13: memref<1x128xf32, #tpu.memory_space<vmem>>, %arg14: memref<1x128xf32, #tpu.memory_space<vmem>>, %arg15: memref<1x128xf32, #tpu.memory_space<vmem>>, %arg16: memref<1x128x128xf32, #tpu.memory_space<vmem>>, %arg17: memref<1x1x128x128xf32, #tpu.memory_space<vmem>>, %arg18: memref<128x128xbf16, #tpu.memory_space<vmem>>, %arg19: memref<128x128xf32, #tpu.memory_space<vmem>>) attributes {dimension_semantics = [#tpu.dimension_semantics<parallel>, #tpu.dimension_semantics<arbitrary>], iteration_bounds = array<i64: 2, 4>, scalar_prefetch = 0 : i64, scratch_operands = 2 : i64, tpu.core_type = #tpu.core_type<tc>, window_params = [{transform_indices = @transform_0, window_bounds = array<i64: 1, 128, 128>}, {transform_indices = @transform_1, window_bounds = array<i64: 1, 128, 32>}, {transform_indices = @transform_2, window_bounds = array<i64: 1, 128, 32>}, {transform_indices = @transform_3, window_bounds = array<i64: 1, 128, 32>}, {transform_indices = @transform_4, window_bounds = array<i64: 1, 32, 128>}, {pipeline_mode = #tpu.pipeline_mode<synchronous>, transform_indices = @transform_5, window_bounds = array<i64: 1, 128>}, {pipeline_mode = #tpu.pipeline_mode<synchronous>, transform_indices = @transform_6, window_bounds = array<i64: 1, 128>}, {pipeline_mode = #tpu.pipeline_mode<synchronous>, transform_indices = @transform_7, window_bounds = array<i64: 1, 128>}, {pipeline_mode = #tpu.pipeline_mode<synchronous>, transform_indices = @transform_8, window_bounds = array<i64: 128, 256>}, {pipeline_mode = #tpu.pipeline_mode<synchronous>, transform_indices = @transform_9, window_bounds = array<i64: 1, 256>}, {pipeline_mode = #tpu.pipeline_mode<synchronous>, transform_indices = @transform_10, window_bounds = array<i64: 256, 128>}, {pipeline_mode = #tpu.pipeline_mode<synchronous>, transform_indices = @transform_11, window_bounds = array<i64: 1, 128>}, {pipeline_mode = #tpu.pipeline_mode<synchronous>, transform_indices = @transform_12, window_bounds = array<i64: 1, 128>}, {pipeline_mode = #tpu.pipeline_mode<synchronous>, transform_indices = @transform_13, window_bounds = array<i64: 1, 128>}, {transform_indices = @transform_14, window_bounds = array<i64: 1, 128, 128>}, {transform_indices = @transform_15, window_bounds = array<i64: 1, 1, 128, 128>}]} {
    %c0_i32 = arith.constant 0 : i32
    %0 = arith.cmpi eq, %arg1, %c0_i32 : i32
    %1 = arith.extui %0 : i1 to i32
    %c0_i32_0 = arith.constant 0 : i32
    %2 = arith.cmpi ne, %1, %c0_i32_0 : i32
    scf.if %2 {
      %c0_31 = arith.constant 0 : index
      %c0_32 = arith.constant 0 : index
      %c0_33 = arith.constant 0 : index
      %44 = vector.load %arg2[%c0_31, %c0_32, %c0_33] : memref<1x128x128xf32, #tpu.memory_space<vmem>>, vector<1x128x128xf32>
      %45 = vector.shape_cast %44 : vector<1x128x128xf32> to vector<128x128xf32>
      %c0_34 = arith.constant 0 : index
      %c0_35 = arith.constant 0 : index
      %46 = vector.load %arg8[%c0_34, %c0_35] : memref<1x128xf32, #tpu.memory_space<vmem>>, vector<1x128xf32>
      %c0_36 = arith.constant 0 : index
      %c0_37 = arith.constant 0 : index
      %47 = vector.load %arg9[%c0_36, %c0_37] : memref<1x128xf32, #tpu.memory_space<vmem>>, vector<1x128xf32>
      %cst_38 = arith.constant dense<0.000000e+00> : vector<128xf32>
      %48 = vector.multi_reduction <add>, %45, %cst_38 [1] : vector<128x128xf32> to vector<128xf32>
      %49 = vector.shape_cast %48 : vector<128xf32> to vector<128x1xf32>
      %cst_39 = arith.constant 1.280000e+02 : f32
      %50 = vector.broadcast %cst_39 : f32 to vector<128x1xf32>
      %51 = arith.divf %49, %50 : vector<128x1xf32>
      %52 = vector.broadcast %51 : vector<128x1xf32> to vector<128x128xf32>
      %53 = arith.subf %45, %52 : vector<128x128xf32>
      %54 = arith.mulf %53, %53 : vector<128x128xf32>
      %cst_40 = arith.constant dense<0.000000e+00> : vector<128xf32>
      %55 = vector.multi_reduction <add>, %54, %cst_40 [1] : vector<128x128xf32> to vector<128xf32>
      %56 = vector.shape_cast %55 : vector<128xf32> to vector<128x1xf32>
      %cst_41 = arith.constant 1.280000e+02 : f32
      %57 = vector.broadcast %cst_41 : f32 to vector<128x1xf32>
      %58 = arith.divf %56, %57 : vector<128x1xf32>
      %59 = vector.broadcast %51 : vector<128x1xf32> to vector<128x128xf32>
      %60 = arith.subf %45, %59 : vector<128x128xf32>
      %cst_42 = arith.constant 9.99999997E-7 : f32
      %61 = vector.broadcast %cst_42 : f32 to vector<128x1xf32>
      %62 = arith.addf %58, %61 : vector<128x1xf32>
      %63 = math.rsqrt %62 : vector<128x1xf32>
      %64 = vector.broadcast %63 : vector<128x1xf32> to vector<128x128xf32>
      %65 = arith.mulf %60, %64 : vector<128x128xf32>
      %66 = vector.broadcast %46 : vector<1x128xf32> to vector<128x128xf32>
      %67 = arith.mulf %65, %66 : vector<128x128xf32>
      %68 = vector.broadcast %47 : vector<1x128xf32> to vector<128x128xf32>
      %69 = arith.addf %67, %68 : vector<128x128xf32>
      %70 = arith.truncf %69 : vector<128x128xf32> to vector<128x128xbf16>
      %c0_43 = arith.constant 0 : index
      %c0_44 = arith.constant 0 : index
      %71 = vector.load %arg18[%c0_43, %c0_44] : memref<128x128xbf16, #tpu.memory_space<vmem>>, vector<128x128xbf16>
      tpu.vector_store %arg18[%c0_43, %c0_44], %70 {strides = array<i32>} : memref<128x128xbf16, #tpu.memory_space<vmem>>, vector<128x128xbf16>,
      %c0_45 = arith.constant 0 : index
      %c0_46 = arith.constant 0 : index
      %72 = vector.load %arg7[%c0_45, %c0_46] : memref<1x128xf32, #tpu.memory_space<vmem>>, vector<1x128xf32>
      %73 = vector.broadcast %72 : vector<1x128xf32> to vector<128x128xf32>
      %74 = arith.addf %45, %73 : vector<128x128xf32>
      %c0_47 = arith.constant 0 : index
      %c0_48 = arith.constant 0 : index
      %75 = vector.load %arg19[%c0_47, %c0_48] : memref<128x128xf32, #tpu.memory_space<vmem>>, vector<128x128xf32>
      tpu.vector_store %arg19[%c0_47, %c0_48], %74 {strides = array<i32>} : memref<128x128xf32, #tpu.memory_space<vmem>>, vector<128x128xf32>,
    } else {
    }
    %c0 = arith.constant 0 : index
    %c0_1 = arith.constant 0 : index
    %3 = vector.load %arg18[%c0, %c0_1] : memref<128x128xbf16, #tpu.memory_space<vmem>>, vector<128x128xbf16>
    %c0_2 = arith.constant 0 : index
    %c0_3 = arith.constant 0 : index
    %c0_4 = arith.constant 0 : index
    %4 = vector.load %arg3[%c0_2, %c0_3, %c0_4] : memref<1x128x32xbf16, #tpu.memory_space<vmem>>, vector<1x128x32xbf16>
    %5 = vector.shape_cast %4 : vector<1x128x32xbf16> to vector<128x32xbf16>
    %cst = arith.constant dense<0.000000e+00> : vector<128x32xf32>
    %6 = tpu.matmul %3, %5, %cst {dimension_numbers = #tpu.dot_dimension_numbers<[1], [0], [0], [1], [0, 0, 1, 1], [], []>} : vector<128x128xbf16>, vector<128x32xbf16>, vector<128x32xf32> -> vector<128x32xf32>
    %c0_5 = arith.constant 0 : index
    %c0_6 = arith.constant 0 : index
    %c0_7 = arith.constant 0 : index
    %7 = vector.load %arg4[%c0_5, %c0_6, %c0_7] : memref<1x128x32xbf16, #tpu.memory_space<vmem>>, vector<1x128x32xbf16>
    %8 = vector.shape_cast %7 : vector<1x128x32xbf16> to vector<128x32xbf16>
    %cst_8 = arith.constant dense<0.000000e+00> : vector<128x32xf32>
    %9 = tpu.matmul %3, %8, %cst_8 {dimension_numbers = #tpu.dot_dimension_numbers<[1], [0], [0], [1], [0, 0, 1, 1], [], []>} : vector<128x128xbf16>, vector<128x32xbf16>, vector<128x32xf32> -> vector<128x32xf32>
    %c0_9 = arith.constant 0 : index
    %c0_10 = arith.constant 0 : index
    %c0_11 = arith.constant 0 : index
    %10 = vector.load %arg5[%c0_9, %c0_10, %c0_11] : memref<1x128x32xbf16, #tpu.memory_space<vmem>>, vector<1x128x32xbf16>
    %11 = vector.shape_cast %10 : vector<1x128x32xbf16> to vector<128x32xbf16>
    %cst_12 = arith.constant dense<0.000000e+00> : vector<128x32xf32>
    %12 = tpu.matmul %3, %11, %cst_12 {dimension_numbers = #tpu.dot_dimension_numbers<[1], [0], [0], [1], [0, 0, 1, 1], [], []>} : vector<128x128xbf16>, vector<128x32xbf16>, vector<128x32xf32> -> vector<128x32xf32>
    %13 = arith.truncf %6 : vector<128x32xf32> to vector<128x32xbf16>
    %14 = arith.truncf %9 : vector<128x32xf32> to vector<128x32xbf16>
    %cst_13 = arith.constant dense<0.000000e+00> : vector<128x128xf32>
    %15 = tpu.matmul %13, %14, %cst_13 {dimension_numbers = #tpu.dot_dimension_numbers<[1], [1], [0], [0], [0, 0, 1, 0], [], []>} : vector<128x32xbf16>, vector<128x32xbf16>, vector<128x128xf32> -> vector<128x128xf32>
    %cst_14 = arith.constant 0.176776692 : f32
    %16 = vector.broadcast %cst_14 : f32 to vector<128x128xf32>
    %17 = arith.mulf %15, %16 : vector<128x128xf32>
    %cst_15 = arith.constant dense<0xFF800000> : vector<128xf32>
    %18 = vector.multi_reduction <maximumf>, %17, %cst_15 [1] : vector<128x128xf32> to vector<128xf32>
    %19 = vector.shape_cast %18 : vector<128xf32> to vector<128x1xf32>
    %20 = vector.broadcast %19 : vector<128x1xf32> to vector<128x128xf32>
    %21 = arith.subf %17, %20 : vector<128x128xf32>
    %22 = math.exp %21 : vector<128x128xf32>
    %cst_16 = arith.constant dense<0.000000e+00> : vector<128xf32>
    %23 = vector.multi_reduction <add>, %22, %cst_16 [1] : vector<128x128xf32> to vector<128xf32>
    %24 = vector.shape_cast %23 : vector<128xf32> to vector<128x1xf32>
    %25 = tpu.reciprocal %24 {approx = true} : vector<128x1xf32> -> vector<128x1xf32>
    %26 = vector.broadcast %25 : vector<128x1xf32> to vector<128x128xf32>
    %27 = arith.mulf %22, %26 : vector<128x128xf32>
    %c0_17 = arith.constant 0 : index
    %c0_18 = arith.constant 0 : index
    %c0_19 = arith.constant 0 : index
    %c0_20 = arith.constant 0 : index
    %28 = vector.load %arg17[%c0_17, %c0_18, %c0_19, %c0_20] : memref<1x1x128x128xf32, #tpu.memory_space<vmem>>, vector<1x1x128x128xf32>
    %29 = vector.shape_cast %28 : vector<1x1x128x128xf32> to vector<128x128xf32>
    %30 = vector.shape_cast %27 : vector<128x128xf32> to vector<1x1x128x128xf32>
    tpu.vector_store %arg17[%c0_17, %c0_18, %c0_19, %c0_20], %30 {strides = array<i32>} : memref<1x1x128x128xf32, #tpu.memory_space<vmem>>, vector<1x1x128x128xf32>,
    %31 = arith.truncf %27 : vector<128x128xf32> to vector<128x128xbf16>
    %32 = arith.truncf %12 : vector<128x32xf32> to vector<128x32xbf16>
    %cst_21 = arith.constant dense<0.000000e+00> : vector<128x32xf32>
    %33 = tpu.matmul %31, %32, %cst_21 {dimension_numbers = #tpu.dot_dimension_numbers<[1], [0], [0], [1], [0, 0, 1, 1], [], []>} : vector<128x128xbf16>, vector<128x32xbf16>, vector<128x32xf32> -> vector<128x32xf32>
    %c0_22 = arith.constant 0 : index
    %c0_23 = arith.constant 0 : index
    %34 = vector.load %arg19[%c0_22, %c0_23] : memref<128x128xf32, #tpu.memory_space<vmem>>, vector<128x128xf32>
    %35 = arith.truncf %33 : vector<128x32xf32> to vector<128x32xbf16>
    %c0_24 = arith.constant 0 : index
    %c0_25 = arith.constant 0 : index
    %c0_26 = arith.constant 0 : index
    %36 = vector.load %arg6[%c0_24, %c0_25, %c0_26] : memref<1x32x128xbf16, #tpu.memory_space<vmem>>, vector<1x32x128xbf16>
    %37 = vector.shape_cast %36 : vector<1x32x128xbf16> to vector<32x128xbf16>
    %cst_27 = arith.constant dense<0.000000e+00> : vector<128x128xf32>
    %38 = tpu.matmul %35, %37, %cst_27 {dimension_numbers = #tpu.dot_dimension_numbers<[1], [0], [0], [1], [0, 0, 1, 1], [], []>} : vector<128x32xbf16>, vector<32x128xbf16>, vector<128x128xf32> -> vector<128x128xf32>
    %39 = arith.addf %34, %38 : vector<128x128xf32>
    %c0_28 = arith.constant 0 : index
    %c0_29 = arith.constant 0 : index
    %40 = vector.load %arg19[%c0_28, %c0_29] : memref<128x128xf32, #tpu.memory_space<vmem>>, vector<128x128xf32>
    tpu.vector_store %arg19[%c0_28, %c0_29], %39 {strides = array<i32>} : memref<128x128xf32, #tpu.memory_space<vmem>>, vector<128x128xf32>,
    %c3_i32 = arith.constant 3 : i32
    %41 = arith.cmpi eq, %arg1, %c3_i32 : i32
    %42 = arith.extui %41 : i1 to i32
    %c0_i32_30 = arith.constant 0 : i32
    %43 = arith.cmpi ne, %42, %c0_i32_30 : i32
    scf.if %43 {
      %c0_31 = arith.constant 0 : index
      %c0_32 = arith.constant 0 : index
      %44 = vector.load %arg19[%c0_31, %c0_32] : memref<128x128xf32, #tpu.memory_space<vmem>>, vector<128x128xf32>
      %c0_33 = arith.constant 0 : index
      %c0_34 = arith.constant 0 : index
      %45 = vector.load %arg14[%c0_33, %c0_34] : memref<1x128xf32, #tpu.memory_space<vmem>>, vector<1x128xf32>
      %c0_35 = arith.constant 0 : index
      %c0_36 = arith.constant 0 : index
      %46 = vector.load %arg15[%c0_35, %c0_36] : memref<1x128xf32, #tpu.memory_space<vmem>>, vector<1x128xf32>
      %cst_37 = arith.constant dense<0.000000e+00> : vector<128xf32>
      %47 = vector.multi_reduction <add>, %44, %cst_37 [1] : vector<128x128xf32> to vector<128xf32>
      %48 = vector.shape_cast %47 : vector<128xf32> to vector<128x1xf32>
      %cst_38 = arith.constant 1.280000e+02 : f32
      %49 = vector.broadcast %cst_38 : f32 to vector<128x1xf32>
      %50 = arith.divf %48, %49 : vector<128x1xf32>
      %51 = vector.broadcast %50 : vector<128x1xf32> to vector<128x128xf32>
      %52 = arith.subf %44, %51 : vector<128x128xf32>
      %53 = arith.mulf %52, %52 : vector<128x128xf32>
      %cst_39 = arith.constant dense<0.000000e+00> : vector<128xf32>
      %54 = vector.multi_reduction <add>, %53, %cst_39 [1] : vector<128x128xf32> to vector<128xf32>
      %55 = vector.shape_cast %54 : vector<128xf32> to vector<128x1xf32>
      %cst_40 = arith.constant 1.280000e+02 : f32
      %56 = vector.broadcast %cst_40 : f32 to vector<128x1xf32>
      %57 = arith.divf %55, %56 : vector<128x1xf32>
      %58 = vector.broadcast %50 : vector<128x1xf32> to vector<128x128xf32>
      %59 = arith.subf %44, %58 : vector<128x128xf32>
      %cst_41 = arith.constant 9.99999997E-7 : f32
      %60 = vector.broadcast %cst_41 : f32 to vector<128x1xf32>
      %61 = arith.addf %57, %60 : vector<128x1xf32>
      %62 = math.rsqrt %61 : vector<128x1xf32>
      %63 = vector.broadcast %62 : vector<128x1xf32> to vector<128x128xf32>
      %64 = arith.mulf %59, %63 : vector<128x128xf32>
      %65 = vector.broadcast %45 : vector<1x128xf32> to vector<128x128xf32>
      %66 = arith.mulf %64, %65 : vector<128x128xf32>
      %67 = vector.broadcast %46 : vector<1x128xf32> to vector<128x128xf32>
      %68 = arith.addf %66, %67 : vector<128x128xf32>
      %69 = arith.truncf %68 : vector<128x128xf32> to vector<128x128xbf16>
      %c0_42 = arith.constant 0 : index
      %c0_43 = arith.constant 0 : index
      %70 = vector.load %arg10[%c0_42, %c0_43] : memref<128x256xbf16, #tpu.memory_space<vmem>>, vector<128x256xbf16>
      %cst_44 = arith.constant dense<0.000000e+00> : vector<128x256xf32>
      %71 = tpu.matmul %69, %70, %cst_44 {dimension_numbers = #tpu.dot_dimension_numbers<[1], [0], [0], [1], [0, 0, 1, 1], [], []>} : vector<128x128xbf16>, vector<128x256xbf16>, vector<128x256xf32> -> vector<128x256xf32>
      %c0_45 = arith.constant 0 : index
      %c0_46 = arith.constant 0 : index
      %72 = vector.load %arg11[%c0_45, %c0_46] : memref<1x256xf32, #tpu.memory_space<vmem>>, vector<1x256xf32>
      %73 = vector.broadcast %72 : vector<1x256xf32> to vector<128x256xf32>
      %74 = arith.addf %71, %73 : vector<128x256xf32>
      %cst_47 = arith.constant 5.000000e-01 : f32
      %75 = vector.broadcast %cst_47 : f32 to vector<128x256xf32>
      %76 = arith.mulf %75, %74 : vector<128x256xf32>
      %cst_48 = arith.constant 2.000000e+00 : f32
      %77 = math.sqrt %cst_48 : f32
      %78 = vector.broadcast %77 : f32 to vector<128x256xf32>
      %79 = arith.divf %74, %78 : vector<128x256xf32>
      %80 = math.erf %79 : vector<128x256xf32>
      %cst_49 = arith.constant 1.000000e+00 : f32
      %81 = vector.broadcast %cst_49 : f32 to vector<128x256xf32>
      %82 = arith.addf %81, %80 : vector<128x256xf32>
      %83 = arith.mulf %76, %82 : vector<128x256xf32>
      %84 = arith.truncf %83 : vector<128x256xf32> to vector<128x256xbf16>
      %c0_50 = arith.constant 0 : index
      %c0_51 = arith.constant 0 : index
      %85 = vector.load %arg12[%c0_50, %c0_51] : memref<256x128xbf16, #tpu.memory_space<vmem>>, vector<256x128xbf16>
      %cst_52 = arith.constant dense<0.000000e+00> : vector<128x128xf32>
      %86 = tpu.matmul %84, %85, %cst_52 {dimension_numbers = #tpu.dot_dimension_numbers<[1], [0], [0], [1], [0, 0, 1, 1], [], []>} : vector<128x256xbf16>, vector<256x128xbf16>, vector<128x128xf32> -> vector<128x128xf32>
      %c0_53 = arith.constant 0 : index
      %c0_54 = arith.constant 0 : index
      %87 = vector.load %arg13[%c0_53, %c0_54] : memref<1x128xf32, #tpu.memory_space<vmem>>, vector<1x128xf32>
      %88 = vector.broadcast %87 : vector<1x128xf32> to vector<128x128xf32>
      %89 = arith.addf %86, %88 : vector<128x128xf32>
      %90 = arith.addf %89, %44 : vector<128x128xf32>
      %c0_55 = arith.constant 0 : index
      %c0_56 = arith.constant 0 : index
      %c0_57 = arith.constant 0 : index
      %91 = vector.load %arg16[%c0_55, %c0_56, %c0_57] : memref<1x128x128xf32, #tpu.memory_space<vmem>>, vector<1x128x128xf32>
      %92 = vector.shape_cast %91 : vector<1x128x128xf32> to vector<128x128xf32>
      %93 = vector.shape_cast %90 : vector<128x128xf32> to vector<1x128x128xf32>
      tpu.vector_store %arg16[%c0_55, %c0_56, %c0_57], %93 {strides = array<i32>} : memref<1x128x128xf32, #tpu.memory_space<vmem>>, vector<1x128x128xf32>,
    } else {
    }
    return
  }
  func.func @transform_0(%arg0: i32, %arg1: i32) -> (i32, i32, i32) {
    %c0_i32 = arith.constant 0 : i32
    %c0_i32_0 = arith.constant 0 : i32
    %c0_i32_1 = arith.constant 0 : i32
    return %arg0, %c0_i32, %c0_i32_0 : i32, i32, i32
  }
  func.func @transform_1(%arg0: i32, %arg1: i32) -> (i32, i32, i32) {
    %c0_i32 = arith.constant 0 : i32
    %c0_i32_0 = arith.constant 0 : i32
    %c0_i32_1 = arith.constant 0 : i32
    return %arg1, %c0_i32, %c0_i32_0 : i32, i32, i32
  }
  func.func @transform_2(%arg0: i32, %arg1: i32) -> (i32, i32, i32) {
    %c0_i32 = arith.constant 0 : i32
    %c0_i32_0 = arith.constant 0 : i32
    %c0_i32_1 = arith.constant 0 : i32
    return %arg1, %c0_i32, %c0_i32_0 : i32, i32, i32
  }
  func.func @transform_3(%arg0: i32, %arg1: i32) -> (i32, i32, i32) {
    %c0_i32 = arith.constant 0 : i32
    %c0_i32_0 = arith.constant 0 : i32
    %c0_i32_1 = arith.constant 0 : i32
    return %arg1, %c0_i32, %c0_i32_0 : i32, i32, i32
  }
  func.func @transform_4(%arg0: i32, %arg1: i32) -> (i32, i32, i32) {
    %c0_i32 = arith.constant 0 : i32
    %c0_i32_0 = arith.constant 0 : i32
    %c0_i32_1 = arith.constant 0 : i32
    return %arg1, %c0_i32, %c0_i32_0 : i32, i32, i32
  }
  func.func @transform_5(%arg0: i32, %arg1: i32) -> (i32, i32) {
    %c0_i32 = arith.constant 0 : i32
    %c0_i32_0 = arith.constant 0 : i32
    %c0_i32_1 = arith.constant 0 : i32
    return %c0_i32, %c0_i32_0 : i32, i32
  }
  func.func @transform_6(%arg0: i32, %arg1: i32) -> (i32, i32) {
    %c0_i32 = arith.constant 0 : i32
    %c0_i32_0 = arith.constant 0 : i32
    %c0_i32_1 = arith.constant 0 : i32
    return %c0_i32, %c0_i32_0 : i32, i32
  }
  func.func @transform_7(%arg0: i32, %arg1: i32) -> (i32, i32) {
    %c0_i32 = arith.constant 0 : i32
    %c0_i32_0 = arith.constant 0 : i32
    %c0_i32_1 = arith.constant 0 : i32
    return %c0_i32, %c0_i32_0 : i32, i32
  }
  func.func @transform_8(%arg0: i32, %arg1: i32) -> (i32, i32) {
    %c0_i32 = arith.constant 0 : i32
    %c0_i32_0 = arith.constant 0 : i32
    %c0_i32_1 = arith.constant 0 : i32
    return %c0_i32, %c0_i32_0 : i32, i32
  }
  func.func @transform_9(%arg0: i32, %arg1: i32) -> (i32, i32) {
    %c0_i32 = arith.constant 0 : i32
    %c0_i32_0 = arith.constant 0 : i32
    %c0_i32_1 = arith.constant 0 : i32
    return %c0_i32, %c0_i32_0 : i32, i32
  }
  func.func @transform_10(%arg0: i32, %arg1: i32) -> (i32, i32) {
    %c0_i32 = arith.constant 0 : i32
    %c0_i32_0 = arith.constant 0 : i32
    %c0_i32_1 = arith.constant 0 : i32
    return %c0_i32, %c0_i32_0 : i32, i32
  }
  func.func @transform_11(%arg0: i32, %arg1: i32) -> (i32, i32) {
    %c0_i32 = arith.constant 0 : i32
    %c0_i32_0 = arith.constant 0 : i32
    %c0_i32_1 = arith.constant 0 : i32
    return %c0_i32, %c0_i32_0 : i32, i32
  }
  func.func @transform_12(%arg0: i32, %arg1: i32) -> (i32, i32) {
    %c0_i32 = arith.constant 0 : i32
    %c0_i32_0 = arith.constant 0 : i32
    %c0_i32_1 = arith.constant 0 : i32
    return %c0_i32, %c0_i32_0 : i32, i32
  }
  func.func @transform_13(%arg0: i32, %arg1: i32) -> (i32, i32) {
    %c0_i32 = arith.constant 0 : i32
    %c0_i32_0 = arith.constant 0 : i32
    %c0_i32_1 = arith.constant 0 : i32
    return %c0_i32, %c0_i32_0 : i32, i32
  }
  func.func @transform_14(%arg0: i32, %arg1: i32) -> (i32, i32, i32) {
    %c0_i32 = arith.constant 0 : i32
    %c0_i32_0 = arith.constant 0 : i32
    %c0_i32_1 = arith.constant 0 : i32
    return %arg0, %c0_i32, %c0_i32_0 : i32, i32, i32
  }
  func.func @transform_15(%arg0: i32, %arg1: i32) -> (i32, i32, i32, i32) {
    %c0_i32 = arith.constant 0 : i32
    %c0_i32_0 = arith.constant 0 : i32
    %c0_i32_1 = arith.constant 0 : i32
    return %arg0, %arg1, %c0_i32, %c0_i32_0 : i32, i32, i32, i32
  }
}

</mosaic_0001>

<bundles_post_ra>
// kernel: tpu_custom_call.1
= control target key start
LH: loop header
LB: loop body
LE: loop exit
PB: predicated region body
PF: predicated region fallthrough
CT: control target
= control target key end

     0   :  { %s6730_s0 = inlined_call_operand.hbm [shape: f32[2,128,128], index: 0, kind: input, shape index: {}]   ;;  %s6731_s1 = inlined_call_operand.hbm [shape: bf16[4,128,32], index: 1, kind: input, shape index: {}]   ;;  %s6732_s2 = inlined_call_operand.hbm [shape: bf16[4,128,32], index: 2, kind: input, shape index: {}]   ;;  %s6733_s3 = inlined_call_operand.hbm [shape: bf16[4,128,32], index: 3, kind: input, shape index: {}]   ;;  %s6734_s4 = inlined_call_operand.hbm [shape: bf16[4,32,128], index: 4, kind: input, shape index: {}]   ;;  %s6735_s5 = inlined_call_operand.hbm [shape: f32[1,128], index: 5, kind: input, shape index: {}]   ;;  %s6736_s6 = inlined_call_operand.hbm [shape: f32[1,128], index: 6, kind: input, shape index: {}]   ;;  %s6737_s7 = inlined_call_operand.hbm [shape: f32[1,128], index: 7, kind: input, shape index: {}]   ;;  %s6738_s8 = inlined_call_operand.hbm [shape: bf16[128,256], index: 8, kind: input, shape index: {}]   ;;  %s6739_s9 = inlined_call_operand.hbm [shape: f32[1,256], index: 9, kind: input, shape index: {}]   ;;  %s6740_s10 = inlined_call_operand.hbm [shape: bf16[256,128], index: 10, kind: input, shape index: {}]   ;;  %s6741_s11 = inlined_call_operand.hbm [shape: f32[1,128], index: 11, kind: input, shape index: {}]   ;;  %s6742_s12 = inlined_call_operand.hbm [shape: f32[1,128], index: 12, kind: input, shape index: {}]   ;;  %s6743_s13 = inlined_call_operand.hbm [shape: f32[1,128], index: 13, kind: input, shape index: {}]   ;;  %s6744_s14 = inlined_call_operand.hbm [shape: f32[2,128,128], index: 14, kind: output, shape index: {0}]   ;;  %s6745_s15 = inlined_call_operand.hbm [shape: f32[2,4,128,128], index: 15, kind: output, shape index: {1}]  }
   0x1   :  { %6800 = sst [smem:[#allocation58_spill]] %s6730_s0 }
   0x2   :  { %6801 = sst [smem:[#allocation59_spill]] %s6731_s1 }
   0x3   :  { %6802 = sst [smem:[#allocation60_spill]] %s6732_s2 }
   0x4   :  { %6803 = sst [smem:[#allocation61_spill]] %s6733_s3 }
   0x5   :  { %6804 = sst [smem:[#allocation62_spill]] %s6734_s4 }
   0x6   :  { %6805 = sst [smem:[#allocation63_spill]] %s6735_s5 }
   0x7   :  { %6806 = sst [smem:[#allocation64_spill]] %s6736_s6 }
   0x8   :  { %6807 = sst [smem:[#allocation65_spill]] %s6737_s7 }
   0x9   :  { %6808 = sst [smem:[#allocation66_spill]] %s6738_s8 }
   0xa   :  { %6809 = sst [smem:[#allocation67_spill]] %s6739_s9 }
   0xb   :  { %6810 = sst [smem:[#allocation68_spill]] %s6740_s10 }
   0xc   :  { %6811 = sst [smem:[#allocation69_spill]] %s6741_s11 }
   0xd   :  { %6812 = sst [smem:[#allocation70_spill]] %s6742_s12 }
   0xe   :  { %6813 = sst [smem:[#allocation71_spill]] %s6743_s13 }
   0xf   :  { %6814 = sst [smem:[#allocation72_spill]] %s6744_s14 }
  0x10   :  { %6815 = sst [smem:[#allocation73_spill]] %s6745_s15 }
  0x11   :  { %21 = vsyncpa [#allocation5], 0 }
  0x12   :  { %23 = vsyncpa [#allocation5 + $0x1], 0 }
  0x13   :  { %24 = vsyncpa [#allocation8], 0 }
  0x14   :  { %26 = vsyncpa [#allocation8 + $0x1], 0 }
  0x15   :  { %27 = vsyncpa [#allocation11], 0 }
  0x16   :  { %29 = vsyncpa [#allocation11 + $0x1], 0 }
  0x17   :  { %30 = vsyncpa [#allocation14], 0 }
  0x18   :  { %31 = vsyncpa [#allocation17], 0 }
  0x19   :  { %32 = vsyncpa [#allocation20], 0 }
  0x1a   :  { %33 = vsyncpa [#allocation23], 0 }
  0x1b   :  { %34 = vsyncpa [#allocation26], 0 }
  0x1c   :  { %35 = vsyncpa [#allocation6], 0 }
  0x1d   :  { %37 = vsyncpa [#allocation6 + $0x1], 0 }
  0x1e   :  { %38 = vsyncpa [#allocation29], 0 }
  0x1f   :  { %40 = vsyncpa [#allocation29 + $0x1], 0  ;;  %s5220_s18 = smov 0   ;;  %s5222_s19 = smov 0  }
  0x20   :  { %s5224_s20 = smov 0   ;;  %s5226_s21 = smov 0  }
  0x21   :  { %s5228_s22 = smov 0   ;;  %s5230_s23 = smov 0  }
  0x22   :  { %s5232_s24 = smov 0   ;;  %s5234_s25 = smov 0  }
  0x23   :  { %s5236_s26 = smov 0   ;;  %s5238_s27 = smov 0  }
  0x24   :  { %s5240_s28 = smov 0   ;;  %s5242_s29 = smov 0  }
  0x25   :  { %s5244_s30 = smov 0   ;;  %s5246_s16 = smov 0  }
  0x26 LB: > { %6816 = sst [smem:[#allocation40_spill]] %s5063_s18  ;;  %s5291_s17 = sadd.s32 4294967295, %s5115_s16   ;;  %s5115_s16 = sphi %s5246_s16, %s46_s16   ;;  %s5111_s30 = sphi %s5244_s30, %s6941_s30   ;;  %s5107_s29 = sphi %s5242_s29, %s6940_s29   ;;  %s5103_s28 = sphi %s5240_s28, %s6931_s28   ;;  %s5099_s27 = sphi %s5238_s27, %s6939_s27   ;;  %s5095_s26 = sphi %s5236_s26, %s6938_s26   ;;  %s5091_s25 = sphi %s5234_s25, %s6930_s25   ;;  %s5087_s24 = sphi %s5232_s24, %s6929_s24   ;;  %s5083_s23 = sphi %s5230_s23, %s6937_s23   ;;  %s5079_s22 = sphi %s5228_s22, %s6936_s22   ;;  %s5075_s21 = sphi %s5226_s21, %s6935_s21   ;;  %s5071_s20 = sphi %s5224_s20, %s6934_s20   ;;  %s5067_s19 = sphi %s5222_s19, %s6926_s19   ;;  %s5063_s18 = sphi %s5220_s18, %s6925_s18  }
  0x27   : > { %6817 = sst [smem:[#allocation41_spill]] %s5067_s19  ;;  %p3486_p0 = scmp.ge.s32.totalorder %s5115_s16, 1 }
  0x28   : > { %6818 = sst [smem:[#allocation42_spill]] %s5071_s20  ;;  %p6758_p1 = scmp.eq.s32.totalorder %s5291_s17, 0 }
  0x29   : > { %6819 = sst [smem:[#allocation43_spill]] %s5079_s22  ;;  %p436_p2 = scmp.lt.s32.totalorder %s5115_s16, 9 }
  0x2a   : > { %6820 = sst [smem:[#allocation44_spill]] %s5087_s24  ;;  %s5117_s14 = smov [#allocation13]  }
  0x2b   : > { %6821 = sst [smem:[#allocation45_spill]] %s5091_s25  ;;  %p5296_p3 = pnand %p3486_p0, %p436_p2 }
  0x2c   : > { %6822 = sst [smem:[#allocation46_spill]] %s5095_s26  ;;  %s5119_s0 = smov [#allocation19]  }
  0x2d   : > { %6823 = sst [smem:[#allocation47_spill]] %s5099_s27  ;;  %p4034_p4 = pneg %p5296_p3 }
  0x2e   : > { %6824 = sst [smem:[#allocation48_spill]] %s5103_s28  ;;  %s449_s28 = sshll.u32 %s5117_s14, 4  ;;  %s450_s28 = int_to_ptr.vmem [resolvable:$true] %s449_s28 }
  0x2f   : > { %6825 = sst [smem:[#allocation49_spill]] %s5111_s30  ;;  %s5118_s27 = smov [#allocation16]  }
  0x30   : > { %s6826_s15 = scalar_select %p5296_p3, 1, 0 }
  0x31   : > { %s471_s4 = sshll.u32 %s5118_s27, 4  ;;  %p5304_p5 = pnand %p4034_p4, %p6758_p1  ;;  %s5308_s4 = int_to_ptr.vmem [resolvable:$true] %s471_s4 }
  0x32   : > { %6827 = sst [smem:[#allocation50_spill]] %s6826_s15  ;;  %s495_s18 = sshll.u32 %s5119_s0, 4  ;;  %s5310_s18 = int_to_ptr.vmem [resolvable:$true] %s495_s18 }
  0x33   : > { %s6828_s2 = scalar_select %p5304_p5, 1, 0 }
  0x34   : > { %s6829_s5 = sld [smem:[#allocation63_spill]]  ;;  %p5320_p7 = pneg %p5304_p5 }
  0x36   : > { %s6830_s27 = scalar_select %p5320_p7, 1, 0 }
  0x3a   : > { %s4507_s14 = scalar_lea.hbm %s6829_s5, 16 }
  0x3b   : > { %p4508_p6 = scmp.ne.s32.totalorder %s6829_s5, %s4507_s14  ;;  %p4514_p10 = scmp.lt.u32.totalorder %s4507_s14, %s6829_s5 }
  0x3d   : > { %p4510_p8 = pnand %p5320_p7, %p4508_p6 }
  0x3f   : > { %p4511_p9 = pneg %p4510_p8 }
  0x41   : > { %p4516_p11 = pnand %p4514_p10, %p4511_p9 }
  0x43   : > { %4519 = shalt.err (!%p4516_p11)
}
  0x44   : > { %s4520_s19 = scalar_lea.vmem %s450_s28, 16  ;;  %s4527_s15 = scalar_lea.vmem %s450_s28, 32 }
  0x45   : > { %p4521_p12 = scmp.ne.s32.totalorder %s450_s28, %s4520_s19  ;;  %p4528_p2 = scmp.lt.s32.totalorder %s450_s28, %s450_s28 }
  0x46   : > { %p4529_p4 = scmp.lt.s32.totalorder %s4527_s15, %s4520_s19 }
  0x47   : > { %p4523_p13 = pnand %p4521_p12, %p5320_p7 }
  0x48   : > { %p4530_p1 = por %p4529_p4, %p4528_p2 }
  0x49   : > { %p4524_p0 = pneg %p4523_p13 }
  0x4b   : > { %p4531_p3 = pnand %p4530_p1, %p4524_p0 }
  0x4d   : > { %4534 = shalt.err (!%p4531_p3)
}
  0x4e   : > { %4037 = dma.hbm_to_vmem [thread:$0]  (!%p5304_p5), %s6829_s5, 16, %s450_s28, [#allocation14]  }
  0x4f   : > { %s6831_s7 = sld [smem:[#allocation65_spill]] }
  0x55   : > { %s4535_s0 = scalar_lea.hbm %s6831_s7, 16 }
  0x56   : > { %p4536_p6 = scmp.ne.s32.totalorder %s6831_s7, %s4535_s0  ;;  %p4542_p1 = scmp.lt.u32.totalorder %s4535_s0, %s6831_s7 }
  0x58   : > { %p4538_p8 = pnand %p4536_p6, %p5320_p7 }
  0x5a   : > { %p4539_p9 = pneg %p4538_p8 }
  0x5c   : > { %p4544_p3 = pnand %p4542_p1, %p4539_p9 }
  0x5e   : > { %4547 = shalt.err (!%p4544_p3)
}
  0x5f   : > { %s4548_s28 = scalar_lea.vmem %s5308_s4, 16  ;;  %s4555_s26 = scalar_lea.vmem %s5308_s4, 32 }
  0x60   : > { %p4549_p10 = scmp.ne.s32.totalorder %s5308_s4, %s4548_s28  ;;  %p4556_p13 = scmp.lt.s32.totalorder %s5308_s4, %s5308_s4 }
  0x61   : > { %p4557_p0 = scmp.lt.s32.totalorder %s4555_s26, %s4548_s28 }
  0x62   : > { %p4551_p11 = pnand %p4549_p10, %p5320_p7 }
  0x63   : > { %p4558_p2 = por %p4557_p0, %p4556_p13 }
  0x64   : > { %p4552_p12 = pneg %p4551_p11 }
  0x66   : > { %p4559_p4 = pnand %p4558_p2, %p4552_p12 }
  0x68   : > { %4562 = shalt.err (!%p4559_p4)
}
  0x69   : > { %4043 = dma.hbm_to_vmem [thread:$0]  (!%p5304_p5), %s6831_s7, 16, %s5308_s4, [#allocation17]  }
  0x6a   : > { %s6832_s9 = sld [smem:[#allocation67_spill]] }
  0x70   : > { %s4563_s14 = scalar_lea.hbm %s6832_s9, 32 }
  0x71   : > { %p4564_p6 = scmp.ne.s32.totalorder %s6832_s9, %s4563_s14  ;;  %p4570_p1 = scmp.lt.u32.totalorder %s4563_s14, %s6832_s9 }
  0x73   : > { %p4566_p8 = pnand %p4564_p6, %p5320_p7 }
  0x75   : > { %p4567_p9 = pneg %p4566_p8 }
  0x77   : > { %p4572_p3 = pnand %p4570_p1, %p4567_p9 }
  0x79   : > { %4575 = shalt.err (!%p4572_p3)
}
  0x7a   : > { %s4576_s4 = scalar_lea.vmem %s5310_s18, 32  ;;  %p4584_p13 = scmp.lt.s32.totalorder %s5310_s18, %s5310_s18 }
  0x7b   : > { %p4577_p10 = scmp.ne.s32.totalorder %s5310_s18, %s4576_s4  ;;  %p4585_p0 = scmp.lt.s32.totalorder %s4576_s4, %s4576_s4 }
  0x7d   : > { %p4579_p11 = pnand %p4577_p10, %p5320_p7  ;;  %p4586_p2 = por %p4585_p0, %p4584_p13 }
  0x7f   : > { %p4580_p12 = pneg %p4579_p11 }
  0x81   : > { %p4587_p4 = pnand %p4586_p2, %p4580_p12 }
  0x83   : > { %4590 = shalt.err (!%p4587_p4)
}
  0x84   : > { %4049 = dma.hbm_to_vmem [thread:$0]  (!%p5304_p5), %s6832_s9, 32, %s5310_s18, [#allocation20]  }
  0x85   : > { %s5120_s20 = smov [#allocation22]   ;;  %s6833_s11 = sld [smem:[#allocation69_spill]] }
  0x86   : > { %s519_s24 = sshll.u32 %s5120_s20, 4  ;;  %s520_s24 = int_to_ptr.vmem [resolvable:$true] %s519_s24 }
  0x8b   : > { %s4591_s0 = scalar_lea.hbm %s6833_s11, 16 }
  0x8c   : > { %p4592_p6 = scmp.ne.s32.totalorder %s6833_s11, %s4591_s0  ;;  %p4598_p1 = scmp.lt.u32.totalorder %s4591_s0, %s6833_s11 }
  0x8e   : > { %p4594_p8 = pnand %p4592_p6, %p5320_p7 }
  0x90   : > { %p4595_p9 = pneg %p4594_p8 }
  0x92   : > { %p4600_p3 = pnand %p4598_p1, %p4595_p9 }
  0x94   : > { %4603 = shalt.err (!%p4600_p3)
}
  0x95   : > { %s4604_s18 = scalar_lea.vmem %s520_s24, 16  ;;  %s4611_s26 = scalar_lea.vmem %s520_s24, 32 }
  0x96   : > { %p4605_p10 = scmp.ne.s32.totalorder %s520_s24, %s4604_s18  ;;  %p4612_p13 = scmp.lt.s32.totalorder %s520_s24, %s520_s24 }
  0x97   : > { %p4613_p0 = scmp.lt.s32.totalorder %s4611_s26, %s4604_s18 }
  0x98   : > { %p4607_p11 = pnand %p4605_p10, %p5320_p7 }
  0x99   : > { %p4614_p2 = por %p4613_p0, %p4612_p13 }
  0x9a   : > { %p4608_p12 = pneg %p4607_p11 }
  0x9c   : > { %p4615_p4 = pnand %p4614_p2, %p4608_p12 }
  0x9e   : > { %4618 = shalt.err (!%p4615_p4)
}
  0x9f   : > { %4055 = dma.hbm_to_vmem [thread:$0]  (!%p5304_p5), %s6833_s11, 16, %s520_s24, [#allocation23]  }
  0xa0   : > { %s55_s25 = sadd.s32 1, %s5107_s29  ;;  %p6764_p6 = scmp.eq.s32.totalorder %s5115_s16, 0 }
  0xa1   : > { %p5403_p8 = scmp.ge.s32.totalorder %s55_s25, 4  ;;  %p98_p9 = scmp.ne.s32.totalorder %s5083_s23, %s5079_s22 }
  0xa2   : > { %p104_p1 = scmp.ne.s32.totalorder %s5079_s22, %s5075_s21  ;;  %p6836_p10 = scmp.eq.s32.totalorder %s5291_s17, 0 }
  0xa3   : > { %s6834_s14 = scalar_select %p5403_p8, 1, 0 }
  0xa4   : > { %s6943_s25 = smov (%p5403_p8, %s55_s25), 0  ;;  %p100_p3 = por %p98_p9, %p6764_p6 }
  0xa5   : > { %6835 = sst [smem:[#allocation51_spill]] %s6943_s25  ;;  %p5420_p11 = por %p104_p1, %p6836_p10 }
  0xa6   : > { %p6763_p12 = scmp.lt.s32.totalorder %s5115_s16, 8  ;;  %s6766_s19 = sand.u32 1, %s5115_s16  }
  0xa7   : > { %s6837_s24 = scalar_select %p5420_p11, 1, 0 }
  0xa8   : > { %s6762_s15 = sand.u32 1, %s5083_s23   ;;  %s5432_s4 = sshll.u32 %s5107_s29, 10 }
  0xa9   : > { %6838 = sst [smem:[#allocation52_spill]] %s6837_s24  ;;  %s5429_s28 = sshll.u32 %s6762_s15, 6 }
  0xaa   : > { %s6839_s1 = sld [smem:[#allocation59_spill]]  ;;  %s577_s30 = scalar_lea.vmem [#allocation7], %s5429_s28 }
  0xab   : > { %s584_s20 = sshll.u32 %s577_s30, 4  ;;  %p5443_p13 = pnand %p6763_p12, %p100_p3  ;;  %s5447_s20 = int_to_ptr.vmem [resolvable:$true] %s584_s20 }
  0xac   : > { %s5451_s15 = scalar_lea.sflag [#allocation8], %s6766_s19 }
  0xad   : > { %s6840_s0 = scalar_select %p5443_p13, 1, 0 }
  0xae   : > { %6842 = sst [smem:[#allocation54_spill]] %s5451_s15  ;;  %p5457_p2 = pneg %p5443_p13 }
  0xaf   : > { %6841 = sst [smem:[#allocation53_spill]] %s6840_s0 }
  0xb0   : > { %s5438_s26 = scalar_lea.hbm %s6839_s1, %s5432_s4  ;;  %s4624_s7 = scalar_lea.hbm %s6839_s1, 4096 }
  0xb1   : > { %s4619_s21 = scalar_lea.hbm %s5438_s26, 1024  ;;  %p4625_p1 = scmp.lt.u32.totalorder %s5438_s26, %s6839_s1 }
  0xb2   : > { %p4620_p0 = scmp.ne.s32.totalorder %s5438_s26, %s4619_s21  ;;  %p4626_p3 = scmp.lt.u32.totalorder %s4624_s7, %s4619_s21 }
  0xb3   : > { %s6843_s18 = scalar_select %p5457_p2, 1, 0 }
  0xb4   : > { %p4622_p4 = pnand %p5457_p2, %p4620_p0  ;;  %p4627_p10 = por %p4626_p3, %p4625_p1 }
  0xb5   : > { %6844 = sst [smem:[#allocation55_spill]] %s6843_s18  ;;  %p4628_p12 = scmp.lt.u32.totalorder %s4619_s21, %s5438_s26 }
  0xb6   : > { %p4623_p9 = pneg %p4622_p4 }
  0xb7   : > { %p4629_p6 = por %p4628_p12, %p4627_p10 }
  0xb9   : > { %p4630_p11 = pnand %p4629_p6, %p4623_p9 }
  0xbb   : > { %4633 = shalt.err (!%p4630_p11)
}
  0xbc   : > { %s4634_s19 = scalar_lea.vmem %s5447_s20, 1024  ;;  %s5121_s5 = smov [#allocation7]  }
  0xbd   : > { %p4635_p0 = scmp.ne.s32.totalorder %s5447_s20, %s4634_s19  ;;  %s4639_s30 = sshll.u32 %s5121_s5, 4  ;;  %s4640_s30 = int_to_ptr.vmem [resolvable:$false] %s4639_s30 }
  0xbe   : > { %s4641_s9 = scalar_lea.vmem %s4640_s30, 2048  ;;  %p4642_p5 = scmp.lt.s32.totalorder %s5447_s20, %s4640_s30 }
  0xbf   : > { %p4637_p4 = pnand %p4635_p0, %p5457_p2  ;;  %p4643_p7 = scmp.lt.s32.totalorder %s4641_s9, %s4634_s19 }
  0xc1   : > { %p4638_p8 = pneg %p4637_p4  ;;  %p4644_p1 = por %p4643_p7, %p4642_p5 }
  0xc3   : > { %p4645_p3 = pnand %p4644_p1, %p4638_p8 }
  0xc5   : > { %4648 = shalt.err (!%p4645_p3)
}
  0xc6   : > { %s6775_s7 = smov 64   ;;  %s6786_s11 = smov 4  }
  0xc7   : > { %4068 = dma.hbm_to_vmem [thread:$0]  (!%p5443_p13), %s5438_s26, 1024, %s5447_s20, %s5451_s15, %s6775_s7, %s6775_s7, %s6786_s11  }
  0xc8   : > { %s6845_s3 = sld [smem:[#allocation61_spill]]  ;;  %s619_s30 = scalar_lea.vmem [#allocation10], %s5429_s28 }
  0xc9   : > { %s626_s9 = sshll.u32 %s619_s30, 4  ;;  %s6846_s1 = sand.u32 1, %s5115_s16   ;;  %s5491_s9 = int_to_ptr.vmem [resolvable:$true] %s626_s9 }
  0xca   : > { %s5495_s24 = scalar_lea.sflag [#allocation11], %s6846_s1 }
  0xcb   : > { %6847 = sst [smem:[#allocation56_spill]] %s5495_s24 }
  0xce   : > { %s5488_s5 = scalar_lea.hbm %s6845_s3, %s5432_s4  ;;  %s4654_s21 = scalar_lea.hbm %s6845_s3, 4096 }
  0xcf   : > { %s4649_s22 = scalar_lea.hbm %s5488_s5, 1024  ;;  %p4655_p8 = scmp.lt.u32.totalorder %s5488_s5, %s6845_s3 }
  0xd0   : > { %p4650_p5 = scmp.ne.s32.totalorder %s5488_s5, %s4649_s22  ;;  %p4656_p11 = scmp.lt.u32.totalorder %s4654_s21, %s4649_s22 }
  0xd1   : > { %p4658_p9 = scmp.lt.u32.totalorder %s4649_s22, %s5488_s5 }
  0xd2   : > { %p4652_p7 = pnand %p4650_p5, %p5457_p2  ;;  %p4657_p12 = por %p4656_p11, %p4655_p8 }
  0xd4   : > { %p4653_p6 = pneg %p4652_p7  ;;  %p4659_p10 = por %p4658_p9, %p4657_p12 }
  0xd6   : > { %p4660_p0 = pnand %p4659_p10, %p4653_p6 }
  0xd8   : > { %4663 = shalt.err (!%p4660_p0)
}
  0xd9   : > { %s4664_s1 = scalar_lea.vmem %s5491_s9, 1024  ;;  %s5124_s30 = smov [#allocation10]  }
  0xda   : > { %p4665_p4 = scmp.ne.s32.totalorder %s5491_s9, %s4664_s1  ;;  %s4669_s26 = sshll.u32 %s5124_s30, 4  ;;  %s4670_s26 = int_to_ptr.vmem [resolvable:$false] %s4669_s26 }
  0xdb   : > { %s4671_s7 = scalar_lea.vmem %s4670_s26, 2048  ;;  %p4672_p5 = scmp.lt.s32.totalorder %s5491_s9, %s4670_s26 }
  0xdc   : > { %p4667_p1 = pnand %p4665_p4, %p5457_p2  ;;  %p4673_p7 = scmp.lt.s32.totalorder %s4671_s7, %s4664_s1 }
  0xde   : > { %p4668_p3 = pneg %p4667_p1  ;;  %p4674_p8 = por %p4673_p7, %p4672_p5 }
  0xe0   : > { %p4675_p11 = pnand %p4674_p8, %p4668_p3 }
  0xe2   : > { %4678 = shalt.err (!%p4675_p11)
}
  0xe3   : > { %s6848_s22 = smov 64   ;;  %s5125_s20 = smov [#allocation15]  }
  0xe4   : > { %4074 = dma.hbm_to_vmem [thread:$0]  (!%p5443_p13), %s5488_s5, 1024, %s5491_s9, %s5495_s24, %s6848_s22, %s6848_s22, %s6786_s11  }
  0xe5   : > { %s460_s21 = sshll.u32 %s5125_s20, 4  ;;  %s5126_s19 = smov [#allocation18]   ;;  %s461_s21 = int_to_ptr.vmem [resolvable:$true] %s460_s21 }
  0xe6   : > { %s481_s30 = sshll.u32 %s5126_s19, 4  ;;  %s6849_s6 = sld [smem:[#allocation64_spill]]  ;;  %s482_s30 = int_to_ptr.vmem [resolvable:$true] %s481_s30 }
  0xe7   : > { %p6850_p12 = scmp.ne.s32.totalorder %s6830_s27, 0 }
  0xec   : > { %s4679_s7 = scalar_lea.hbm %s6849_s6, 16 }
  0xed   : > { %p4680_p6 = scmp.ne.s32.totalorder %s6849_s6, %s4679_s7  ;;  %p4686_p0 = scmp.lt.u32.totalorder %s4679_s7, %s6849_s6 }
  0xef   : > { %p4682_p9 = pnand %p4680_p6, %p6850_p12 }
  0xf1   : > { %p4683_p10 = pneg %p4682_p9 }
  0xf3   : > { %p4688_p4 = pnand %p4686_p0, %p4683_p10 }
  0xf5   : > { %4691 = shalt.err (!%p4688_p4)
}
  0xf6   : > { %s4692_s5 = scalar_lea.vmem %s461_s21, 16  ;;  %s4699_s9 = scalar_lea.vmem %s461_s21, 32 }
  0xf7   : > { %p4693_p1 = scmp.ne.s32.totalorder %s461_s21, %s4692_s5  ;;  %p4700_p7 = scmp.lt.s32.totalorder %s461_s21, %s461_s21 }
  0xf8   : > { %p4701_p8 = scmp.lt.s32.totalorder %s4699_s9, %s4692_s5 }
  0xf9   : > { %p4695_p3 = pnand %p4693_p1, %p6850_p12 }
  0xfa   : > { %p4702_p11 = por %p4701_p8, %p4700_p7 }
  0xfb   : > { %p4696_p5 = pneg %p4695_p3 }
  0xfd   : > { %p4703_p13 = pnand %p4702_p11, %p4696_p5 }
  0xff   : > { %4706 = shalt.err (!%p4703_p13)
}
 0x100   : > { %p6851_p6 = scmp.ne.s32.totalorder %s6828_s2, 0  ;;  %s6852_s8 = sld [smem:[#allocation66_spill]] }
 0x102   : > { %4040 = dma.hbm_to_vmem [thread:$0]  (!%p6851_p6), %s6849_s6, 16, %s461_s21, [#allocation14]  }
 0x106   : > { %s4707_s20 = scalar_lea.hbm %s6852_s8, 2048 }
 0x107   : > { %p4708_p9 = scmp.ne.s32.totalorder %s6852_s8, %s4707_s20  ;;  %p4714_p13 = scmp.lt.u32.totalorder %s4707_s20, %s6852_s8 }
 0x109   : > { %p4710_p10 = pnand %p4708_p9, %p6850_p12 }
 0x10b   : > { %p4711_p0 = pneg %p4710_p10 }
 0x10d   : > { %p4716_p4 = pnand %p4714_p13, %p4711_p0 }
 0x10f   : > { %4719 = shalt.err (!%p4716_p4)
}
 0x110   : > { %s4720_s5 = scalar_lea.vmem %s482_s30, 2048  ;;  %p4728_p7 = scmp.lt.s32.totalorder %s482_s30, %s482_s30 }
 0x111   : > { %p4721_p1 = scmp.ne.s32.totalorder %s482_s30, %s4720_s5  ;;  %p4729_p8 = scmp.lt.s32.totalorder %s4720_s5, %s4720_s5 }
 0x113   : > { %p4723_p3 = pnand %p4721_p1, %p6850_p12  ;;  %p4730_p11 = por %p4729_p8, %p4728_p7 }
 0x115   : > { %p4724_p5 = pneg %p4723_p3 }
 0x117   : > { %p4731_p2 = pnand %p4730_p11, %p4724_p5 }
 0x119   : > { %4734 = shalt.err (!%p4731_p2)
}
 0x11a   : > { %s6789_s21 = smov 128   ;;  %s6790_s9 = smov 8  }
 0x11b   : > { %4046 = dma.hbm_to_vmem [thread:$0]  (!%p6851_p6), %s6852_s8, 2048, %s482_s30, [#allocation17], %s6789_s21, %s6789_s21, %s6790_s9  }
 0x11c   : > { %s5129_s0 = smov [#allocation21]   ;;  %s5130_s20 = smov [#allocation24]  }
 0x11d   : > { %s505_s18 = sshll.u32 %s5129_s0, 4  ;;  %s530_s19 = sshll.u32 %s5130_s20, 4  ;;  %s506_s18 = int_to_ptr.vmem [resolvable:$true] %s505_s18  ;;  %s531_s19 = int_to_ptr.vmem [resolvable:$true] %s530_s19 }
 0x11e   : > { %s6853_s10 = sld [smem:[#allocation68_spill]] }
 0x124   : > { %s4735_s7 = scalar_lea.hbm %s6853_s10, 2048 }
 0x125   : > { %p4736_p2 = scmp.ne.s32.totalorder %s6853_s10, %s4735_s7  ;;  %p4742_p0 = scmp.lt.u32.totalorder %s4735_s7, %s6853_s10 }
 0x127   : > { %p4738_p9 = pnand %p4736_p2, %p6850_p12 }
 0x129   : > { %p4739_p10 = pneg %p4738_p9 }
 0x12b   : > { %p4744_p13 = pnand %p4742_p0, %p4739_p10 }
 0x12d   : > { %4747 = shalt.err (!%p4744_p13)
}
 0x12e   : > { %s4748_s30 = scalar_lea.vmem %s506_s18, 2048  ;;  %p4756_p5 = scmp.lt.s32.totalorder %s506_s18, %s506_s18 }
 0x12f   : > { %p4749_p4 = scmp.ne.s32.totalorder %s506_s18, %s4748_s30  ;;  %p4757_p7 = scmp.lt.s32.totalorder %s4748_s30, %s4748_s30 }
 0x131   : > { %p4751_p1 = pnand %p4749_p4, %p6850_p12  ;;  %p4758_p8 = por %p4757_p7, %p4756_p5 }
 0x133   : > { %p4752_p3 = pneg %p4751_p1 }
 0x135   : > { %p4759_p11 = pnand %p4758_p8, %p4752_p3 }
 0x137   : > { %4762 = shalt.err (!%p4759_p11)
}
 0x138   : > { %s6854_s11 = smov 4   ;;  %s6855_s12 = sld [smem:[#allocation70_spill]] }
 0x139   : > { %4052 = dma.hbm_to_vmem [thread:$0]  (!%p6851_p6), %s6853_s10, 2048, %s506_s18, [#allocation20], %s6848_s22, %s6848_s22, %s6854_s11  }
 0x13e   : > { %s4763_s0 = scalar_lea.hbm %s6855_s12, 16 }
 0x13f   : > { %p4764_p2 = scmp.ne.s32.totalorder %s6855_s12, %s4763_s0  ;;  %p4770_p0 = scmp.lt.u32.totalorder %s4763_s0, %s6855_s12 }
 0x141   : > { %p4766_p9 = pnand %p4764_p2, %p6850_p12 }
 0x143   : > { %p4767_p10 = pneg %p4766_p9 }
 0x145   : > { %p4772_p13 = pnand %p4770_p0, %p4767_p10 }
 0x147   : > { %4775 = shalt.err (!%p4772_p13)
}
 0x148   : > { %s4776_s5 = scalar_lea.vmem %s531_s19, 16  ;;  %s4783_s18 = scalar_lea.vmem %s531_s19, 32 }
 0x149   : > { %p4777_p4 = scmp.ne.s32.totalorder %s531_s19, %s4776_s5  ;;  %p4784_p5 = scmp.lt.s32.totalorder %s531_s19, %s531_s19 }
 0x14a   : > { %p4785_p7 = scmp.lt.s32.totalorder %s4783_s18, %s4776_s5 }
 0x14b   : > { %p4779_p1 = pnand %p4777_p4, %p6850_p12 }
 0x14c   : > { %p4786_p8 = por %p4785_p7, %p4784_p5 }
 0x14d   : > { %p4780_p3 = pneg %p4779_p1 }
 0x14f   : > { %p4787_p11 = pnand %p4786_p8, %p4780_p3 }
 0x151   : > { %4790 = shalt.err (!%p4787_p11)
}
 0x152   : > { %4058 = dma.hbm_to_vmem [thread:$0]  (!%p6851_p6), %s6855_s12, 16, %s531_s19, [#allocation23]  }
 0x153   : > { %s5131_s24 = smov [#allocation25]   ;;  %s6856_s13 = sld [smem:[#allocation71_spill]] }
 0x154   : > { %s541_s3 = sshll.u32 %s5131_s24, 4  ;;  %s542_s3 = int_to_ptr.vmem [resolvable:$true] %s541_s3 }
 0x159   : > { %s4791_s20 = scalar_lea.hbm %s6856_s13, 16 }
 0x15a   : > { %p4792_p2 = scmp.ne.s32.totalorder %s6856_s13, %s4791_s20  ;;  %p4798_p0 = scmp.lt.u32.totalorder %s4791_s20, %s6856_s13 }
 0x15c   : > { %p4794_p9 = pnand %p4792_p2, %p6850_p12 }
 0x15e   : > { %p4795_p10 = pneg %p4794_p9 }
 0x160   : > { %p4800_p13 = pnand %p4798_p0, %p4795_p10 }
 0x162   : > { %4803 = shalt.err (!%p4800_p13)
}
 0x163   : > { %s4804_s19 = scalar_lea.vmem %s542_s3, 16  ;;  %s4811_s18 = scalar_lea.vmem %s542_s3, 32 }
 0x164   : > { %p4805_p4 = scmp.ne.s32.totalorder %s542_s3, %s4804_s19  ;;  %p4812_p5 = scmp.lt.s32.totalorder %s542_s3, %s542_s3 }
 0x165   : > { %p4813_p7 = scmp.lt.s32.totalorder %s4811_s18, %s4804_s19 }
 0x166   : > { %p4807_p1 = pnand %p4805_p4, %p6850_p12 }
 0x167   : > { %p4814_p8 = por %p4813_p7, %p4812_p5 }
 0x168   : > { %p4808_p3 = pneg %p4807_p1 }
 0x16a   : > { %p4815_p11 = pnand %p4814_p8, %p4808_p3 }
 0x16c   : > { %4818 = shalt.err (!%p4815_p11)
}
 0x16d   : > { %s6857_s24 = sld [smem:[#allocation49_spill]]  ;;  %s6858_s15 = sld [smem:[#allocation46_spill]] }
 0x16e   : > { %s6859_s0 = sld [smem:[#allocation45_spill]]  ;;  %s6860_s27 = sld [smem:[#allocation44_spill]] }
 0x16f   : > { %4061 = dma.hbm_to_vmem [thread:$0]  (!%p6851_p6), %s6856_s13, 16, %s542_s3, [#allocation26]  }
 0x170   : > { %s3485_s2 = sadd.s32 4294967294, %s5115_s16   ;;  %p6861_p12 = scmp.ne.s32.totalorder %s6834_s14, 0 }
 0x171   : > { %s6862_s1 = sld [smem:[#allocation42_spill]]  ;;  %p6863_p0 = scmp.eq.s32.totalorder %s5115_s16, 0 }
 0x172   : > { %s6865_s7 = sld [smem:[#allocation41_spill]]  ;;  %s88_s14 = ssub.s32 %s5107_s29, %s6943_s25 }
 0x173   : > { %s58_s20 = sadd.s32 1, %s6857_s24  ;;  %s65_s26 = sadd.s32 1, %s6858_s15 }
 0x174   : > { %s6945_s20 = smov (!%p6861_p12, %s58_s20), %s6857_s24  ;;  %p72_p2 = scmp.ne.s32.totalorder %s6858_s15, %s6859_s0 }
 0x175   : > { %p60_p9 = scmp.ge.s32.totalorder %s6945_s20, 2  ;;  %p78_p10 = scmp.ne.s32.totalorder %s6859_s0, %s6860_s27 }
 0x176   : > { %p5633_p6 = por %p6863_p0, %p72_p2  ;;  %s6866_s5 = sld [smem:[#allocation40_spill]] }
 0x177   : > { %s6947_s20 = smov (%p60_p9, %s6945_s20), 0  ;;  %p6868_p13 = scmp.eq.s32.totalorder %s5291_s17, 0 }
 0x178   : > { %6867 = sst [smem:[#allocation57_spill]] %s6947_s20  ;;  %p89_p1 = scmp.eq.s32.totalorder %s88_s14, 0 }
 0x179   : > { %p5646_p4 = por %p6868_p13, %p78_p10  ;;  %s62_s18 = ssub.s32 %s6857_s24, %s6947_s20 }
 0x17a   : > { %p395_p3 = scmp.eq.s32.totalorder %s5291_s17, 7  ;;  %p63_p5 = scmp.eq.s32.totalorder %s62_s18, 0 }
 0x17b   : > { %s6869_s19 = scalar_select %p5646_p4, 1, 0 }
 0x17c   : > { %p5653_p7 = scmp.eq.s32.totalorder %s3485_s2, 7  ;;  %s6871_s6 = sadd.s32 1, %s5083_s23 }
 0x17d   : > { %s5660_s21 = scalar_select %p89_p1, %s5083_s23, %s6871_s6  }
 0x17e   : > { %s5663_s9 = scalar_select %p63_p5, %s6858_s15, %s65_s26  }
 0x17f   : > { %p5670_p8 = por %p395_p3, %p72_p2  ;;  %p5679_p11 = por %p5653_p7, %p78_p10 }
 0x180   : > { %s409_s10 = sor.u32 %s88_s14, %s62_s18  ;;  %s412_s6 = sadd.s32 1, %s6862_s1 }
 0x181   : > { %s6872_s8 = scalar_select %p5670_p8, 1, 0 }
 0x182   : > { %s6873_s2 = scalar_select %p5679_p11, 1, 0 }
 0x183   : > { %p410_p12 = scmp.eq.s32.totalorder %s409_s10, 0  ;;  %p422_p9 = scmp.ne.s32.totalorder %s6862_s1, %s6865_s7 }
 0x184   : > { %p428_p0 = scmp.ne.s32.totalorder %s6865_s7, %s6866_s5  ;;  %s552_s26 = sand.u32 1, %s6858_s15  }
 0x185   : > { %s6949_s1 = smov (!%p410_p12, %s6862_s1), %s412_s6  ;;  %p5694_p2 = por %p422_p9, %p395_p3 }
 0x186   : > { %p5700_p10 = por %p428_p0, %p5653_p7  ;;  %s3497_s14 = sshll.u32 %s552_s26, 7 }
 0x187   : > { %s6874_s0 = scalar_select %p5694_p2, 1, 0 }
 0x188   : > { %s6875_s27 = scalar_select %p5700_p10, 1, 0 }
 0x189   : > { %s3620_s18 = sshll.u32 %s6857_s24, 11  ;;  %s6876_s10 = sld [smem:[#allocation58_spill]] }
 0x18a   : > { %s556_s15 = scalar_lea.vmem [#allocation4], %s3497_s14  ;;  %p6877_p13 = scmp.lt.s32.totalorder %s5115_s16, 8 }
 0x18b   : > { %s563_s7 = sshll.u32 %s556_s15, 4  ;;  %s6879_s6 = sld [smem:[#allocation60_spill]]  ;;  %s5710_s7 = int_to_ptr.vmem [resolvable:$true] %s563_s7 }
 0x18c   : > { %p5716_p1 = pnand %p6877_p13, %p5633_p6  ;;  %s598_s13 = scalar_lea.vmem [#allocation9], %s5429_s28 }
 0x18d   : > { %s5729_s14 = scalar_lea.sflag [#allocation5], %s552_s26 }
 0x18e   : > { %p4821_p5 = pneg %p5716_p1 }
 0x18f   : > { %s5708_s20 = scalar_lea.hbm %s6876_s10, %s3620_s18  ;;  %s5727_s18 = sshll.u32 %s598_s13, 4  ;;  %s5761_s18 = int_to_ptr.vmem [resolvable:$true] %s5727_s18 }
 0x190   : > { %s4819_s15 = scalar_lea.hbm %s5708_s20, 2048  ;;  %s4824_s24 = scalar_lea.hbm %s6876_s10, 4096 }
 0x191   : > { %s5724_s12 = scalar_lea.hbm %s6879_s6, %s5432_s4  ;;  %p4820_p3 = scmp.ne.s32.totalorder %s5708_s20, %s4819_s15 }
 0x192   : > { %p4825_p12 = scmp.lt.u32.totalorder %s5708_s20, %s6876_s10  ;;  %p4826_p9 = scmp.lt.u32.totalorder %s4824_s24, %s4819_s15 }
 0x193   : > { %p4822_p6 = pnand %p4821_p5, %p4820_p3  ;;  %p4828_p13 = scmp.lt.u32.totalorder %s4819_s15, %s5708_s20 }
 0x194   : > { %p4827_p0 = por %p4826_p9, %p4825_p12 }
 0x195   : > { %p4823_p7 = pneg %p4822_p6 }
 0x196   : > { %p4829_p10 = por %p4828_p13, %p4827_p0 }
 0x198   : > { %p4830_p11 = pnand %p4829_p10, %p4823_p7 }
 0x19a   : > { %4833 = shalt.err (!%p4830_p11)
}
 0x19b   : > { %s4834_s28 = scalar_lea.vmem %s5710_s7, 2048  ;;  %s5132_s25 = smov [#allocation4]  }
 0x19c   : > { %p4835_p3 = scmp.ne.s32.totalorder %s5710_s7, %s4834_s28  ;;  %s4839_s26 = sshll.u32 %s5132_s25, 4  ;;  %s4840_s26 = int_to_ptr.vmem [resolvable:$false] %s4839_s26 }
 0x19d   : > { %s4841_s13 = scalar_lea.vmem %s4840_s26, 4096  ;;  %p4842_p8 = scmp.lt.s32.totalorder %s5710_s7, %s4840_s26 }
 0x19e   : > { %p4837_p6 = pnand %p4835_p3, %p4821_p5  ;;  %p4843_p12 = scmp.lt.s32.totalorder %s4841_s13, %s4834_s28 }
 0x1a0   : > { %p4838_p2 = pneg %p4837_p6  ;;  %p4844_p9 = por %p4843_p12, %p4842_p8 }
 0x1a2   : > { %p4845_p0 = pnand %p4844_p9, %p4838_p2 }
 0x1a4   : > { %4848 = shalt.err (!%p4845_p0)
}
 0x1a5   : > { %s6880_s15 = smov 8   ;;  %s6881_s3 = smov 128  }
 0x1a6   : > { %s6882_s24 = sld [smem:[#allocation55_spill]]  ;;  %s6883_s30 = sand.u32 1, %s5083_s23  }
 0x1a7   : > { %4065 = dma.hbm_to_vmem [thread:$0]  (!%p5716_p1), %s5708_s20, 2048, %s5710_s7, %s5729_s14, %s6881_s3, %s6881_s3, %s6880_s15  }
 0x1a8   : > { %s5765_s4 = sshll.u32 %s6883_s30, 4  ;;  %s4849_s5 = scalar_lea.hbm %s5724_s12, 1024 }
 0x1a9   : > { %p4850_p8 = scmp.ne.s32.totalorder %s5724_s12, %s4849_s5  ;;  %s4854_s26 = scalar_lea.hbm %s6879_s6, 4096 }
 0x1aa   : > { %p4855_p5 = scmp.lt.u32.totalorder %s5724_s12, %s6879_s6  ;;  %p4856_p7 = scmp.lt.u32.totalorder %s4854_s26, %s4849_s5 }
 0x1ab   : > { %p4858_p13 = scmp.lt.u32.totalorder %s4849_s5, %s5724_s12 }
 0x1ac   : > { %p6884_p11 = scmp.ne.s32.totalorder %s6882_s24, 0  ;;  %p4857_p1 = por %p4856_p7, %p4855_p5 }
 0x1ae   : > { %p4852_p2 = pnand %p4850_p8, %p6884_p11  ;;  %p4859_p3 = por %p4858_p13, %p4857_p1 }
 0x1b0   : > { %p4853_p10 = pneg %p4852_p2 }
 0x1b2   : > { %p4860_p6 = pnand %p4859_p3, %p4853_p10 }
 0x1b4   : > { %4863 = shalt.err (!%p4860_p6)
}
 0x1b5   : > { %s4864_s20 = scalar_lea.vmem %s5761_s18, 1024  ;;  %s5133_s7 = smov [#allocation9]  }
 0x1b6   : > { %p4865_p12 = scmp.ne.s32.totalorder %s5761_s18, %s4864_s20  ;;  %s4869_s14 = sshll.u32 %s5133_s7, 4  ;;  %s4870_s14 = int_to_ptr.vmem [resolvable:$false] %s4869_s14 }
 0x1b7   : > { %s4871_s10 = scalar_lea.vmem %s4870_s14, 2048  ;;  %p4872_p8 = scmp.lt.s32.totalorder %s5761_s18, %s4870_s14 }
 0x1b8   : > { %p4867_p9 = pnand %p4865_p12, %p6884_p11  ;;  %p4873_p2 = scmp.lt.s32.totalorder %s4871_s10, %s4864_s20 }
 0x1ba   : > { %p4868_p0 = pneg %p4867_p9  ;;  %p4874_p5 = por %p4873_p2, %p4872_p8 }
 0x1bc   : > { %p4875_p7 = pnand %p4874_p5, %p4868_p0 }
 0x1be   : > { %4878 = shalt.err (!%p4875_p7)
}
 0x1bf   : > { %s6885_s15 = sld [smem:[#allocation53_spill]]  ;;  %s6887_s3 = sld [smem:[#allocation54_spill]] }
 0x1c0   : > { %s3624_s30 = sshll.u32 %s5107_s29, 8  ;;  %s6888_s25 = sld [smem:[#allocation62_spill]] }
 0x1c1   : > { %s640_s20 = scalar_lea.vmem [#allocation12], %s5765_s4 }
 0x1c2   : > { %s647_s7 = sshll.u32 %s640_s20, 4  ;;  %s5799_s7 = int_to_ptr.vmem [resolvable:$true] %s647_s7 }
 0x1c5   : > { %p6886_p10 = scmp.ne.s32.totalorder %s6885_s15, 0 }
 0x1c6   : > { %s6889_s13 = smov %s6888_s25  ;;  %s5796_s26 = scalar_lea.hbm %s6888_s25, %s3624_s30 }
 0x1c7   : > { %4071 = dma.hbm_to_vmem [thread:$0]  (!%p6886_p10), %s5724_s12, 1024, %s5761_s18, %s6887_s3, %s6848_s22, %s6848_s22, %s6854_s11  }
 0x1c8   : > { %s4879_s14 = scalar_lea.hbm %s5796_s26, 256  ;;  %s4884_s10 = scalar_lea.hbm %s6889_s13, 1024 }
 0x1c9   : > { %p4880_p1 = scmp.ne.s32.totalorder %s5796_s26, %s4879_s14  ;;  %p4885_p6 = scmp.lt.u32.totalorder %s5796_s26, %s6889_s13 }
 0x1ca   : > { %p4886_p12 = scmp.lt.u32.totalorder %s4884_s10, %s4879_s14  ;;  %p4888_p0 = scmp.lt.u32.totalorder %s4879_s14, %s5796_s26 }
 0x1cb   : > { %p4882_p13 = pnand %p4880_p1, %p6884_p11 }
 0x1cc   : > { %p4887_p9 = por %p4886_p12, %p4885_p6 }
 0x1cd   : > { %p4883_p3 = pneg %p4882_p13 }
 0x1ce   : > { %p4889_p8 = por %p4888_p0, %p4887_p9 }
 0x1d0   : > { %p4890_p2 = pnand %p4889_p8, %p4883_p3 }
 0x1d2   : > { %4893 = shalt.err (!%p4890_p2)
}
 0x1d3   : > { %s4894_s4 = scalar_lea.vmem %s5799_s7, 256  ;;  %s5134_s5 = smov [#allocation12]  }
 0x1d4   : > { %p4895_p5 = scmp.ne.s32.totalorder %s5799_s7, %s4894_s4  ;;  %s4899_s28 = sshll.u32 %s5134_s5, 4  ;;  %s4900_s28 = int_to_ptr.vmem [resolvable:$false] %s4899_s28 }
 0x1d5   : > { %s4901_s25 = scalar_lea.vmem %s4900_s28, 512  ;;  %p4902_p13 = scmp.lt.s32.totalorder %s5799_s7, %s4900_s28 }
 0x1d6   : > { %p4897_p7 = pnand %p4895_p5, %p6884_p11  ;;  %p4903_p4 = scmp.lt.s32.totalorder %s4901_s25, %s4894_s4 }
 0x1d8   : > { %p4898_p1 = pneg %p4897_p7  ;;  %p4904_p6 = por %p4903_p4, %p4902_p13 }
 0x1da   : > { %p4905_p12 = pnand %p4904_p6, %p4898_p1 }
 0x1dc   : > { %4908 = shalt.err (!%p4905_p12)
}
 0x1dd   : > { %s6890_s20 = sld [smem:[#allocation56_spill]]  ;;  %s6891_s24 = sld [smem:[#allocation50_spill]] }
 0x1e3   : > { %4077 = dma.hbm_to_vmem [thread:$0]  (!%p6886_p10), %s5796_s26, 256, %s5799_s7, %s6890_s20, %s6848_s22, %s6848_s22, %s6854_s11  }
 0x1e4   : > { %p6892_p11 = scmp.ne.s32.totalorder %s6891_s24, 0 }
 0x1e5   : > { %s6893_s14 = sld [smem:[#allocation45_spill]] (!%p6892_p11)  ;;  %p6894_p4 = scmp.ne.s32.totalorder (!%p6892_p11), %s6869_s19, 0 }
 0x1e6   : > { %659 = sbr.rel (%p6892_p11) target bundleno = 3060 (0xbf4), region = 76 }
 0x1eb   : > { %s5829_s12 = sand.u32 (!%p6892_p11), 1, %s6893_s14  }
 0x1ec   : > { %s3513_s18 = sshll.u32 (!%p6892_p11), %s5829_s12, 7  ;;  %s662_s10 = scalar_lea.sflag (!%p6892_p11), [#allocation5], %s5829_s12 }
 0x1ed   : > { %s5835_s15 = scalar_lea.vmem [#allocation4], %s3513_s18 }
 0x1ee   : > { %5022 = dma.done.wait (%p6894_p4), %s662_s10, 2048  }
 0x1ef   : > { %5024 = vsyncadd (%p6894_p4), %s662_s10, 4294965248  ;;  %s6895_s22 = sld [smem:[#allocation43_spill]]  ;;  %s6896_s11 = sld [smem:[#allocation52_spill]] }
 0x1f0   : > { %s670_s26 = sand.u32 1, %s5291_s17  }
 0x1f1   : > { %s671_s30 = scalar_lea.sflag [#allocation8], %s670_s26 }
 0x1f5   : > { %s672_s7 = sand.u32 1, %s6895_s22   ;;  %p6897_p10 = scmp.ne.s32.totalorder %s6896_s11, 0 }
 0x1f6   : > { %s3514_s3 = sshll.u32 %s672_s7, 6 }
 0x1f7   : > { %s5843_s4 = scalar_lea.vmem [#allocation7], %s3514_s3 }
 0x1f8   : > { %5026 = dma.done.wait (%p6897_p10), %s671_s30, 2048  }
 0x1f9   : > { %5028 = vsyncadd (%p6897_p10), %s671_s30, 4294965248  ;;  %s5849_s5 = scalar_lea.vmem [#allocation9], %s3514_s3  ;;  %s689_s28 = scalar_lea.sflag [#allocation11], %s670_s26 }
 0x1fa   : > { %s5851_s19 = scalar_lea.vmem [#allocation10], %s3514_s3 }
 0x1fb   : > { %5030 = dma.done.wait (%p6897_p10), %s689_s28, 1280  }
 0x1fc   : > { %5032 = vsyncadd (%p6897_p10), %s689_s28, 4294966016  ;;  %s5857_s25 = sshll.u32 %s672_s7, 4  ;;  %p6898_p3 = scmp.eq.s32.totalorder %s5291_s17, 0 }
 0x1fd   : > { %s701_s20 = scalar_lea.vmem [#allocation12], %s5857_s25 }
 0x1fe   : > { %5034 = dma.done.wait (%p6898_p3), [#allocation14], 32   ;;  %p6899_p9 = pmov %p6898_p3 }
 0x1ff   : > { %p6900_p0 = pmov %p6898_p3 }
 0x200   : > { %5036 = vsyncadd (%p6899_p9), [#allocation14], 4294967264 }
 0x201   : > { %5038 = dma.done.wait (%p6900_p0), [#allocation17], 2064   ;;  %p6901_p8 = pmov %p6900_p0 }
 0x202   : > { %p6902_p2 = pmov %p6900_p0 }
 0x203   : > { %5040 = vsyncadd (%p6901_p8), [#allocation17], 4294965232 }
 0x204   : > { %5042 = dma.done.wait (%p6902_p2), [#allocation20], 2080   ;;  %p6903_p5 = pmov %p6900_p0 }
 0x205   : > { %p6904_p7 = pmov %p6900_p0 }
 0x206   : > { %5044 = vsyncadd (%p6903_p5), [#allocation20], 4294965216 }
 0x207   : > { %5046 = dma.done.wait (%p6904_p7), [#allocation23], 32   ;;  %p6905_p1 = pmov %p6900_p0 }
 0x208   : > { %p6906_p13 = pmov %p6900_p0 }
 0x209   : > { %5048 = vsyncadd (%p6905_p1), [#allocation23], 4294967264 }
 0x20a   : > { %5050 = dma.done.wait (%p6906_p13), [#allocation26], 16   ;;  %p6907_p6 = pmov %p6900_p0 }
 0x20b   : > { %s6908_s24 = sld [smem:[#allocation41_spill]]  ;;  %s5885_s22 = scalar_lea.vmem [#allocation27], %s3513_s18 }
 0x20c   : > { %5052 = vsyncadd (%p6907_p6), [#allocation26], 4294967280  ;;  %s6909_s26 = sld [smem:[#allocation47_spill]] }
 0x211   : > { %s6797_s14 = sand.u32 1, %s6908_s24  }
 0x212   : > { %s3528_s10 = sshll.u32 %s6797_s14, 7  ;;  %p3529_p12 = scmp.ne.s32.totalorder %s6909_s26, 0 }
 0x213   : > { %s5887_s11 = scalar_lea.vmem [#allocation28], %s3528_s10  ;;  %v5891_v0 = vld [vmem:[%s5835_s15] sm:$0xff] (!%p3529_p12)  ;;  %v5894_v2 = vld [vmem:[%s5835_s15 + $0x10] sm:$0xff] (!%p3529_p12)  ;;  %v5901_v5 = vld [vmem:[%s5835_s15 + $0x8] sm:$0xff] (!%p3529_p12) }
 0x214   : > { %813 = sbr.rel (%p3529_p12) target bundleno = 878 (0x36e), region = 136  ;;  %v3532_v1 = vld [vmem:[#allocation13] ss:$0 sm:$0xff] (!%p3529_p12)  ;;  %832 = vadd.xlane.f32.xlu0 (!%p3529_p12), %v5891_v0  ;;  %836 = vadd.xlane.f32.xlu1 (!%p3529_p12), %v5894_v2  ;;  %v5904_v6 = vld [vmem:[%s5835_s15 + $0x18] sm:$0xff] (!%p3529_p12)  ;;  %v5913_v11 = vld [vmem:[%s5835_s15 + $0x28] sm:$0xff] (!%p3529_p12) }
 0x215   : > { %v1076_v3 = vadd.f32 (!%p3529_p12), %v3532_v1, %v5891_v0  ;;  %v1078_v4 = vadd.f32 (!%p3529_p12), %v3532_v1, %v5894_v2  ;;  %v5907_v7 = vld [vmem:[%s5835_s15 + $0x20] sm:$0xff] (!%p3529_p12)  ;;  %v1077_v8 = vadd.f32 (!%p3529_p12), %v3532_v1, %v5901_v5  ;;  %v1079_v9 = vadd.f32 (!%p3529_p12), %v3532_v1, %v5904_v6  ;;  %v5916_v12 = vld [vmem:[%s5835_s15 + $0x30] sm:$0xff] (!%p3529_p12)  ;;  %v5919_v13 = vld [vmem:[%s5835_s15 + $0x38] sm:$0xff] (!%p3529_p12) }
 0x216   : > { %v1080_v10 = vadd.f32 (!%p3529_p12), %v3532_v1, %v5907_v7  ;;  %v1081_v14 = vadd.f32 (!%p3529_p12), %v3532_v1, %v5913_v11  ;;  %v1082_v15 = vadd.f32 (!%p3529_p12), %v3532_v1, %v5916_v12  ;;  %v1083_v16 = vadd.f32 (!%p3529_p12), %v3532_v1, %v5919_v13  ;;  %v5925_v17 = vld [vmem:[%s5835_s15 + $0x40] sm:$0xff] (!%p3529_p12)  ;;  %v5928_v18 = vld [vmem:[%s5835_s15 + $0x48] sm:$0xff] (!%p3529_p12)  ;;  %v5931_v19 = vld [vmem:[%s5835_s15 + $0x50] sm:$0xff] (!%p3529_p12) }
 0x217   : > { %1092 = vst [vmem:[#allocation3] sm:$0xff] (!%p3529_p12), %v1076_v3  ;;  %1094 = vst [vmem:[#allocation3 + $0x10] sm:$0xff] (!%p3529_p12), %v1078_v4  ;;  %v1084_v20 = vadd.f32 (!%p3529_p12), %v3532_v1, %v5925_v17  ;;  %v1085_v21 = vadd.f32 (!%p3529_p12), %v3532_v1, %v5928_v18  ;;  %v1086_v22 = vadd.f32 (!%p3529_p12), %v3532_v1, %v5931_v19  ;;  %v5937_v23 = vld [vmem:[%s5835_s15 + $0x58] sm:$0xff] (!%p3529_p12)  ;;  %v5940_v24 = vld [vmem:[%s5835_s15 + $0x60] sm:$0xff] (!%p3529_p12) }
 0x218   : > { %1093 = vst [vmem:[#allocation3 + $0x8] sm:$0xff] (!%p3529_p12), %v1077_v8  ;;  %1095 = vst [vmem:[#allocation3 + $0x18] sm:$0xff] (!%p3529_p12), %v1079_v9  ;;  %v5943_v25 = vld [vmem:[%s5835_s15 + $0x68] sm:$0xff] (!%p3529_p12)  ;;  %834 = vadd.xlane.f32.xlu0 (!%p3529_p12), %v5901_v5  ;;  %838 = vadd.xlane.f32.xlu1 (!%p3529_p12), %v5904_v6  ;;  %v1087_v26 = vadd.f32 (!%p3529_p12), %v3532_v1, %v5937_v23  ;;  %v1088_v27 = vadd.f32 (!%p3529_p12), %v3532_v1, %v5940_v24  ;;  %v5951_v29 = vld [vmem:[%s5835_s15 + $0x70] sm:$0xff] (!%p3529_p12) }
 0x219   : > { %1096 = vst [vmem:[#allocation3 + $0x20] sm:$0xff] (!%p3529_p12), %v1080_v10  ;;  %1097 = vst [vmem:[#allocation3 + $0x28] sm:$0xff] (!%p3529_p12), %v1081_v14  ;;  %v1089_v28 = vadd.f32 (!%p3529_p12), %v3532_v1, %v5943_v25  ;;  %v5954_v30 = vld [vmem:[%s5835_s15 + $0x78] sm:$0xff] (!%p3529_p12)  ;;  %v1090_v31 = vadd.f32 (!%p3529_p12), %v3532_v1, %v5951_v29 }
 0x21a   : > { %1098 = vst [vmem:[#allocation3 + $0x30] sm:$0xff] (!%p3529_p12), %v1082_v15  ;;  %1099 = vst [vmem:[#allocation3 + $0x38] sm:$0xff] (!%p3529_p12), %v1083_v16  ;;  %v1091_v32 = vadd.f32 (!%p3529_p12), %v3532_v1, %v5954_v30 }
 0x21b   : > { %1100 = vst [vmem:[#allocation3 + $0x40] sm:$0xff] %v1084_v20  ;;  %1101 = vst [vmem:[#allocation3 + $0x48] sm:$0xff] %v1085_v21 }
 0x21c   : > { %1102 = vst [vmem:[#allocation3 + $0x50] sm:$0xff] %v1086_v22  ;;  %1103 = vst [vmem:[#allocation3 + $0x58] sm:$0xff] %v1087_v26  ;;  %840 = vadd.xlane.f32.xlu0 %v5907_v7  ;;  %842 = vadd.xlane.f32.xlu1 %v5913_v11 }
 0x21d   : > { %1104 = vst [vmem:[#allocation3 + $0x60] sm:$0xff] %v1088_v27  ;;  %1105 = vst [vmem:[#allocation3 + $0x68] sm:$0xff] %v1089_v28 }
 0x21e   : > { %1106 = vst [vmem:[#allocation3 + $0x70] sm:$0xff] %v1090_v31  ;;  %1107 = vst [vmem:[#allocation3 + $0x78] sm:$0xff] %v1091_v32 }
 0x220   : > { %844 = vadd.xlane.f32.xlu0 %v5916_v12  ;;  %846 = vadd.xlane.f32.xlu1 %v5919_v13 }
 0x224   : > { %848 = vadd.xlane.f32.xlu0 %v5925_v17  ;;  %850 = vadd.xlane.f32.xlu1 %v5928_v18 }
 0x228   : > { %852 = vadd.xlane.f32.xlu0 %v5931_v19  ;;  %854 = vadd.xlane.f32.xlu1 %v5937_v23 }
 0x22c   : > { %856 = vadd.xlane.f32.xlu0 %v5940_v24  ;;  %858 = vadd.xlane.f32.xlu1 %v5943_v25 }
 0x230   : > { %860 = vadd.xlane.f32.xlu0 %v5951_v29  ;;  %862 = vadd.xlane.f32.xlu1 %v5954_v30 }
 0x2a1   : > { %v833_v33 = vpop.xlane.xlu0 %832  ;;  %v837_v34 = vpop.xlane.xlu1 %836 }
 0x2a2   : > { %v865_v35 = vmul.f32 0.0078125, %v833_v33  ;;  %v867_v36 = vmul.f32 0.0078125, %v837_v34 }
 0x2a4   : > { %v5971_v37 = vsub.f32 %v5891_v0, %v865_v35  ;;  %v5974_v38 = vsub.f32 %v5894_v2, %v867_v36 }
 0x2a5   : > { %v835_v39 = vpop.xlane.xlu0 %834  ;;  %v839_v40 = vpop.xlane.xlu1 %838 }
 0x2a6   : > { %v866_v41 = vmul.f32 0.0078125, %v835_v39  ;;  %v897_v42 = vmul.f32 %v5971_v37, %v5971_v37  ;;  %v868_v43 = vmul.f32 0.0078125, %v839_v40  ;;  %v899_v46 = vmul.f32 %v5974_v38, %v5974_v38 }
 0x2a8   : > { %v5979_v44 = vsub.f32 %v5901_v5, %v866_v41  ;;  %913 = vadd.xlane.f32.xlu0 %v897_v42  ;;  %v5982_v45 = vsub.f32 %v5904_v6, %v868_v43 }
 0x2a9   : > { %v841_v47 = vpop.xlane.xlu0 %840  ;;  %v843_v48 = vpop.xlane.xlu1 %842 }
 0x2aa   : > { %v869_v49 = vmul.f32 0.0078125, %v841_v47  ;;  %v898_v50 = vmul.f32 %v5979_v44, %v5979_v44  ;;  %v870_v51 = vmul.f32 0.0078125, %v843_v48  ;;  %v900_v54 = vmul.f32 %v5982_v45, %v5982_v45 }
 0x2ac   : > { %v5989_v52 = vsub.f32 %v5907_v7, %v869_v49  ;;  %917 = vadd.xlane.f32.xlu0 %v899_v46  ;;  %915 = vadd.xlane.f32.xlu1 %v898_v50  ;;  %v5992_v53 = vsub.f32 %v5913_v11, %v870_v51 }
 0x2ad   : > { %v845_v55 = vpop.xlane.xlu0 %844  ;;  %v847_v56 = vpop.xlane.xlu1 %846 }
 0x2ae   : > { %v871_v57 = vmul.f32 0.0078125, %v845_v55  ;;  %v901_v58 = vmul.f32 %v5989_v52, %v5989_v52  ;;  %v872_v59 = vmul.f32 0.0078125, %v847_v56  ;;  %v902_v62 = vmul.f32 %v5992_v53, %v5992_v53 }
 0x2b0   : > { %v5999_v60 = vsub.f32 %v5916_v12, %v871_v57  ;;  %919 = vadd.xlane.f32.xlu1 %v900_v54  ;;  %921 = vadd.xlane.f32.xlu0 %v901_v58  ;;  %v6002_v61 = vsub.f32 %v5919_v13, %v872_v59 }
 0x2b1   : > { %v849_v63 = vpop.xlane.xlu0 %848  ;;  %v851_v0 = vpop.xlane.xlu1 %850 }
 0x2b2   : > { %v873_v1 = vmul.f32 0.0078125, %v849_v63  ;;  %v903_v2 = vmul.f32 %v5999_v60, %v5999_v60  ;;  %v874_v3 = vmul.f32 0.0078125, %v851_v0  ;;  %v904_v6 = vmul.f32 %v6002_v61, %v6002_v61 }
 0x2b4   : > { %v6009_v4 = vsub.f32 %v5925_v17, %v873_v1  ;;  %923 = vadd.xlane.f32.xlu1 %v902_v62  ;;  %925 = vadd.xlane.f32.xlu0 %v903_v2  ;;  %v6012_v5 = vsub.f32 %v5928_v18, %v874_v3  ;;  %v6051_v2 = vld [vmem:[#allocation15] ss:$0 sm:$0xff] }
 0x2b5   : > { %v853_v7 = vpop.xlane.xlu0 %852  ;;  %v855_v8 = vpop.xlane.xlu1 %854 }
 0x2b6   : > { %v875_v9 = vmul.f32 0.0078125, %v853_v7  ;;  %v905_v10 = vmul.f32 %v6009_v4, %v6009_v4  ;;  %v876_v11 = vmul.f32 0.0078125, %v855_v8  ;;  %v906_v14 = vmul.f32 %v6012_v5, %v6012_v5 }
 0x2b8   : > { %v6019_v12 = vsub.f32 %v5931_v19, %v875_v9  ;;  %927 = vadd.xlane.f32.xlu1 %v904_v6  ;;  %929 = vadd.xlane.f32.xlu0 %v905_v10  ;;  %v6022_v13 = vsub.f32 %v5937_v23, %v876_v11 }
 0x2b9   : > { %v857_v15 = vpop.xlane.xlu0 %856  ;;  %v859_v16 = vpop.xlane.xlu1 %858 }
 0x2ba   : > { %v877_v17 = vmul.f32 0.0078125, %v857_v15  ;;  %v907_v18 = vmul.f32 %v6019_v12, %v6019_v12  ;;  %v878_v20 = vmul.f32 0.0078125, %v859_v16  ;;  %v908_v22 = vmul.f32 %v6022_v13, %v6022_v13 }
 0x2bc   : > { %v6029_v21 = vsub.f32 %v5940_v24, %v877_v17  ;;  %931 = vadd.xlane.f32.xlu1 %v906_v14  ;;  %933 = vadd.xlane.f32.xlu0 %v907_v18  ;;  %v6032_v19 = vsub.f32 %v5943_v25, %v878_v20  ;;  %v6055_v17 = vld [vmem:[#allocation16] ss:$0 sm:$0xff] }
 0x2bd   : > { %v861_v23 = vpop.xlane.xlu0 %860  ;;  %v863_v26 = vpop.xlane.xlu1 %862 }
 0x2be   : > { %v879_v27 = vmul.f32 0.0078125, %v861_v23  ;;  %v909_v28 = vmul.f32 %v6029_v21, %v6029_v21  ;;  %v880_v31 = vmul.f32 0.0078125, %v863_v26  ;;  %v910_v25 = vmul.f32 %v6032_v19, %v6032_v19 }
 0x2c0   : > { %v6039_v32 = vsub.f32 %v5951_v29, %v879_v27  ;;  %935 = vadd.xlane.f32.xlu1 %v908_v22  ;;  %937 = vadd.xlane.f32.xlu0 %v909_v28  ;;  %v6042_v24 = vsub.f32 %v5954_v30, %v880_v31 }
 0x2c2   : > { %v911_v33 = vmul.f32 %v6039_v32, %v6039_v32  ;;  %v912_v34 = vmul.f32 %v6042_v24, %v6042_v24 }
 0x2c4   : > { %939 = vadd.xlane.f32.xlu1 %v910_v25  ;;  %941 = vadd.xlane.f32.xlu0 %v911_v33 }
 0x2c8   : > { %943 = vadd.xlane.f32.xlu1 %v912_v34 }
 0x335   : > { %v914_v35 = vpop.xlane.xlu0 %913 }
 0x336   : > { %v945_v29 = vmul.f32 0.0078125, %v914_v35 }
 0x338   : > { %v961_v36 = vadd.f32 1e-06, %v945_v29 }
 0x339   : > { %v916_v39 = vpop.xlane.xlu1 %915  ;;  %v918_v40 = vpop.xlane.xlu0 %917 }
 0x33a   : > { %4233 = vrsqrt.f32 %v961_v36  ;;  %v946_v30 = vmul.f32 0.0078125, %v916_v39  ;;  %v947_v41 = vmul.f32 0.0078125, %v918_v40 }
 0x33c   : > { %v962_v42 = vadd.f32 1e-06, %v946_v30  ;;  %v963_v43 = vadd.f32 1e-06, %v947_v41 }
 0x33d   : > { %v920_v46 = vpop.xlane.xlu1 %919  ;;  %v922_v47 = vpop.xlane.xlu0 %921 }
 0x33e   : > { %4235 = vrsqrt.f32 %v962_v42  ;;  %v948_v48 = vmul.f32 0.0078125, %v920_v46  ;;  %v949_v49 = vmul.f32 0.0078125, %v922_v47 }
 0x33f   : > { %4237 = vrsqrt.f32 %v963_v43 }
 0x340   : > { %v964_v50 = vadd.f32 1e-06, %v948_v48  ;;  %v965_v51 = vadd.f32 1e-06, %v949_v49 }
 0x341   : > { %v924_v54 = vpop.xlane.xlu1 %923  ;;  %v926_v55 = vpop.xlane.xlu0 %925 }
 0x342   : > { %4239 = vrsqrt.f32 %v964_v50  ;;  %v950_v56 = vmul.f32 0.0078125, %v924_v54  ;;  %v951_v57 = vmul.f32 0.0078125, %v926_v55 }
 0x343   : > { %4241 = vrsqrt.f32 %v965_v51 }
 0x344   : > { %v4234_v58 = vpop.eup %4233  ;;  %v966_v59 = vadd.f32 1e-06, %v950_v56  ;;  %v967_v62 = vadd.f32 1e-06, %v951_v57 }
 0x345   : > { %v993_v63 = vmul.f32 %v4234_v58, %v5971_v37  ;;  %v928_v0 = vpop.xlane.xlu1 %927  ;;  %v930_v1 = vpop.xlane.xlu0 %929 }
 0x346   : > { %4243 = vrsqrt.f32 %v966_v59  ;;  %v952_v3 = vmul.f32 0.0078125, %v928_v0  ;;  %v953_v6 = vmul.f32 0.0078125, %v930_v1 }
 0x347   : > { %4245 = vrsqrt.f32 %v967_v62  ;;  %v1015_v11 = vmul.f32 %v6051_v2, %v993_v63 }
 0x348   : > { %v4236_v7 = vpop.eup %4235  ;;  %v968_v8 = vadd.f32 1e-06, %v952_v3  ;;  %v969_v9 = vadd.f32 1e-06, %v953_v6 }
 0x349   : > { %v4238_v10 = vpop.eup %4237  ;;  %v994_v14 = vmul.f32 %v4236_v7, %v5979_v44  ;;  %v932_v15 = vpop.xlane.xlu1 %931  ;;  %v1037_v31 = vadd.f32 %v6055_v17, %v1015_v11 }
 0x34a   : > { %v934_v16 = vpop.xlane.xlu0 %933  ;;  %v995_v37 = vmul.f32 %v4238_v10, %v5974_v38  ;;  %4247 = vrsqrt.f32 %v968_v8  ;;  %v954_v18 = vmul.f32 0.0078125, %v932_v15 }
 0x34b   : > { %v955_v20 = vmul.f32 0.0078125, %v934_v16  ;;  %v1016_v22 = vmul.f32 %v6051_v2, %v994_v14  ;;  %4249 = vrsqrt.f32 %v969_v9 }
 0x34c   : > { %v4240_v23 = vpop.eup %4239  ;;  %v970_v26 = vadd.f32 1e-06, %v954_v18  ;;  %v1017_v25 = vmul.f32 %v6051_v2, %v995_v37 }
 0x34d   : > { %v971_v27 = vadd.f32 1e-06, %v955_v20  ;;  %v4242_v28 = vpop.eup %4241  ;;  %v1038_v44 = vadd.f32 %v6055_v17, %v1016_v22  ;;  %v996_v33 = vmul.f32 %v4240_v23, %v5982_v45  ;;  %v936_v34 = vpop.xlane.xlu1 %935 }
 0x34e   : > { %v938_v38 = vpop.xlane.xlu0 %937  ;;  %v997_v35 = vmul.f32 %v4242_v28, %v5989_v52  ;;  %4251 = vrsqrt.f32 %v970_v26  ;;  %v956_v29 = vmul.f32 0.0078125, %v936_v34  ;;  %v1039_v46 = vadd.f32 %v6055_v17, %v1017_v25 }
 0x34f   : > { %v1053_v36 = vpack.c.bf16 %v1038_v44, %v1037_v31  ;;  %v1018_v39 = vmul.f32 %v6051_v2, %v996_v33  ;;  %4253 = vrsqrt.f32 %v971_v27  ;;  %v957_v40 = vmul.f32 0.0078125, %v938_v38 }
 0x350   : > { %v4244_v30 = vpop.eup %4243  ;;  %v1019_v41 = vmul.f32 %v6051_v2, %v997_v35  ;;  %v972_v42 = vadd.f32 1e-06, %v956_v29 }
 0x351   : > { %v4246_v43 = vpop.eup %4245  ;;  %1061 = vst [vmem:[#allocation2] sm:$0xff] %v1053_v36  ;;  %v1040_v45 = vadd.f32 %v6055_v17, %v1018_v39  ;;  %v998_v47 = vmul.f32 %v4244_v30, %v5992_v53  ;;  %v973_v52 = vadd.f32 1e-06, %v957_v40  ;;  %v940_v48 = vpop.xlane.xlu1 %939 }
 0x352   : > { %v942_v49 = vpop.xlane.xlu0 %941  ;;  %v999_v50 = vmul.f32 %v4246_v43, %v5999_v60  ;;  %4255 = vrsqrt.f32 %v972_v42  ;;  %v958_v51 = vmul.f32 0.0078125, %v940_v48  ;;  %v1041_v58 = vadd.f32 %v6055_v17, %v1019_v41 }
 0x353   : > { %v1054_v54 = vpack.c.bf16 %v1040_v45, %v1039_v46  ;;  %v1020_v55 = vmul.f32 %v6051_v2, %v998_v47  ;;  %4257 = vrsqrt.f32 %v973_v52  ;;  %v959_v56 = vmul.f32 0.0078125, %v942_v49 }
 0x354   : > { %v4248_v57 = vpop.eup %4247  ;;  %v974_v59 = vadd.f32 1e-06, %v958_v51  ;;  %v1021_v63 = vmul.f32 %v6051_v2, %v999_v50 }
 0x355   : > { %v4250_v62 = vpop.eup %4249  ;;  %1062 = vst [vmem:[#allocation2 + $0x8] sm:$0xff] %v1054_v54  ;;  %v1042_v53 = vadd.f32 %v6055_v17, %v1020_v55  ;;  %v1000_v0 = vmul.f32 %v4248_v57, %v6002_v61  ;;  %v975_v60 = vadd.f32 1e-06, %v959_v56  ;;  %v944_v1 = vpop.xlane.xlu1 %943 }
 0x356   : > { %v1001_v3 = vmul.f32 %v4250_v62, %v6009_v4  ;;  %4259 = vrsqrt.f32 %v974_v59  ;;  %v960_v6 = vmul.f32 0.0078125, %v944_v1  ;;  %v1043_v14 = vadd.f32 %v6055_v17, %v1021_v63 }
 0x357   : > { %v1055_v7 = vpack.c.bf16 %v1042_v53, %v1041_v58  ;;  %v1022_v8 = vmul.f32 %v6051_v2, %v1000_v0  ;;  %4261 = vrsqrt.f32 %v975_v60 }
 0x358   : > { %v4252_v9 = vpop.eup %4251  ;;  %v976_v10 = vadd.f32 1e-06, %v960_v6  ;;  %v1023_v61 = vmul.f32 %v6051_v2, %v1001_v3 }
 0x359   : > { %v4254_v11 = vpop.eup %4253  ;;  %1063 = vst [vmem:[#allocation2 + $0x10] sm:$0xff] %v1055_v7  ;;  %v1044_v15 = vadd.f32 %v6055_v17, %v1022_v8  ;;  %v1002_v16 = vmul.f32 %v4252_v9, %v6012_v5 }
 0x35a   : > { %v1003_v4 = vmul.f32 %v4254_v11, %v6019_v12  ;;  %4263 = vrsqrt.f32 %v976_v10  ;;  %v1045_v23 = vadd.f32 %v6055_v17, %v1023_v61 }
 0x35b   : > { %v1056_v37 = vpack.c.bf16 %v1044_v15, %v1043_v14  ;;  %v1024_v18 = vmul.f32 %v6051_v2, %v1002_v16 }
 0x35c   : > { %v4256_v20 = vpop.eup %4255  ;;  %v1025_v27 = vmul.f32 %v6051_v2, %v1003_v4 }
 0x35d   : > { %v4258_v22 = vpop.eup %4257  ;;  %1064 = vst [vmem:[#allocation2 + $0x18] sm:$0xff] %v1056_v37  ;;  %v1046_v26 = vadd.f32 %v6055_v17, %v1024_v18  ;;  %v1004_v28 = vmul.f32 %v4256_v20, %v6022_v13 }
 0x35e   : > { %v1005_v31 = vmul.f32 %v4258_v22, %v6029_v21  ;;  %v1047_v33 = vadd.f32 %v6055_v17, %v1025_v27 }
 0x35f   : > { %v1057_v5 = vpack.c.bf16 %v1046_v26, %v1045_v23  ;;  %v1026_v12 = vmul.f32 %v6051_v2, %v1004_v28 }
 0x360   : > { %v4260_v44 = vpop.eup %4259  ;;  %v1027_v38 = vmul.f32 %v6051_v2, %v1005_v31 }
 0x361   : > { %v4262_v25 = vpop.eup %4261  ;;  %1065 = vst [vmem:[#allocation2 + $0x20] sm:$0xff] %v1057_v5  ;;  %v1048_v34 = vadd.f32 %v6055_v17, %v1026_v12  ;;  %v1006_v35 = vmul.f32 %v4260_v44, %v6032_v19 }
 0x362   : > { %v1007_v29 = vmul.f32 %v4262_v25, %v6039_v32  ;;  %v1049_v39 = vadd.f32 %v6055_v17, %v1027_v38 }
 0x363   : > { %v1058_v36 = vpack.c.bf16 %v1048_v34, %v1047_v33  ;;  %v1028_v13 = vmul.f32 %v6051_v2, %v1006_v35 }
 0x364   : > { %v4264_v21 = vpop.eup %4263  ;;  %v1029_v30 = vmul.f32 %v6051_v2, %v1007_v29 }
 0x365   : > { %1066 = vst [vmem:[#allocation2 + $0x28] sm:$0xff] %v1058_v36  ;;  %v1050_v40 = vadd.f32 %v6055_v17, %v1028_v13  ;;  %v1008_v41 = vmul.f32 %v4264_v21, %v6042_v24 }
 0x366   : > { %v1051_v19 = vadd.f32 %v6055_v17, %v1029_v30 }
 0x367   : > { %v1059_v42 = vpack.c.bf16 %v1050_v40, %v1049_v39  ;;  %v1030_v43 = vmul.f32 %v6051_v2, %v1008_v41 }
 0x369   : > { %1067 = vst [vmem:[#allocation2 + $0x30] sm:$0xff] %v1059_v42  ;;  %v1052_v32 = vadd.f32 %v6055_v17, %v1030_v43 }
 0x36b   : > { %v1060_v46 = vpack.c.bf16 %v1052_v32, %v1051_v19 }
 0x36d   : > { %1068 = vst [vmem:[#allocation2 + $0x38] sm:$0xff] %v1060_v46 }
 0x36e PF: > { %v4265_v45 = vld [vmem:[%s5849_s5] sm:$0xff]   ;;  %v4266_v24 = vld [vmem:[%s5849_s5 + $0x8] sm:$0xff]   ;;  %v4267_v2 = vld [vmem:[%s5849_s5 + $0x10] sm:$0xff]   ;;  %vm1615_vm0 = vcmask 261120   ;;  %s6910_s17 = sld [smem:[#allocation47_spill]] }
 0x36f   : > { %3812 = vmatprep.subr.bf16.mxu1 %v4265_v45  ;;  %v4268_v17 = vld [vmem:[%s5849_s5 + $0x18] sm:$0xff]   ;;  %v1108_v47 = vld [vmem:[#allocation2] sm:$0xff]  ;;  %v4274_v48 = vld [vmem:[%s5843_s4 + $0x8] sm:$0xff]  }
 0x370   : > { %3813 = vmatpush3.bf16.msra.mxu1 %v4265_v45  ;;  %3828 = vmatprep.mubr.bf16.mxu1 %v1108_v47  ;;  %v4273_v52 = vld [vmem:[%s5843_s4] sm:$0xff]   ;;  %v4275_v50 = vld [vmem:[%s5843_s4 + $0x10] sm:$0xff]   ;;  %v4270_v51 = vld [vmem:[%s5849_s5 + $0x28] sm:$0xff]  }
 0x371   : > { %3814 = vmatprep.subr.bf16.mxu1 %v4266_v24  ;;  %3796 = vmatprep.mubr.bf16.mxu0 %v1108_v47  ;;  %v4269_v49 = vld [vmem:[%s5849_s5 + $0x20] sm:$0xff]   ;;  %v4271_v54 = vld [vmem:[%s5849_s5 + $0x30] sm:$0xff]   ;;  %v4276_v55 = vld [vmem:[%s5843_s4 + $0x18] sm:$0xff]  }
 0x372   : > { %3780 = vmatprep.subr.bf16.mxu0 %v4273_v52  ;;  %v4277_v56 = vld [vmem:[%s5843_s4 + $0x20] sm:$0xff]   ;;  %v4272_v57 = vld [vmem:[%s5849_s5 + $0x38] sm:$0xff]   ;;  %v4278_v58 = vld [vmem:[%s5843_s4 + $0x28] sm:$0xff]  }
 0x373   : > { %3781 = vmatpush3.bf16.msra.mxu0 %v4273_v52  ;;  %v4279_v59 = vld [vmem:[%s5843_s4 + $0x30] sm:$0xff]   ;;  %v6117_v62 = vld [vmem:[#allocation2 + $0x8] sm:$0xff]  ;;  %v4280_v63 = vld [vmem:[%s5843_s4 + $0x38] sm:$0xff]  }
 0x374   : > { %3815 = vmatpush3.bf16.msra.mxu1 %v4266_v24  ;;  %3782 = vmatprep.subr.bf16.mxu0 %v4274_v48  ;;  %v6119_v53 = vld [vmem:[#allocation2 + $0x10] sm:$0xff]  ;;  %v6124_v0 = vld [vmem:[#allocation2 + $0x18] sm:$0xff]  ;;  %v6126_v60 = vld [vmem:[#allocation2 + $0x20] sm:$0xff]  ;;  %p3575_p11 = scmp.ne.s32.totalorder %s6910_s17, 3 }
 0x375   : > { %3816 = vmatprep.subr.bf16.mxu1 %v4267_v2  ;;  %v6132_v1 = vld [vmem:[#allocation2 + $0x28] sm:$0xff]  ;;  %v6134_v3 = vld [vmem:[#allocation2 + $0x30] sm:$0xff]  ;;  %v6140_v6 = vld [vmem:[#allocation2 + $0x38] sm:$0xff] }
 0x377   : > { %3783 = vmatpush3.bf16.msra.mxu0 %v4274_v48 }
 0x378   : > { %3817 = vmatpush3.bf16.msra.mxu1 %v4267_v2  ;;  %3784 = vmatprep.subr.bf16.mxu0 %v4275_v50 }
 0x379   : > { %3818 = vmatprep.subr.bf16.mxu1 %v4268_v17 }
 0x37b   : > { %3785 = vmatpush3.bf16.msra.mxu0 %v4275_v50 }
 0x37c   : > { %3819 = vmatpush3.bf16.msra.mxu1 %v4268_v17  ;;  %3786 = vmatprep.subr.bf16.mxu0 %v4276_v55 }
 0x37d   : > { %3820 = vmatprep.subr.bf16.mxu1 %v4269_v49 }
 0x37f   : > { %3787 = vmatpush3.bf16.msra.mxu0 %v4276_v55 }
 0x380   : > { %3821 = vmatpush3.bf16.msra.mxu1 %v4269_v49  ;;  %3788 = vmatprep.subr.bf16.mxu0 %v4277_v56 }
 0x381   : > { %3822 = vmatprep.subr.bf16.mxu1 %v4270_v51 }
 0x383   : > { %3789 = vmatpush3.bf16.msra.mxu0 %v4277_v56 }
 0x384   : > { %3823 = vmatpush3.bf16.msra.mxu1 %v4270_v51  ;;  %3790 = vmatprep.subr.bf16.mxu0 %v4278_v58 }
 0x385   : > { %3824 = vmatprep.subr.bf16.mxu1 %v4271_v54 }
 0x387   : > { %3791 = vmatpush3.bf16.msra.mxu0 %v4278_v58 }
 0x388   : > { %3825 = vmatpush3.bf16.msra.mxu1 %v4271_v54  ;;  %3792 = vmatprep.subr.bf16.mxu0 %v4279_v59 }
 0x389   : > { %3826 = vmatprep.subr.bf16.mxu1 %v4272_v57 }
 0x38b   : > { %3793 = vmatpush3.bf16.msra.mxu0 %v4279_v59 }
 0x38c   : > { %3827 = vmatpush3.bf16.msra.mxu1 %v4272_v57  ;;  %3794 = vmatprep.subr.bf16.mxu0 %v4280_v63 }
 0x38f   : > { %3829 = vmatmul.mubr.bf16.vlgmr.msra.gmra.mrb[0].mxu1 %v6117_v62  ;;  %3795 = vmatpush3.bf16.msra.mxu0 %v4280_v63  ;;  %v4281_v63 = vld [vmem:[%s5851_s19] sm:$0xff]  }
 0x390   : > { %3832 = vmatprep.mubr.bf16.mxu1 %v6119_v53  ;;  %3844 = vmatprep.subr.bf16.mxu0 %v4281_v63 }
 0x392   : > { %3797 = vmatmul.mubr.bf16.vlgmr.msra.gmra.mrb[0].mxu0 %v6117_v62 }
 0x393   : > { %3800 = vmatprep.mubr.bf16.mxu0 %v6119_v53  ;;  %3845 = vmatpush3.bf16.msra.mxu0 %v4281_v63 }
 0x397   : > { %3833 = vmatmul.mubr.bf16.gmra.mrb[4].mxu1 %v6124_v0 }
 0x398   : > { %3836 = vmatprep.mubr.bf16.mxu1 %v6126_v60 }
 0x39a   : > { %3801 = vmatmul.mubr.bf16.gmra.mrb[4].mxu0 %v6124_v0 }
 0x39b   : > { %3804 = vmatprep.mubr.bf16.mxu0 %v6126_v60 }
 0x39f   : > { %3837 = vmatmul.mubr.bf16.gmra.mrb[8].mxu1 %v6132_v1 }
 0x3a0   : > { %3840 = vmatprep.mubr.bf16.mxu1 %v6134_v3 }
 0x3a2   : > { %3805 = vmatmul.mubr.bf16.gmra.mrb[8].mxu0 %v6132_v1 }
 0x3a3   : > { %3808 = vmatprep.mubr.bf16.mxu0 %v6134_v3 }
 0x3a7   : > { %3841 = vmatmul.mubr.bf16.gmra.mrb[12].mxu1 %v6140_v6 }
 0x3aa   : > { %3809 = vmatmul.mubr.bf16.gmra.mrb[12].mxu0 %v6140_v6 }
 0x3ab   : > { %3860 = vmatprep.mubr.bf16.mxu0 %v1108_v47 }
 0x462   : > { %v3830_v7 = vpop.f32.mrb[0].mxu1 }
 0x463   : > { %v1375_v8 = vpop.f32.mrb[1].mxu1 }
 0x464   : > { %v3831_v9 = vpop.f32.mrb[2].mxu1 }
 0x465   : > { %v1608_v10 = vpack.c.bf16 %v3831_v9, %v3830_v7  ;;  %v1378_v11 = vpop.f32.mrb[3].mxu1  ;;  %v3798_v37 = vpop.f32.mrb[0].mxu0  ;;  %v4282_v7 = vld [vmem:[%s5851_s19 + $0x8] sm:$0xff]   ;;  %v4284_v9 = vld [vmem:[%s5851_s19 + $0x18] sm:$0xff]  }
 0x466   : > { %v1607_v14 = vpack.c.bf16 %v1378_v11, %v1375_v8  ;;  %v1214_v22 = vpop.f32.mrb[1].mxu0  ;;  %3846 = vmatprep.subr.bf16.mxu0 %v4282_v7  ;;  %v4283_v8 = vld [vmem:[%s5851_s19 + $0x10] sm:$0xff]   ;;  %v4286_v11 = vld [vmem:[%s5851_s19 + $0x28] sm:$0xff]  }
 0x467   : > { %v3799_v26 = vpop.f32.mrb[2].mxu0  ;;  %v1644_v31 = vsel %vm1615_vm0, %v1608_v10, 0  ;;  %3847 = vmatpush3.bf16.msra.mxu0 %v4282_v7 }
 0x468   : > { %v1641_v15 = vsel %vm1615_vm0, %v1607_v14, 0  ;;  %3976 = vmatprep.subr.msk.bf16.mxu1 %vm1615_vm0, %v1607_v14  ;;  %v1600_v27 = vpack.c.bf16 %v3799_v26, %v3798_v37  ;;  %v1217_v28 = vpop.f32.mrb[3].mxu0  ;;  %3848 = vmatprep.subr.bf16.mxu0 %v4283_v8  ;;  %v4287_v14 = vld [vmem:[%s5851_s19 + $0x30] sm:$0xff]  }
 0x469   : > { %3877 = vmatpush3.bf16.xpose.msra.mxu1 %v1641_v15  ;;  %v1599_v5 = vpack.c.bf16 %v1217_v28, %v1214_v22  ;;  %v4288_v15 = vld [vmem:[%s5851_s19 + $0x38] sm:$0xff]  }
 0x46a   : > { %3977 = vmatprep.subr.msk.bf16.mxu1 %vm1615_vm0, %v1608_v10  ;;  %v3834_v61 = vpop.f32.mrb[4].mxu1  ;;  %v4285_v10 = vld [vmem:[%s5851_s19 + $0x20] sm:$0xff]  }
 0x46b   : > { %v1391_v16 = vpop.f32.mrb[5].mxu1  ;;  %3892 = vmatprep.mubr.msk.bf16.mxu1 %vm1615_vm0, %v1599_v5  ;;  %3849 = vmatpush3.bf16.msra.mxu0 %v4283_v8 }
 0x46c   : > { %v3835_v4 = vpop.f32.mrb[6].mxu1  ;;  %3850 = vmatprep.subr.bf16.mxu0 %v4284_v9 }
 0x46d   : > { %v1610_v18 = vpack.c.bf16 %v3835_v4, %v3834_v61  ;;  %v1394_v20 = vpop.f32.mrb[7].mxu1  ;;  %v3802_v33 = vpop.f32.mrb[4].mxu0 }
 0x46e   : > { %v1609_v23 = vpack.c.bf16 %v1394_v20, %v1391_v16  ;;  %v1230_v35 = vpop.f32.mrb[5].mxu0 }
 0x46f   : > { %v3803_v36 = vpop.f32.mrb[6].mxu0  ;;  %v1650_v47 = vsel %vm1615_vm0, %v1610_v18, 0  ;;  %3851 = vmatpush3.bf16.msra.mxu0 %v4284_v9 }
 0x470   : > { %v1602_v13 = vpack.c.bf16 %v3803_v36, %v3802_v33  ;;  %v1233_v21 = vpop.f32.mrb[7].mxu0  ;;  %v1647_v39 = vsel %vm1615_vm0, %v1609_v23, 0  ;;  %3852 = vmatprep.subr.bf16.mxu0 %v4285_v10 }
 0x471   : > { %3879 = vmatpush3.bf16.xpose.msra.mxu1 %v1644_v31  ;;  %v1601_v40 = vpack.c.bf16 %v1233_v21, %v1230_v35 }
 0x472   : > { %3978 = vmatprep.subr.msk.bf16.mxu1 %vm1615_vm0, %v1609_v23  ;;  %v3838_v12 = vpop.f32.mrb[8].mxu1 }
 0x473   : > { %v1407_v44 = vpop.f32.mrb[9].mxu1  ;;  %3853 = vmatpush3.bf16.msra.mxu0 %v4285_v10 }
 0x474   : > { %v3839_v25 = vpop.f32.mrb[10].mxu1  ;;  %3854 = vmatprep.subr.bf16.mxu0 %v4286_v11 }
 0x475   : > { %v1612_v34 = vpack.c.bf16 %v3839_v25, %v3838_v12  ;;  %v1410_v38 = vpop.f32.mrb[11].mxu1  ;;  %v3806_v43 = vpop.f32.mrb[8].mxu0 }
 0x476   : > { %v1611_v29 = vpack.c.bf16 %v1410_v38, %v1407_v44  ;;  %v1246_v46 = vpop.f32.mrb[9].mxu0 }
 0x477   : > { %v3807_v24 = vpop.f32.mrb[10].mxu0  ;;  %v1656_v57 = vsel %vm1615_vm0, %v1612_v34, 0  ;;  %3855 = vmatpush3.bf16.msra.mxu0 %v4286_v11 }
 0x478   : > { %v1604_v2 = vpack.c.bf16 %v3807_v24, %v3806_v43  ;;  %v1249_v17 = vpop.f32.mrb[11].mxu0  ;;  %v1653_v55 = vsel %vm1615_vm0, %v1611_v29, 0  ;;  %3856 = vmatprep.subr.bf16.mxu0 %v4287_v14 }
 0x479   : > { %3881 = vmatpush3.bf16.xpose.msra.mxu1 %v1647_v39  ;;  %v1603_v52 = vpack.c.bf16 %v1249_v17, %v1246_v46 }
 0x47a   : > { %3979 = vmatprep.subr.msk.bf16.mxu1 %vm1615_vm0, %v1610_v18  ;;  %v3842_v30 = vpop.f32.mrb[12].mxu1 }
 0x47b   : > { %v1423_v41 = vpop.f32.mrb[13].mxu1  ;;  %3857 = vmatpush3.bf16.msra.mxu0 %v4287_v14 }
 0x47c   : > { %v3843_v42 = vpop.f32.mrb[14].mxu1  ;;  %3858 = vmatprep.subr.bf16.mxu0 %v4288_v15 }
 0x47d   : > { %v1614_v19 = vpack.c.bf16 %v3843_v42, %v3842_v30  ;;  %v1426_v32 = vpop.f32.mrb[15].mxu1  ;;  %v3810_v48 = vpop.f32.mrb[12].mxu0 }
 0x47e   : > { %v1613_v45 = vpack.c.bf16 %v1426_v32, %v1423_v41  ;;  %v1262_v49 = vpop.f32.mrb[13].mxu0 }
 0x47f   : > { %v3811_v50 = vpop.f32.mrb[14].mxu0  ;;  %v1662_v59 = vsel %vm1615_vm0, %v1614_v19, 0  ;;  %3859 = vmatpush3.bf16.msra.mxu0 %v4288_v15 }
 0x480   : > { %v1606_v51 = vpack.c.bf16 %v3811_v50, %v3810_v48  ;;  %v1265_v54 = vpop.f32.mrb[15].mxu0  ;;  %v1659_v58 = vsel %vm1615_vm0, %v1613_v45, 0 }
 0x481   : > { %3883 = vmatpush3.bf16.xpose.msra.mxu1 %v1650_v47  ;;  %v1605_v56 = vpack.c.bf16 %v1265_v54, %v1262_v49 }
 0x482   : > { %3980 = vmatprep.subr.msk.bf16.mxu1 %vm1615_vm0, %v1611_v29  ;;  %3861 = vmatmul.mubr.bf16.vlgmr.msra.gmra.mrb[16].mxu0 %v6117_v62 }
 0x483   : > { %3864 = vmatprep.mubr.bf16.mxu0 %v6119_v53 }
 0x489   : > { %3885 = vmatpush3.bf16.xpose.msra.mxu1 %v1653_v55 }
 0x48a   : > { %3981 = vmatprep.subr.msk.bf16.mxu1 %vm1615_vm0, %v1612_v34  ;;  %3865 = vmatmul.mubr.bf16.gmra.mrb[20].mxu0 %v6124_v0 }
 0x48b   : > { %3868 = vmatprep.mubr.bf16.mxu0 %v6126_v60 }
 0x491   : > { %3887 = vmatpush3.bf16.xpose.msra.mxu1 %v1656_v57 }
 0x492   : > { %3982 = vmatprep.subr.msk.bf16.mxu1 %vm1615_vm0, %v1613_v45  ;;  %3869 = vmatmul.mubr.bf16.gmra.mrb[24].mxu0 %v6132_v1 }
 0x493   : > { %3872 = vmatprep.mubr.bf16.mxu0 %v6134_v3 }
 0x499   : > { %3889 = vmatpush3.bf16.xpose.msra.mxu1 %v1659_v58 }
 0x49a   : > { %3983 = vmatprep.subr.msk.bf16.mxu1 %vm1615_vm0, %v1614_v19  ;;  %3873 = vmatmul.mubr.bf16.gmra.mrb[28].mxu0 %v6140_v6 }
 0x4a1   : > { %3891 = vmatpush3.bf16.xpose.msra.mxu1 %v1662_v59 }
 0x4a8   : > { %3893 = vmatmul.mubr.msk.bf16.vlgmr.msra.gmra.mrb[16].mxu1 %vm1615_vm0, %v1600_v27 }
 0x4a9   : > { %3896 = vmatprep.mubr.msk.bf16.mxu1 %vm1615_vm0, %v1601_v40 }
 0x4b0   : > { %3897 = vmatmul.mubr.msk.bf16.gmra.mrb[20].mxu1 %vm1615_vm0, %v1602_v13 }
 0x4b1   : > { %3900 = vmatprep.mubr.msk.bf16.mxu1 %vm1615_vm0, %v1603_v52 }
 0x4b8   : > { %3901 = vmatmul.mubr.msk.bf16.gmra.mrb[24].mxu1 %vm1615_vm0, %v1604_v2 }
 0x4b9   : > { %3904 = vmatprep.mubr.msk.bf16.mxu1 %vm1615_vm0, %v1605_v56 }
 0x4c0   : > { %3905 = vmatmul.mubr.msk.bf16.gmra.mrb[28].mxu1 %vm1615_vm0, %v1606_v51 }
 0x555   : > { %v3862_v2 = vpop.f32.mrb[16].mxu0 }
 0x556   : > { %v1536_v47 = vpop.f32.mrb[17].mxu0 }
 0x557   : > { %v3863_v49 = vpop.f32.mrb[18].mxu0 }
 0x558   : > { %v1946_v51 = vpack.c.bf16 %v3863_v49, %v3862_v2  ;;  %v1539_v54 = vpop.f32.mrb[19].mxu0 }
 0x559   : > { %v1945_v56 = vpack.c.bf16 %v1539_v54, %v1536_v47 }
 0x55b   : > { %3908 = vmatprep.subr.bf16.mxu0 %v1945_v56  ;;  %3960 = vmatprep.subr.bf16.mxu1 %v1945_v56 }
 0x55c   : > { %3909 = vmatpush3.bf16.msra.mxu0 %v1945_v56  ;;  %3968 = vmatpush3.bf16.msra.mxu1 %v1945_v56 }
 0x55d   : > { %v3866_v9 = vpop.f32.mrb[20].mxu0  ;;  %3910 = vmatprep.subr.bf16.mxu0 %v1946_v51  ;;  %3961 = vmatprep.subr.bf16.mxu1 %v1946_v51 }
 0x55e   : > { %v1552_v15 = vpop.f32.mrb[21].mxu0 }
 0x560   : > { %3911 = vmatpush3.bf16.msra.mxu0 %v1946_v51  ;;  %3969 = vmatpush3.bf16.msra.mxu1 %v1946_v51 }
 0x57b   : > { %v3894_v61 = vpop.f32.mrb[16].mxu1 }
 0x57c   : > { %v1763_v16 = vmul.f32 0.17677669, %v3894_v61  ;;  %v1698_v4 = vpop.f32.mrb[17].mxu1 }
 0x57d   : > { %v1761_v37 = vmul.f32 0.17677669, %v1698_v4  ;;  %v3895_v18 = vpop.f32.mrb[18].mxu1 }
 0x57e   : > { %1781 = vmax.xlane.f32.xlu1 %v1763_v16  ;;  %v1701_v20 = vpop.f32.mrb[19].mxu1  ;;  %v1764_v62 = vmul.f32 0.17677669, %v3895_v18 }
 0x57f   : > { %1777 = vmax.xlane.f32.xlu0 %v1761_v37  ;;  %v1762_v53 = vmul.f32 0.17677669, %v1701_v20 }
 0x582   : > { %1783 = vmax.xlane.f32.xlu1 %v1764_v62 }
 0x583   : > { %1779 = vmax.xlane.f32.xlu0 %v1762_v53  ;;  %v3898_v0 = vpop.f32.mrb[20].mxu1 }
 0x584   : > { %v1714_v60 = vpop.f32.mrb[21].mxu1  ;;  %v6185_v6 = vmul.f32 0.17677669, %v3898_v0 }
 0x585   : > { %v1765_v22 = vmul.f32 0.17677669, %v1714_v60  ;;  %v3899_v1 = vpop.f32.mrb[22].mxu1 }
 0x586   : > { %v1717_v23 = vpop.f32.mrb[23].mxu1  ;;  %v6187_v26 = vmul.f32 0.17677669, %v3899_v1 }
 0x587   : > { %v1766_v3 = vmul.f32 0.17677669, %v1717_v23  ;;  %1785 = vmax.xlane.f32.xlu0 %v1765_v22 }
 0x589   : > { %1787 = vmax.xlane.f32.xlu1 %v1766_v3 }
 0x58b   : > { %1789 = vmax.xlane.f32.xlu0 %v6185_v6  ;;  %v3902_v27 = vpop.f32.mrb[24].mxu1 }
 0x58c   : > { %v1730_v28 = vpop.f32.mrb[25].mxu1  ;;  %v6196_v25 = vmul.f32 0.17677669, %v3902_v27 }
 0x58d   : > { %v6190_v31 = vmul.f32 0.17677669, %v1730_v28  ;;  %1791 = vmax.xlane.f32.xlu1 %v6187_v26  ;;  %v3903_v5 = vpop.f32.mrb[26].mxu1 }
 0x58e   : > { %v1733_v12 = vpop.f32.mrb[27].mxu1  ;;  %v6199_v33 = vmul.f32 0.17677669, %v3903_v5 }
 0x58f   : > { %v6193_v44 = vmul.f32 0.17677669, %v1733_v12  ;;  %1793 = vmax.xlane.f32.xlu0 %v6190_v31 }
 0x591   : > { %1795 = vmax.xlane.f32.xlu1 %v6193_v44 }
 0x593   : > { %1797 = vmax.xlane.f32.xlu0 %v6196_v25  ;;  %v3906_v34 = vpop.f32.mrb[28].mxu1 }
 0x594   : > { %v1746_v38 = vpop.f32.mrb[29].mxu1  ;;  %v6208_v21 = vmul.f32 0.17677669, %v3906_v34 }
 0x595   : > { %v6202_v35 = vmul.f32 0.17677669, %v1746_v38  ;;  %1799 = vmax.xlane.f32.xlu1 %v6199_v33  ;;  %v3907_v29 = vpop.f32.mrb[30].mxu1 }
 0x596   : > { %v1749_v36 = vpop.f32.mrb[31].mxu1  ;;  %v6211_v39 = vmul.f32 0.17677669, %v3907_v29 }
 0x597   : > { %v6205_v13 = vmul.f32 0.17677669, %v1749_v36  ;;  %1801 = vmax.xlane.f32.xlu0 %v6202_v35 }
 0x599   : > { %1803 = vmax.xlane.f32.xlu1 %v6205_v13 }
 0x59b   : > { %1805 = vmax.xlane.f32.xlu0 %v6208_v21 }
 0x59d   : > { %1807 = vmax.xlane.f32.xlu1 %v6211_v39 }
 0x60b   : > { %v1782_v40 = vpop.xlane.xlu1 %1781 }
 0x60c   : > { %v1811_v30 = vsub.f32 %v1763_v16, %v1782_v40  ;;  %v1778_v41 = vpop.xlane.xlu0 %1777  ;;  %v3867_v16 = vpop.f32.mrb[22].mxu0 }
 0x60d   : > { %v1809_v42 = vsub.f32 %v1761_v37, %v1778_v41  ;;  %v1948_v18 = vpack.c.bf16 %v3867_v16, %v3866_v9  ;;  %v1555_v20 = vpop.f32.mrb[23].mxu0 }
 0x60e   : > { %v1829_v32 = vmul.f32 1.442695, %v1811_v30  ;;  %v1947_v0 = vpack.c.bf16 %v1555_v20, %v1552_v15  ;;  %v3870_v28 = vpop.f32.mrb[24].mxu0 }
 0x60f   : > { %v1825_v43 = vmul.f32 1.442695, %v1809_v42  ;;  %v1784_v19 = vpop.xlane.xlu1 %1783 }
 0x610   : > { %v1812_v46 = vsub.f32 %v1764_v62, %v1784_v19  ;;  %v1780_v45 = vpop.xlane.xlu0 %1779  ;;  %3912 = vmatprep.subr.bf16.mxu0 %v1947_v0  ;;  %3962 = vmatprep.subr.bf16.mxu1 %v1947_v0 }
 0x611   : > { %4291 = vpow2.f32 %v1825_v43  ;;  %v1810_v24 = vsub.f32 %v1762_v53, %v1780_v45  ;;  %3913 = vmatpush3.bf16.msra.mxu0 %v1947_v0  ;;  %3970 = vmatpush3.bf16.msra.mxu1 %v1947_v0 }
 0x612   : > { %4293 = vpow2.f32 %v1829_v32  ;;  %v1831_v52 = vmul.f32 1.442695, %v1812_v46  ;;  %3914 = vmatprep.subr.bf16.mxu0 %v1948_v18  ;;  %3963 = vmatprep.subr.bf16.mxu1 %v1948_v18 }
 0x613   : > { %v1827_v17 = vmul.f32 1.442695, %v1810_v24 }
 0x614   : > { %v1786_v48 = vpop.xlane.xlu0 %1785 }
 0x615   : > { %4295 = vpow2.f32 %v1827_v17  ;;  %v1813_v50 = vsub.f32 %v1765_v22, %v1786_v48  ;;  %3915 = vmatpush3.bf16.msra.mxu0 %v1948_v18  ;;  %3971 = vmatpush3.bf16.msra.mxu1 %v1948_v18 }
 0x616   : > { %v1788_v55 = vpop.xlane.xlu1 %1787  ;;  %4297 = vpow2.f32 %v1831_v52 }
 0x617   : > { %v1833_v57 = vmul.f32 1.442695, %v1813_v50  ;;  %v1814_v58 = vsub.f32 %v1766_v3, %v1788_v55 }
 0x618   : > { %v1790_v59 = vpop.xlane.xlu0 %1789 }
 0x619   : > { %4299 = vpow2.f32 %v1833_v57  ;;  %v1835_v63 = vmul.f32 1.442695, %v1814_v58  ;;  %v1815_v7 = vsub.f32 %v6185_v6, %v1790_v59 }
 0x61a   : > { %v1792_v8 = vpop.xlane.xlu1 %1791 }
 0x61b   : > { %v6216_v10 = vpop.eup %4291  ;;  %v1837_v11 = vmul.f32 1.442695, %v1815_v7  ;;  %v1816_v14 = vsub.f32 %v6187_v26, %v1792_v8  ;;  %4301 = vpow2.f32 %v1835_v63  ;;  %v4289_v63 = vld [vmem:[%s701_s20] sm:$0xff]  }
 0x61c   : > { %v1794_v61 = vpop.xlane.xlu0 %1793  ;;  %1857 = vadd.xlane.f32.xlu0 %v6216_v10  ;;  %v6221_v62 = vpop.eup %4293 }
 0x61d   : > { %4303 = vpow2.f32 %v1837_v11  ;;  %v1839_v4 = vmul.f32 1.442695, %v1816_v14  ;;  %v1817_v37 = vsub.f32 %v6190_v31, %v1794_v61 }
 0x61e   : > { %v1796_v53 = vpop.xlane.xlu1 %1795 }
 0x61f   : > { %v6223_v60 = vpop.eup %4295  ;;  %v1841_v22 = vmul.f32 1.442695, %v1817_v37  ;;  %v1818_v1 = vsub.f32 %v6193_v44, %v1796_v53  ;;  %4305 = vpow2.f32 %v1839_v4  ;;  %v1568_v44 = vpop.f32.mrb[25].mxu0 }
 0x620   : > { %v1798_v23 = vpop.xlane.xlu0 %1797  ;;  %1861 = vadd.xlane.f32.xlu0 %v6221_v62  ;;  %1859 = vadd.xlane.f32.xlu1 %v6223_v60  ;;  %v6229_v26 = vpop.eup %4297 }
 0x621   : > { %4307 = vpow2.f32 %v1841_v22  ;;  %v1843_v3 = vmul.f32 1.442695, %v1818_v1  ;;  %v1819_v6 = vsub.f32 %v6196_v25, %v1798_v23  ;;  %v3871_v34 = vpop.f32.mrb[26].mxu0 }
 0x622   : > { %v1800_v27 = vpop.xlane.xlu1 %1799  ;;  %v1950_v36 = vpack.c.bf16 %v3871_v34, %v3870_v28  ;;  %v1571_v40 = vpop.f32.mrb[27].mxu0 }
 0x623   : > { %v6231_v31 = vpop.eup %4299  ;;  %v1845_v5 = vmul.f32 1.442695, %v1819_v6  ;;  %v1820_v12 = vsub.f32 %v6199_v33, %v1800_v27  ;;  %4309 = vpow2.f32 %v1843_v3  ;;  %v1949_v33 = vpack.c.bf16 %v1571_v40, %v1568_v44  ;;  %v3874_v2 = vpop.f32.mrb[28].mxu0 }
 0x624   : > { %1865 = vadd.xlane.f32.xlu0 %v6231_v31  ;;  %v1802_v25 = vpop.xlane.xlu0 %1801  ;;  %1863 = vadd.xlane.f32.xlu1 %v6229_v26  ;;  %v1584_v52 = vpop.f32.mrb[29].mxu0 }
 0x625   : > { %4311 = vpow2.f32 %v1845_v5  ;;  %v1847_v38 = vmul.f32 1.442695, %v1820_v12  ;;  %v1821_v29 = vsub.f32 %v6202_v35, %v1802_v25  ;;  %v6237_v30 = vpop.eup %4301  ;;  %3916 = vmatprep.subr.bf16.mxu0 %v1949_v33  ;;  %3964 = vmatprep.subr.bf16.mxu1 %v1949_v33  ;;  %v4290_v5 = vld [vmem:[%s701_s20 + $0x8] sm:$0xff]  }
 0x626   : > { %v1804_v41 = vpop.xlane.xlu1 %1803  ;;  %3917 = vmatpush3.bf16.msra.mxu0 %v1949_v33  ;;  %3972 = vmatpush3.bf16.msra.mxu1 %v1949_v33 }
 0x627   : > { %v6239_v42 = vpop.eup %4303  ;;  %v1849_v43 = vmul.f32 1.442695, %v1821_v29  ;;  %v1822_v19 = vsub.f32 %v6205_v13, %v1804_v41  ;;  %4313 = vpow2.f32 %v1847_v38  ;;  %3918 = vmatprep.subr.bf16.mxu0 %v1950_v36  ;;  %3965 = vmatprep.subr.bf16.mxu1 %v1950_v36 }
 0x628   : > { %1869 = vadd.xlane.f32.xlu0 %v6239_v42  ;;  %v1806_v32 = vpop.xlane.xlu0 %1805  ;;  %1867 = vadd.xlane.f32.xlu1 %v6237_v30 }
 0x629   : > { %4315 = vpow2.f32 %v1849_v43  ;;  %v1851_v35 = vmul.f32 1.442695, %v1822_v19  ;;  %v1823_v46 = vsub.f32 %v6208_v21, %v1806_v32  ;;  %v6245_v45 = vpop.eup %4305  ;;  %v3875_v21 = vpop.f32.mrb[30].mxu0 }
 0x62a   : > { %v1808_v24 = vpop.xlane.xlu1 %1807  ;;  %v1952_v49 = vpack.c.bf16 %v3875_v21, %v3874_v2  ;;  %3919 = vmatpush3.bf16.msra.mxu0 %v1950_v36  ;;  %3973 = vmatpush3.bf16.msra.mxu1 %v1950_v36  ;;  %v1587_v54 = vpop.f32.mrb[31].mxu0 }
 0x62b   : > { %v6247_v17 = vpop.eup %4307  ;;  %v1853_v13 = vmul.f32 1.442695, %v1823_v46  ;;  %v1824_v47 = vsub.f32 %v6211_v39, %v1808_v24  ;;  %4317 = vpow2.f32 %v1851_v35  ;;  %v1951_v39 = vpack.c.bf16 %v1587_v54, %v1584_v52 }
 0x62c   : > { %1873 = vadd.xlane.f32.xlu0 %v6247_v17  ;;  %1871 = vadd.xlane.f32.xlu1 %v6245_v45 }
 0x62d   : > { %4319 = vpow2.f32 %v1853_v13  ;;  %v1855_v48 = vmul.f32 1.442695, %v1824_v47  ;;  %v6252_v50 = vpop.eup %4309  ;;  %3920 = vmatprep.subr.bf16.mxu0 %v1951_v39  ;;  %3966 = vmatprep.subr.bf16.mxu1 %v1951_v39 }
 0x62e   : > { %3921 = vmatpush3.bf16.msra.mxu0 %v1951_v39  ;;  %3974 = vmatpush3.bf16.msra.mxu1 %v1951_v39 }
 0x62f   : > { %v6254_v51 = vpop.eup %4311  ;;  %4321 = vpow2.f32 %v1855_v48  ;;  %3922 = vmatprep.subr.bf16.mxu0 %v1952_v49  ;;  %3967 = vmatprep.subr.bf16.mxu1 %v1952_v49 }
 0x630   : > { %1877 = vadd.xlane.f32.xlu0 %v6254_v51  ;;  %1875 = vadd.xlane.f32.xlu1 %v6252_v50 }
 0x631   : > { %v6258_v55 = vpop.eup %4313 }
 0x632   : > { %3923 = vmatpush3.bf16.msra.mxu0 %v1952_v49  ;;  %3975 = vmatpush3.bf16.msra.mxu1 %v1952_v49 }
 0x633   : > { %v6260_v56 = vpop.eup %4315  ;;  %3940 = vmatprep.subr.bf16.mxu0 %v4289_v63 }
 0x634   : > { %1881 = vadd.xlane.f32.xlu0 %v6260_v56  ;;  %1879 = vadd.xlane.f32.xlu1 %v6258_v55 }
 0x635   : > { %v6264_v57 = vpop.eup %4317 }
 0x637   : > { %v6266_v58 = vpop.eup %4319 }
 0x638   : > { %1885 = vadd.xlane.f32.xlu0 %v6266_v58  ;;  %1883 = vadd.xlane.f32.xlu1 %v6264_v57 }
 0x639   : > { %v6270_v59 = vpop.eup %4321 }
 0x63c   : > { %1887 = vadd.xlane.f32.xlu1 %v6270_v59 }
 0x6a9   : > { %v1858_v7 = vpop.xlane.xlu0 %1857 }
 0x6aa   : > { %4323 = vrcp.f32 %v1858_v7 }
 0x6ad   : > { %v1862_v8 = vpop.xlane.xlu0 %1861  ;;  %v1860_v9 = vpop.xlane.xlu1 %1859 }
 0x6ae   : > { %4325 = vrcp.f32 %v1862_v8 }
 0x6af   : > { %4327 = vrcp.f32 %v1860_v9 }
 0x6b1   : > { %v1866_v11 = vpop.xlane.xlu0 %1865  ;;  %v1864_v14 = vpop.xlane.xlu1 %1863 }
 0x6b2   : > { %4329 = vrcp.f32 %v1866_v11 }
 0x6b3   : > { %4331 = vrcp.f32 %v1864_v14 }
 0x6b4   : > { %v4324_v15 = vpop.eup %4323 }
 0x6b5   : > { %v1870_v61 = vpop.xlane.xlu0 %1869  ;;  %v1868_v16 = vpop.xlane.xlu1 %1867  ;;  %v1905_v4 = vmul.f32 %v4324_v15, %v6216_v10 }
 0x6b6   : > { %4333 = vrcp.f32 %v1870_v61 }
 0x6b7   : > { %4335 = vrcp.f32 %v1868_v16  ;;  %1921 = vst [vmem:[%s5887_s11] sm:$0xff] %v1905_v4 }
 0x6b8   : > { %v4326_v37 = vpop.eup %4325 }
 0x6b9   : > { %v4328_v18 = vpop.eup %4327  ;;  %v1907_v20 = vmul.f32 %v4326_v37, %v6221_v62  ;;  %v1874_v53 = vpop.xlane.xlu0 %1873 }
 0x6ba   : > { %v1872_v0 = vpop.xlane.xlu1 %1871  ;;  %4337 = vrcp.f32 %v1874_v53  ;;  %v1906_v22 = vmul.f32 %v4328_v18, %v6223_v60 }
 0x6bb   : > { %1923 = vst [vmem:[%s5887_s11 + $0x10] sm:$0xff] %v1907_v20  ;;  %4339 = vrcp.f32 %v1872_v0 }
 0x6bc   : > { %v4330_v1 = vpop.eup %4329  ;;  %1922 = vst [vmem:[%s5887_s11 + $0x8] sm:$0xff] %v1906_v22  ;;  %v1937_v10 = vpack.c.bf16 %v1906_v22, %v1905_v4 }
 0x6bd   : > { %v4332_v23 = vpop.eup %4331  ;;  %v1878_v3 = vpop.xlane.xlu0 %1877  ;;  %v1909_v27 = vmul.f32 %v4330_v1, %v6231_v31 }
 0x6be   : > { %v1876_v6 = vpop.xlane.xlu1 %1875  ;;  %v1908_v62 = vmul.f32 %v4332_v23, %v6229_v26  ;;  %4341 = vrcp.f32 %v1878_v3  ;;  %3924 = vmatprep.mubr.bf16.mxu0 %v1937_v10  ;;  %v2052_v23 = vld [vmem:[#allocation3 + $0x10] sm:$0xff]  ;;  %v2050_v3 = vld [vmem:[#allocation3] sm:$0xff] }
 0x6bf   : > { %4343 = vrcp.f32 %v1876_v6  ;;  %1925 = vst [vmem:[%s5887_s11 + $0x20] sm:$0xff] %v1909_v27 }
 0x6c0   : > { %v4334_v60 = vpop.eup %4333  ;;  %1924 = vst [vmem:[%s5887_s11 + $0x18] sm:$0xff] %v1908_v62  ;;  %v1938_v28 = vpack.c.bf16 %v1908_v62, %v1907_v20 }
 0x6c1   : > { %v4336_v12 = vpop.eup %4335  ;;  %v1882_v44 = vpop.xlane.xlu0 %1881  ;;  %v1911_v34 = vmul.f32 %v4334_v60, %v6239_v42 }
 0x6c2   : > { %v1880_v25 = vpop.xlane.xlu1 %1879  ;;  %4345 = vrcp.f32 %v1882_v44  ;;  %3925 = vmatmul.mubr.bf16.vlgmr.msra.gmra.mrb[32].mxu0 %v1938_v28  ;;  %v1910_v26 = vmul.f32 %v4336_v12, %v6237_v30  ;;  %v2051_v28 = vld [vmem:[#allocation3 + $0x8] sm:$0xff] }
 0x6c3   : > { %4347 = vrcp.f32 %v1880_v25  ;;  %1927 = vst [vmem:[%s5887_s11 + $0x30] sm:$0xff] %v1911_v34  ;;  %3941 = vmatpush3.bf16.msra.mxu0 %v4289_v63 }
 0x6c4   : > { %v4338_v31 = vpop.eup %4337  ;;  %1926 = vst [vmem:[%s5887_s11 + $0x28] sm:$0xff] %v1910_v26  ;;  %v1939_v38 = vpack.c.bf16 %v1910_v26, %v1909_v27  ;;  %3942 = vmatprep.subr.bf16.mxu0 %v4290_v5  ;;  %v2053_v27 = vld [vmem:[#allocation3 + $0x18] sm:$0xff]  ;;  %v2056_v26 = vld [vmem:[#allocation3 + $0x30] sm:$0xff] }
 0x6c5   : > { %v4340_v29 = vpop.eup %4339  ;;  %v1886_v36 = vpop.xlane.xlu0 %1885  ;;  %v1913_v41 = vmul.f32 %v4338_v31, %v6247_v17  ;;  %v2054_v31 = vld [vmem:[#allocation3 + $0x20] sm:$0xff] }
 0x6c6   : > { %v1884_v40 = vpop.xlane.xlu1 %1883  ;;  %4349 = vrcp.f32 %v1886_v36  ;;  %3928 = vmatprep.mubr.bf16.mxu0 %v1939_v38  ;;  %v1912_v30 = vmul.f32 %v4340_v29, %v6245_v45  ;;  %v2057_v29 = vld [vmem:[#allocation3 + $0x38] sm:$0xff] }
 0x6c7   : > { %4351 = vrcp.f32 %v1884_v40  ;;  %1929 = vst [vmem:[%s5887_s11 + $0x40] sm:$0xff] %v1913_v41  ;;  %3943 = vmatpush3.bf16.msra.mxu0 %v4290_v5 }
 0x6c8   : > { %v4342_v33 = vpop.eup %4341  ;;  %1928 = vst [vmem:[%s5887_s11 + $0x38] sm:$0xff] %v1912_v30  ;;  %v1940_v42 = vpack.c.bf16 %v1912_v30, %v1911_v34 }
 0x6c9   : > { %v4344_v43 = vpop.eup %4343  ;;  %v1915_v19 = vmul.f32 %v4342_v33, %v6254_v51 }
 0x6ca   : > { %v1888_v32 = vpop.xlane.xlu1 %1887  ;;  %3929 = vmatmul.mubr.bf16.gmra.mrb[36].mxu0 %v1940_v42  ;;  %v1914_v35 = vmul.f32 %v4344_v43, %v6252_v50 }
 0x6cb   : > { %4353 = vrcp.f32 %v1888_v32  ;;  %1931 = vst [vmem:[%s5887_s11 + $0x50] sm:$0xff] %v1915_v19  ;;  %v2060_v32 = vld [vmem:[#allocation3 + $0x50] sm:$0xff] }
 0x6cc   : > { %v4346_v46 = vpop.eup %4345  ;;  %1930 = vst [vmem:[%s5887_s11 + $0x48] sm:$0xff] %v1914_v35  ;;  %v1941_v45 = vpack.c.bf16 %v1914_v35, %v1913_v41  ;;  %v2055_v41 = vld [vmem:[#allocation3 + $0x28] sm:$0xff]  ;;  %v2058_v35 = vld [vmem:[#allocation3 + $0x40] sm:$0xff] }
 0x6cd   : > { %v4348_v24 = vpop.eup %4347  ;;  %v1917_v2 = vmul.f32 %v4346_v46, %v6260_v56 }
 0x6ce   : > { %v1916_v17 = vmul.f32 %v4348_v24, %v6258_v55  ;;  %3932 = vmatprep.mubr.bf16.mxu1 %v1941_v45  ;;  %v2061_v45 = vld [vmem:[#allocation3 + $0x58] sm:$0xff] }
 0x6cf   : > { %1933 = vst [vmem:[%s5887_s11 + $0x60] sm:$0xff] %v1917_v2 }
 0x6d0   : > { %v4350_v13 = vpop.eup %4349  ;;  %1932 = vst [vmem:[%s5887_s11 + $0x58] sm:$0xff] %v1916_v17  ;;  %v1942_v47 = vpack.c.bf16 %v1916_v17, %v1915_v19  ;;  %v2059_v17 = vld [vmem:[#allocation3 + $0x48] sm:$0xff] }
 0x6d1   : > { %v4352_v52 = vpop.eup %4351  ;;  %v1919_v21 = vmul.f32 %v4350_v13, %v6266_v58 }
 0x6d2   : > { %3933 = vmatmul.mubr.bf16.vlgmr.msra.gmra.mrb[32].mxu1 %v1942_v47  ;;  %v1918_v48 = vmul.f32 %v4352_v52, %v6264_v57 }
 0x6d3   : > { %1935 = vst [vmem:[%s5887_s11 + $0x70] sm:$0xff] %v1919_v21 }
 0x6d4   : > { %1934 = vst [vmem:[%s5887_s11 + $0x68] sm:$0xff] %v1918_v48  ;;  %v1943_v50 = vpack.c.bf16 %v1918_v48, %v1917_v2 }
 0x6d5   : > { %v4354_v49 = vpop.eup %4353 }
 0x6d6   : > { %v1920_v51 = vmul.f32 %v4354_v49, %v6270_v59  ;;  %3936 = vmatprep.mubr.bf16.mxu1 %v1943_v50  ;;  %v2064_v49 = vld [vmem:[#allocation3 + $0x70] sm:$0xff]  ;;  %v2062_v50 = vld [vmem:[#allocation3 + $0x60] sm:$0xff] }
 0x6d8   : > { %1936 = vst [vmem:[%s5887_s11 + $0x78] sm:$0xff] %v1920_v51  ;;  %v1944_v54 = vpack.c.bf16 %v1920_v51, %v1919_v21 }
 0x6da   : > { %3937 = vmatmul.mubr.bf16.gmra.mrb[36].mxu1 %v1944_v54  ;;  %v2065_v54 = vld [vmem:[#allocation3 + $0x78] sm:$0xff] }
 0x795   : > { %v3926_v39 = vpop.f32.mrb[32].mxu0 }
 0x796   : > { %v1987_v55 = vpop.f32.mrb[33].mxu0 }
 0x797   : > { %v3927_v56 = vpop.f32.mrb[34].mxu0 }
 0x798   : > { %v2067_v63 = vpack.c.bf16 %v3927_v56, %v3926_v39  ;;  %v1990_v7 = vpop.f32.mrb[35].mxu0  ;;  %v2063_v56 = vld [vmem:[#allocation3 + $0x68] sm:$0xff] }
 0x799   : > { %v2066_v8 = vpack.c.bf16 %v1990_v7, %v1987_v55 }
 0x79b   : > { %3944 = vmatprep.mubr.msk.bf16.mxu0 %vm1615_vm0, %v2066_v8 }
 0x79c   : > { %3945 = vmatmul.mubr.msk.bf16.vlgmr.msra.gmra.mrb[40].mxu0 %vm1615_vm0, %v2067_v63 }
 0x79d   : > { %v3930_v57 = vpop.f32.mrb[36].mxu0 }
 0x79e   : > { %v2003_v58 = vpop.f32.mrb[37].mxu0 }
 0x79f   : > { %v3931_v9 = vpop.f32.mrb[38].mxu0 }
 0x7a0   : > { %v2069_v11 = vpack.c.bf16 %v3931_v9, %v3930_v57  ;;  %v2006_v14 = vpop.f32.mrb[39].mxu0 }
 0x7a1   : > { %v2068_v59 = vpack.c.bf16 %v2006_v14, %v2003_v58 }
 0x7a3   : > { %3948 = vmatprep.mubr.msk.bf16.mxu0 %vm1615_vm0, %v2068_v59 }
 0x7a4   : > { %3949 = vmatmul.mubr.msk.bf16.gmra.mrb[44].mxu0 %vm1615_vm0, %v2069_v11 }
 0x7a5   : > { %v3934_v15 = vpop.f32.mrb[32].mxu1 }
 0x7a6   : > { %v2019_v61 = vpop.f32.mrb[33].mxu1 }
 0x7a7   : > { %v3935_v16 = vpop.f32.mrb[34].mxu1 }
 0x7a8   : > { %v2071_v4 = vpack.c.bf16 %v3935_v16, %v3934_v15  ;;  %v2022_v37 = vpop.f32.mrb[35].mxu1 }
 0x7a9   : > { %v2070_v18 = vpack.c.bf16 %v2022_v37, %v2019_v61 }
 0x7ab   : > { %3952 = vmatprep.mubr.msk.bf16.mxu0 %vm1615_vm0, %v2070_v18 }
 0x7ac   : > { %3953 = vmatmul.mubr.msk.bf16.gmra.mrb[48].mxu0 %vm1615_vm0, %v2071_v4 }
 0x7ad   : > { %v3938_v20 = vpop.f32.mrb[36].mxu1 }
 0x7ae   : > { %v2035_v53 = vpop.f32.mrb[37].mxu1 }
 0x7af   : > { %v3939_v0 = vpop.f32.mrb[38].mxu1 }
 0x7b0   : > { %v2073_v22 = vpack.c.bf16 %v3939_v0, %v3938_v20  ;;  %v2038_v1 = vpop.f32.mrb[39].mxu1 }
 0x7b1   : > { %v2072_v10 = vpack.c.bf16 %v2038_v1, %v2035_v53 }
 0x7b3   : > { %3956 = vmatprep.mubr.msk.bf16.mxu0 %vm1615_vm0, %v2072_v10 }
 0x7b4   : > { %3957 = vmatmul.mubr.msk.bf16.gmra.mrb[52].mxu0 %vm1615_vm0, %v2073_v22 }
 0x86f   : > { %v3946_v6 = vpop.f32.mrb[40].mxu0 }
 0x870   : > { %v2213_v62 = vadd.f32 %v3946_v6, %v2052_v23  ;;  %v2148_v60 = vpop.f32.mrb[41].mxu0  ;;  %v4355_v23 = vld [vmem:[#allocation18 + $0x4] ss:$8 sps:$4 sm:$0xff] (!%p3575_p11)   ;;  %v4358_v6 = vld [vmem:[#allocation18 + $0x14] ss:$8 sps:$4 sm:$0xff] (!%p3575_p11)  }
 0x871   : > { %v2211_v5 = vadd.f32 %v2148_v60, %v2050_v3  ;;  %v3947_v12 = vpop.f32.mrb[42].mxu0  ;;  %v4357_v3 = vld [vmem:[#allocation18] ss:$8 sps:$4 sm:$0xff] (!%p3575_p11)   ;;  %2602 = vmatprep.subr.bf16.mxu0 (!%p3575_p11), %v4355_v23  ;;  %v4364_v23 = vld [vmem:[#allocation18 + $0x34] ss:$8 sps:$4 sm:$0xff] (!%p3575_p11)  }
 0x872   : > { %2229 = vst [vmem:[#allocation3 + $0x10] sm:$0xff] %v2213_v62  ;;  %v2214_v44 = vadd.f32 %v3947_v12, %v2053_v27  ;;  %v2151_v25 = vpop.f32.mrb[43].mxu0  ;;  %2603 = vmatpush1.bf16.msra.mxu0 (!%p3575_p11), %v4357_v3 }
 0x873   : > { %2227 = vst [vmem:[#allocation3] sm:$0xff] %v2211_v5  ;;  %v2212_v34 = vadd.f32 %v2151_v25, %v2051_v28  ;;  %2604 = vmatprep.subr.bf16.mxu0 (!%p3575_p11), %v4358_v6 }
 0x874   : > { %2230 = vst [vmem:[#allocation3 + $0x18] sm:$0xff] %v2214_v44 }
 0x875   : > { %2228 = vst [vmem:[#allocation3 + $0x8] sm:$0xff] %v2212_v34 }
 0x877   : > { %v3950_v38 = vpop.f32.mrb[44].mxu0 }
 0x878   : > { %v2217_v36 = vadd.f32 %v3950_v38, %v2056_v26  ;;  %v2164_v40 = vpop.f32.mrb[45].mxu0 }
 0x879   : > { %v2215_v30 = vadd.f32 %v2164_v40, %v2054_v31  ;;  %v3951_v33 = vpop.f32.mrb[46].mxu0  ;;  %v2249_v11 = vld [vmem:[#allocation3 + $0x10] sm:$0xff] (!%p3575_p11) }
 0x87a   : > { %2233 = vst [vmem:[#allocation3 + $0x30] sm:$0xff] %v2217_v36  ;;  %v2218_v42 = vadd.f32 %v3951_v33, %v2057_v29  ;;  %v2167_v43 = vpop.f32.mrb[47].mxu0  ;;  %v2247_v9 = vld [vmem:[#allocation3] sm:$0xff] (!%p3575_p11)  ;;  %2269 = vadd.xlane.f32.xlu1 (!%p3575_p11), %v2249_v11 }
 0x87b   : > { %2231 = vst [vmem:[#allocation3 + $0x20] sm:$0xff] %v2215_v30  ;;  %v2216_v19 = vadd.f32 %v2167_v43, %v2055_v41  ;;  %2265 = vadd.xlane.f32.xlu0 (!%p3575_p11), %v2247_v9  ;;  %v2250_v59 = vld [vmem:[#allocation3 + $0x18] sm:$0xff] (!%p3575_p11) }
 0x87c   : > { %2234 = vst [vmem:[#allocation3 + $0x38] sm:$0xff] %v2218_v42  ;;  %v2248_v14 = vld [vmem:[#allocation3 + $0x8] sm:$0xff] (!%p3575_p11) }
 0x87d   : > { %2232 = vst [vmem:[#allocation3 + $0x28] sm:$0xff] %v2216_v19 }
 0x87e   : > { %2271 = vadd.xlane.f32.xlu1 (!%p3575_p11), %v2250_v59 }
 0x87f   : > { %v3954_v46 = vpop.f32.mrb[48].mxu0  ;;  %2267 = vadd.xlane.f32.xlu0 (!%p3575_p11), %v2248_v14 }
 0x880   : > { %v2221_v24 = vadd.f32 %v3954_v46, %v2060_v32  ;;  %v2180_v2 = vpop.f32.mrb[49].mxu0 }
 0x881   : > { %v2219_v13 = vadd.f32 %v2180_v2, %v2058_v35  ;;  %v3955_v47 = vpop.f32.mrb[50].mxu0  ;;  %v2253_v16 = vld [vmem:[#allocation3 + $0x30] sm:$0xff] (!%p3575_p11) }
 0x882   : > { %2237 = vst [vmem:[#allocation3 + $0x50] sm:$0xff] %v2221_v24  ;;  %v2222_v52 = vadd.f32 %v3955_v47, %v2061_v45  ;;  %v2183_v21 = vpop.f32.mrb[51].mxu0  ;;  %v2251_v15 = vld [vmem:[#allocation3 + $0x20] sm:$0xff] (!%p3575_p11) }
 0x883   : > { %2235 = vst [vmem:[#allocation3 + $0x40] sm:$0xff] %v2219_v13  ;;  %v2220_v48 = vadd.f32 %v2183_v21, %v2059_v17  ;;  %v2254_v4 = vld [vmem:[#allocation3 + $0x38] sm:$0xff] (!%p3575_p11)  ;;  %2273 = vadd.xlane.f32.xlu0 (!%p3575_p11), %v2251_v15 }
 0x884   : > { %2238 = vst [vmem:[#allocation3 + $0x58] sm:$0xff] %v2222_v52  ;;  %v2252_v61 = vld [vmem:[#allocation3 + $0x28] sm:$0xff] (!%p3575_p11) }
 0x885   : > { %2236 = vst [vmem:[#allocation3 + $0x48] sm:$0xff] %v2220_v48  ;;  %2275 = vadd.xlane.f32.xlu1 (!%p3575_p11), %v2252_v61 }
 0x887   : > { %v3958_v51 = vpop.f32.mrb[52].mxu0  ;;  %2246 = sbr.rel (%p3575_p11) target bundleno = 3003 (0xbbb), region = 140  ;;  %2277 = vadd.xlane.f32.xlu0 (!%p3575_p11), %v2253_v16 }
 0x888   : > { %v2225_v39 = vadd.f32 %v3958_v51, %v2064_v49  ;;  %v2196_v55 = vpop.f32.mrb[53].mxu0 }
 0x889   : > { %v2223_v63 = vadd.f32 %v2196_v55, %v2062_v50  ;;  %v3959_v7 = vpop.f32.mrb[54].mxu0  ;;  %2279 = vadd.xlane.f32.xlu1 (!%p3575_p11), %v2254_v4  ;;  %v6322_v20 = vld [vmem:[#allocation3 + $0x50] sm:$0xff] (!%p3575_p11) }
 0x88a   : > { %2241 = vst [vmem:[#allocation3 + $0x70] sm:$0xff] %v2225_v39  ;;  %v2226_v8 = vadd.f32 %v3959_v7, %v2065_v54  ;;  %v2199_v57 = vpop.f32.mrb[55].mxu0  ;;  %v6318_v37 = vld [vmem:[#allocation3 + $0x40] sm:$0xff] (!%p3575_p11) }
 0x88b   : > { %2239 = vst [vmem:[#allocation3 + $0x60] sm:$0xff] %v2223_v63  ;;  %v2224_v58 = vadd.f32 %v2199_v57, %v2063_v56  ;;  %v6324_v53 = vld [vmem:[#allocation3 + $0x58] sm:$0xff] (!%p3575_p11)  ;;  %2281 = vadd.xlane.f32.xlu0 (!%p3575_p11), %v6318_v37 }
 0x88c   : > { %2242 = vst [vmem:[#allocation3 + $0x78] sm:$0xff] %v2226_v8  ;;  %v6320_v18 = vld [vmem:[#allocation3 + $0x48] sm:$0xff] (!%p3575_p11)  ;;  %v4360_v55 = vld [vmem:[#allocation18 + $0x10] ss:$8 sps:$4 sm:$0xff] (!%p3575_p11)  }
 0x88d   : > { %2240 = vst [vmem:[#allocation3 + $0x68] sm:$0xff] %v2224_v58  ;;  %2283 = vadd.xlane.f32.xlu1 (!%p3575_p11), %v6320_v18  ;;  %2605 = vmatpush1.bf16.msra.mxu0 (!%p3575_p11), %v4360_v55  ;;  %v4361_v58 = vld [vmem:[#allocation18 + $0x24] ss:$8 sps:$4 sm:$0xff] (!%p3575_p11)  }
 0x88e   : > { %2606 = vmatprep.subr.bf16.mxu0 %v4361_v58 }
 0x88f   : > { %2285 = vadd.xlane.f32.xlu0 %v6322_v20 }
 0x891   : > { %2287 = vadd.xlane.f32.xlu1 %v6324_v53  ;;  %v6336_v1 = vld [vmem:[#allocation3 + $0x70] sm:$0xff] }
 0x892   : > { %v6330_v0 = vld [vmem:[#allocation3 + $0x60] sm:$0xff] }
 0x893   : > { %2289 = vadd.xlane.f32.xlu0 %v6330_v0  ;;  %v6338_v10 = vld [vmem:[#allocation3 + $0x78] sm:$0xff] }
 0x894   : > { %v6332_v22 = vld [vmem:[#allocation3 + $0x68] sm:$0xff] }
 0x895   : > { %2291 = vadd.xlane.f32.xlu1 %v6332_v22 }
 0x897   : > { %2293 = vadd.xlane.f32.xlu0 %v6336_v1 }
 0x899   : > { %2295 = vadd.xlane.f32.xlu1 %v6338_v10 }
 0x907   : > { %v2270_v62 = vpop.xlane.xlu1 %2269 }
 0x908   : > { %v2266_v27 = vpop.xlane.xlu0 %2265  ;;  %v2300_v28 = vmul.f32 0.0078125, %v2270_v62 }
 0x909   : > { %v2298_v60 = vmul.f32 0.0078125, %v2266_v27  ;;  %v4366_v27 = vld [vmem:[#allocation18 + $0x30] ss:$8 sps:$4 sm:$0xff]  }
 0x90a   : > { %v6344_v12 = vsub.f32 %v2249_v11, %v2300_v28 }
 0x90b   : > { %v6342_v5 = vsub.f32 %v2247_v9, %v2298_v60  ;;  %v2272_v25 = vpop.xlane.xlu1 %2271 }
 0x90c   : > { %v2268_v44 = vpop.xlane.xlu0 %2267  ;;  %v2301_v31 = vmul.f32 0.0078125, %v2272_v25  ;;  %v2332_v36 = vmul.f32 %v6344_v12, %v6344_v12  ;;  %v4367_v25 = vld [vmem:[#allocation18 + $0x44] ss:$8 sps:$4 sm:$0xff]  }
 0x90d   : > { %v2299_v34 = vmul.f32 0.0078125, %v2268_v44  ;;  %v2330_v26 = vmul.f32 %v6342_v5, %v6342_v5 }
 0x90e   : > { %v6350_v29 = vsub.f32 %v2250_v59, %v2301_v31  ;;  %v4370_v31 = vld [vmem:[#allocation18 + $0x54] ss:$8 sps:$4 sm:$0xff]  }
 0x90f   : > { %v6348_v38 = vsub.f32 %v2248_v14, %v2299_v34  ;;  %2346 = vadd.xlane.f32.xlu0 %v2330_v26  ;;  %v4369_v34 = vld [vmem:[#allocation18 + $0x40] ss:$8 sps:$4 sm:$0xff]  }
 0x910   : > { %v2274_v40 = vpop.xlane.xlu0 %2273  ;;  %v2333_v32 = vmul.f32 %v6350_v29, %v6350_v29 }
 0x911   : > { %v2302_v30 = vmul.f32 0.0078125, %v2274_v40  ;;  %v2331_v33 = vmul.f32 %v6348_v38, %v6348_v38  ;;  %v4375_v40 = vld [vmem:[#allocation18 + $0x60] ss:$8 sps:$4 sm:$0xff]  }
 0x912   : > { %v2276_v41 = vpop.xlane.xlu1 %2275 }
 0x913   : > { %v2303_v42 = vmul.f32 0.0078125, %v2276_v41  ;;  %v6356_v43 = vsub.f32 %v2251_v15, %v2302_v30  ;;  %2350 = vadd.xlane.f32.xlu0 %v2332_v36  ;;  %2348 = vadd.xlane.f32.xlu1 %v2331_v33  ;;  %v4372_v36 = vld [vmem:[#allocation18 + $0x50] ss:$8 sps:$4 sm:$0xff]   ;;  %v4376_v41 = vld [vmem:[#allocation18 + $0x74] ss:$8 sps:$4 sm:$0xff]   ;;  %v5135_v33 = vmov 0  }
 0x914   : > { %v2278_v35 = vpop.xlane.xlu0 %2277  ;;  %v4378_v30 = vld [vmem:[#allocation18 + $0x70] ss:$8 sps:$4 sm:$0xff]   ;;  %2634 = vmatprep.mubr.bf16.mxu0 %v5135_v33 }
 0x915   : > { %v6358_v19 = vsub.f32 %v2252_v61, %v2303_v42  ;;  %v2304_v45 = vmul.f32 0.0078125, %v2278_v35  ;;  %v2334_v24 = vmul.f32 %v6356_v43, %v6356_v43  ;;  %v4363_v61 = vld [vmem:[#allocation18 + $0x20] ss:$8 sps:$4 sm:$0xff]  }
 0x916   : > { %v2280_v46 = vpop.xlane.xlu1 %2279  ;;  %2607 = vmatpush1.bf16.msra.mxu0 %v4363_v61  ;;  %v4379_v42 = vld [vmem:[#allocation21 + $0x40] sm:$0xff]   ;;  %v4381_v35 = vld [vmem:[#allocation21 + $0x48] sm:$0xff]  }
 0x917   : > { %v2305_v2 = vmul.f32 0.0078125, %v2280_v46  ;;  %v6364_v17 = vsub.f32 %v2253_v16, %v2304_v45  ;;  %2352 = vadd.xlane.f32.xlu1 %v2333_v32  ;;  %2354 = vadd.xlane.f32.xlu0 %v2334_v24  ;;  %v2335_v47 = vmul.f32 %v6358_v19, %v6358_v19  ;;  %v4380_v32 = vld [vmem:[#allocation21] sm:$0xff]   ;;  %v4382_v46 = vld [vmem:[#allocation21 + $0x8] sm:$0xff]  }
 0x918   : > { %v2282_v52 = vpop.xlane.xlu0 %2281  ;;  %2608 = vmatprep.subr.bf16.mxu0 %v4364_v23  ;;  %3716 = vmatprep.subr.bf16.mxu1 %v4379_v42 }
 0x919   : > { %v6366_v13 = vsub.f32 %v2254_v4, %v2305_v2  ;;  %v2306_v48 = vmul.f32 0.0078125, %v2282_v52  ;;  %v2336_v49 = vmul.f32 %v6364_v17, %v6364_v17  ;;  %3717 = vmatpush3.bf16.msra.mxu1 %v4380_v32 }
 0x91a   : > { %v2284_v21 = vpop.xlane.xlu1 %2283  ;;  %2609 = vmatpush1.bf16.msra.mxu0 %v4366_v27  ;;  %3718 = vmatprep.subr.bf16.mxu1 %v4381_v35 }
 0x91b   : > { %v2307_v50 = vmul.f32 0.0078125, %v2284_v21  ;;  %v6373_v51 = vsub.f32 %v6318_v37, %v2306_v48  ;;  %2356 = vadd.xlane.f32.xlu1 %v2335_v47  ;;  %2358 = vadd.xlane.f32.xlu0 %v2336_v49  ;;  %v2337_v39 = vmul.f32 %v6366_v13, %v6366_v13 }
 0x91c   : > { %v2286_v56 = vpop.xlane.xlu0 %2285  ;;  %2610 = vmatprep.subr.bf16.mxu0 %v4367_v25 }
 0x91d   : > { %v6376_v54 = vsub.f32 %v6320_v18, %v2307_v50  ;;  %v2308_v7 = vmul.f32 0.0078125, %v2286_v56  ;;  %v2338_v8 = vmul.f32 %v6373_v51, %v6373_v51  ;;  %3719 = vmatpush3.bf16.msra.mxu1 %v4382_v46 }
 0x91e   : > { %v2288_v63 = vpop.xlane.xlu1 %2287  ;;  %2611 = vmatpush1.bf16.msra.mxu0 %v4369_v34 }
 0x91f   : > { %v2309_v57 = vmul.f32 0.0078125, %v2288_v63  ;;  %v6383_v9 = vsub.f32 %v6322_v20, %v2308_v7  ;;  %2360 = vadd.xlane.f32.xlu1 %v2337_v39  ;;  %2362 = vadd.xlane.f32.xlu0 %v2338_v8  ;;  %v2339_v14 = vmul.f32 %v6376_v54, %v6376_v54 }
 0x920   : > { %v2290_v59 = vpop.xlane.xlu0 %2289  ;;  %2612 = vmatprep.subr.bf16.mxu0 %v4370_v31 }
 0x921   : > { %v6386_v11 = vsub.f32 %v6324_v53, %v2309_v57  ;;  %v2310_v16 = vmul.f32 0.0078125, %v2290_v59  ;;  %v2340_v4 = vmul.f32 %v6383_v9, %v6383_v9 }
 0x922   : > { %v2292_v15 = vpop.xlane.xlu1 %2291  ;;  %2613 = vmatpush1.bf16.msra.mxu0 %v4372_v36 }
 0x923   : > { %v2311_v37 = vmul.f32 0.0078125, %v2292_v15  ;;  %v6393_v18 = vsub.f32 %v6330_v0, %v2310_v16  ;;  %2364 = vadd.xlane.f32.xlu1 %v2339_v14  ;;  %2366 = vadd.xlane.f32.xlu0 %v2340_v4  ;;  %v2341_v53 = vmul.f32 %v6386_v11, %v6386_v11 }
 0x924   : > { %v2294_v3 = vpop.xlane.xlu0 %2293 }
 0x925   : > { %v6396_v20 = vsub.f32 %v6332_v22, %v2311_v37  ;;  %v2312_v62 = vmul.f32 0.0078125, %v2294_v3  ;;  %v2342_v60 = vmul.f32 %v6393_v18, %v6393_v18  ;;  %v6416_v37 = vld [vmem:[#allocation24] ss:$0 sm:$0xff] }
 0x926   : > { %v2296_v6 = vpop.xlane.xlu1 %2295 }
 0x927   : > { %v2313_v28 = vmul.f32 0.0078125, %v2296_v6  ;;  %v6403_v0 = vsub.f32 %v6336_v1, %v2312_v62  ;;  %2368 = vadd.xlane.f32.xlu1 %v2341_v53  ;;  %2370 = vadd.xlane.f32.xlu0 %v2342_v60  ;;  %v2343_v44 = vmul.f32 %v6396_v20, %v6396_v20  ;;  %v6420_v60 = vld [vmem:[#allocation25] ss:$0 sm:$0xff] }
 0x929   : > { %v6406_v22 = vsub.f32 %v6338_v10, %v2313_v28  ;;  %v2344_v26 = vmul.f32 %v6403_v0, %v6403_v0  ;;  %v4373_v10 = vld [vmem:[#allocation18 + $0x64] ss:$8 sps:$4 sm:$0xff]  }
 0x92a   : > { %2614 = vmatprep.subr.bf16.mxu0 %v4373_v10 }
 0x92b   : > { %2372 = vadd.xlane.f32.xlu1 %v2343_v44  ;;  %2374 = vadd.xlane.f32.xlu0 %v2344_v26  ;;  %v2345_v1 = vmul.f32 %v6406_v22, %v6406_v22 }
 0x92c   : > { %2615 = vmatpush1.bf16.msra.mxu0 %v4375_v40 }
 0x92d   : > { %2616 = vmatprep.subr.bf16.mxu0 %v4376_v41 }
 0x92f   : > { %2376 = vadd.xlane.f32.xlu1 %v2345_v1 }
 0x930   : > { %2617 = vmatpush1.bf16.msra.mxu0 %v4378_v30 }
 0x99c   : > { %v2347_v45 = vpop.xlane.xlu0 %2346 }
 0x99d   : > { %v2378_v24 = vmul.f32 0.0078125, %v2347_v45 }
 0x99f   : > { %v2394_v2 = vadd.f32 1e-06, %v2378_v24 }
 0x9a0   : > { %v2349_v47 = vpop.xlane.xlu1 %2348  ;;  %v2351_v52 = vpop.xlane.xlu0 %2350 }
 0x9a1   : > { %4395 = vrsqrt.f32 %v2394_v2  ;;  %v2379_v21 = vmul.f32 0.0078125, %v2349_v47  ;;  %v2380_v48 = vmul.f32 0.0078125, %v2351_v52 }
 0x9a3   : > { %v2395_v49 = vadd.f32 1e-06, %v2379_v21  ;;  %v2396_v50 = vadd.f32 1e-06, %v2380_v48 }
 0x9a4   : > { %v2353_v39 = vpop.xlane.xlu1 %2352  ;;  %v2355_v55 = vpop.xlane.xlu0 %2354 }
 0x9a5   : > { %4397 = vrsqrt.f32 %v2395_v49  ;;  %v2381_v56 = vmul.f32 0.0078125, %v2353_v39  ;;  %v2382_v7 = vmul.f32 0.0078125, %v2355_v55 }
 0x9a6   : > { %4399 = vrsqrt.f32 %v2396_v50 }
 0x9a7   : > { %v2397_v63 = vadd.f32 1e-06, %v2381_v56  ;;  %v2398_v14 = vadd.f32 1e-06, %v2382_v7 }
 0x9a8   : > { %v2357_v8 = vpop.xlane.xlu1 %2356  ;;  %v2359_v15 = vpop.xlane.xlu0 %2358 }
 0x9a9   : > { %4401 = vrsqrt.f32 %v2397_v63  ;;  %v2383_v57 = vmul.f32 0.0078125, %v2357_v8  ;;  %v2384_v23 = vmul.f32 0.0078125, %v2359_v15 }
 0x9ab   : > { %v4396_v58 = vpop.eup %4395  ;;  %v2399_v59 = vadd.f32 1e-06, %v2383_v57 }
 0x9ac   : > { %v2361_v61 = vpop.xlane.xlu1 %2360  ;;  %v2426_v16 = vmul.f32 %v4396_v58, %v6342_v5  ;;  %v2400_v5 = vadd.f32 1e-06, %v2384_v23  ;;  %v2363_v34 = vpop.xlane.xlu0 %2362 }
 0x9ad   : > { %4403 = vrsqrt.f32 %v2399_v59  ;;  %v2385_v4 = vmul.f32 0.0078125, %v2361_v61  ;;  %v2386_v30 = vmul.f32 0.0078125, %v2363_v34 }
 0x9ae   : > { %4405 = vrsqrt.f32 %v2398_v14  ;;  %v2448_v6 = vmul.f32 %v6416_v37, %v2426_v16 }
 0x9af   : > { %v4398_v53 = vpop.eup %4397  ;;  %v2401_v62 = vadd.f32 1e-06, %v2385_v4  ;;  %v2402_v45 = vadd.f32 1e-06, %v2386_v30 }
 0x9b0   : > { %v2427_v3 = vmul.f32 %v4398_v53, %v6348_v38  ;;  %v4400_v27 = vpop.eup %4399  ;;  %v2365_v28 = vpop.xlane.xlu1 %2364  ;;  %v2470_v26 = vadd.f32 %v6420_v60, %v2448_v6 }
 0x9b1   : > { %v2428_v31 = vmul.f32 %v4400_v27, %v6344_v12  ;;  %4407 = vrsqrt.f32 %v2401_v62  ;;  %v2387_v36 = vmul.f32 0.0078125, %v2365_v28  ;;  %v2367_v24 = vpop.xlane.xlu0 %2366 }
 0x9b2   : > { %v2449_v44 = vmul.f32 %v6416_v37, %v2427_v3  ;;  %4409 = vrsqrt.f32 %v2400_v5  ;;  %v2388_v50 = vmul.f32 0.0078125, %v2367_v24 }
 0x9b3   : > { %v4402_v25 = vpop.eup %4401  ;;  %v2450_v42 = vmul.f32 %v6416_v37, %v2428_v31  ;;  %v2403_v35 = vadd.f32 1e-06, %v2387_v36 }
 0x9b4   : > { %v2471_v1 = vadd.f32 %v6420_v60, %v2449_v44  ;;  %v2429_v38 = vmul.f32 %v4402_v25, %v6350_v29  ;;  %v2369_v46 = vpop.xlane.xlu1 %2368  ;;  %v2404_v7 = vadd.f32 1e-06, %v2388_v50 }
 0x9b5   : > { %v2472_v2 = vadd.f32 %v6420_v60, %v2450_v42  ;;  %4411 = vrsqrt.f32 %v2403_v35  ;;  %v2389_v52 = vmul.f32 0.0078125, %v2369_v46  ;;  %v2371_v8 = vpop.xlane.xlu0 %2370 }
 0x9b6   : > { %v2486_v10 = vpack.c.bf16 %v2471_v1, %v2470_v26  ;;  %v2451_v40 = vmul.f32 %v6416_v37, %v2429_v38  ;;  %4413 = vrsqrt.f32 %v2402_v45  ;;  %v2390_v16 = vmul.f32 0.0078125, %v2371_v8  ;;  %v4391_v8 = vld [vmem:[#allocation21 + $0x70] sm:$0xff]  }
 0x9b7   : > { %v4404_v41 = vpop.eup %4403  ;;  %v2405_v56 = vadd.f32 1e-06, %v2389_v52 }
 0x9b8   : > { %2635 = vmatmul.mubr.bf16.vlgmr.msra.gmra.mrb[0].mxu0 %v2486_v10  ;;  %v4406_v32 = vpop.eup %4405  ;;  %v2473_v12 = vadd.f32 %v6420_v60, %v2451_v40  ;;  %v2431_v29 = vmul.f32 %v4404_v41, %v6358_v19  ;;  %v2373_v19 = vpop.xlane.xlu1 %2372  ;;  %v2406_v6 = vadd.f32 1e-06, %v2390_v16 }
 0x9b9   : > { %2644 = vmatprep.mubr.bf16.mxu0 %v5135_v33  ;;  %v2430_v47 = vmul.f32 %v4406_v32, %v6356_v43  ;;  %4415 = vrsqrt.f32 %v2405_v56  ;;  %v2391_v14 = vmul.f32 0.0078125, %v2373_v19  ;;  %v2375_v27 = vpop.xlane.xlu0 %2374  ;;  %v4383_v19 = vld [vmem:[#allocation21 + $0x50] sm:$0xff]  }
 0x9ba   : > { %v2487_v21 = vpack.c.bf16 %v2473_v12, %v2472_v2  ;;  %v2453_v48 = vmul.f32 %v6416_v37, %v2431_v29  ;;  %4417 = vrsqrt.f32 %v2404_v7  ;;  %v2392_v26 = vmul.f32 0.0078125, %v2375_v27  ;;  %3720 = vmatprep.subr.bf16.mxu1 %v4383_v19  ;;  %v4388_v7 = vld [vmem:[#allocation21 + $0x20] sm:$0xff]  }
 0x9bb   : > { %v4408_v49 = vpop.eup %4407  ;;  %v2452_v39 = vmul.f32 %v6416_v37, %v2430_v47  ;;  %v2407_v23 = vadd.f32 1e-06, %v2391_v14  ;;  %v2512_v14 = vlaneseq }
 0x9bc   : > { %v4410_v55 = vpop.eup %4409  ;;  %v2475_v63 = vadd.f32 %v6420_v60, %v2453_v48  ;;  %v2433_v43 = vmul.f32 %v4408_v49, %v6366_v13  ;;  %v2377_v13 = vpop.xlane.xlu1 %2376 }
 0x9bd   : > { %v2474_v57 = vadd.f32 %v6420_v60, %v2452_v39  ;;  %v2432_v58 = vmul.f32 %v4410_v55, %v6364_v17  ;;  %4419 = vrsqrt.f32 %v2407_v23  ;;  %v2393_v44 = vmul.f32 0.0078125, %v2377_v13 }
 0x9be   : > { %v2455_v15 = vmul.f32 %v6416_v37, %v2433_v43  ;;  %4421 = vrsqrt.f32 %v2406_v6  ;;  %v4387_v43 = vld [vmem:[#allocation21 + $0x60] sm:$0xff]  }
 0x9bf   : > { %v2488_v59 = vpack.c.bf16 %v2475_v63, %v2474_v57  ;;  %v4412_v61 = vpop.eup %4411  ;;  %v2454_v4 = vmul.f32 %v6416_v37, %v2432_v58  ;;  %v2409_v38 = vadd.f32 1e-06, %v2393_v44  ;;  %v4385_v63 = vld [vmem:[#allocation21 + $0x58] sm:$0xff]  }
 0x9c0   : > { %2645 = vmatmul.mubr.bf16.gmra.mrb[4].mxu0 %v2487_v21  ;;  %v4414_v53 = vpop.eup %4413  ;;  %v2477_v3 = vadd.f32 %v6420_v60, %v2455_v15  ;;  %v2435_v17 = vmul.f32 %v4412_v61, %v6376_v54  ;;  %v4393_v57 = vld [vmem:[#allocation21 + $0x78] sm:$0xff]  }
 0x9c1   : > { %2654 = vmatprep.mubr.bf16.mxu0 %v5135_v33  ;;  %v2476_v62 = vadd.f32 %v6420_v60, %v2454_v4  ;;  %v2434_v28 = vmul.f32 %v4414_v53, %v6373_v51  ;;  %v2408_v51 = vadd.f32 1e-06, %v2392_v26  ;;  %4423 = vrsqrt.f32 %v2409_v38  ;;  %v4394_v58 = vld [vmem:[#allocation21 + $0x38] sm:$0xff]  }
 0x9c2   : > { %v2457_v5 = vmul.f32 %v6416_v37, %v2435_v17  ;;  %v2510_v61 = vld [vmem:[#allocation19] sm:$0x3] }
 0x9c3   : > { %v2489_v25 = vpack.c.bf16 %v2477_v3, %v2476_v62  ;;  %v4416_v34 = vpop.eup %4415  ;;  %v2456_v1 = vmul.f32 %v6416_v37, %v2434_v28  ;;  %4425 = vrsqrt.f32 %v2408_v51 }
 0x9c4   : > { %v4418_v31 = vpop.eup %4417  ;;  %v2479_v54 = vadd.f32 %v6420_v60, %v2457_v5  ;;  %v2437_v36 = vmul.f32 %v4416_v34, %v6386_v11 }
 0x9c5   : > { %v2478_v10 = vadd.f32 %v6420_v60, %v2456_v1  ;;  %v2436_v40 = vmul.f32 %v4418_v31, %v6383_v9 }
 0x9c6   : > { %v2459_v30 = vmul.f32 %v6416_v37, %v2437_v36 }
 0x9c7   : > { %v2490_v41 = vpack.c.bf16 %v2479_v54, %v2478_v10  ;;  %v4420_v42 = vpop.eup %4419  ;;  %v2458_v32 = vmul.f32 %v6416_v37, %v2436_v40 }
 0x9c8   : > { %2655 = vmatmul.mubr.bf16.gmra.mrb[8].mxu0 %v2488_v59  ;;  %v4422_v35 = vpop.eup %4421  ;;  %v2481_v46 = vadd.f32 %v6420_v60, %v2459_v30  ;;  %v2439_v11 = vmul.f32 %v4420_v42, %v6396_v20  ;;  %v2513_v59 = vshrl.u32 %v2512_v14, 7 }
 0x9c9   : > { %2664 = vmatprep.mubr.bf16.mxu0 %v5135_v33  ;;  %v2480_v12 = vadd.f32 %v6420_v60, %v2458_v32  ;;  %v2438_v9 = vmul.f32 %v4422_v35, %v6393_v18 }
 0x9ca   : > { %v2461_v45 = vmul.f32 %v6416_v37, %v2439_v11  ;;  %v2514_v15 = vsub.s32 0, %v2513_v59  ;;  %v2518_v16 = vsub.s32 1, %v2513_v59 }
 0x9cb   : > { %v2491_v29 = vpack.c.bf16 %v2481_v46, %v2480_v12  ;;  %v4424_v24 = vpop.eup %4423  ;;  %v2460_v2 = vmul.f32 %v6416_v37, %v2438_v9 }
 0x9cc   : > { %v2483_v52 = vadd.f32 %v6420_v60, %v2461_v45  ;;  %v2441_v21 = vmul.f32 %v4424_v24, %v6406_v22  ;;  %v4384_v22 = vld [vmem:[#allocation21 + $0x10] sm:$0xff]   ;;  %v6474_v4 = vrot.slane %v2510_v61, %v2514_v15  ;;  %v6476_v53 = vrot.slane %v2510_v61, %v2518_v16 }
 0x9cd   : > { %v4426_v47 = vpop.eup %4425  ;;  %v2482_v20 = vadd.f32 %v6420_v60, %v2460_v2  ;;  %3721 = vmatpush3.bf16.msra.mxu1 %v4384_v22 }
 0x9ce   : > { %v2440_v48 = vmul.f32 %v4426_v47, %v6403_v0  ;;  %v2463_v18 = vmul.f32 %v6416_v37, %v2441_v21  ;;  %v4386_v0 = vld [vmem:[#allocation21 + $0x18] sm:$0xff]   ;;  %3722 = vmatprep.subr.bf16.mxu1 %v4385_v63 }
 0x9cf   : > { %v2492_v49 = vpack.c.bf16 %v2483_v52, %v2482_v20 }
 0x9d0   : > { %2665 = vmatmul.mubr.bf16.gmra.mrb[12].mxu0 %v2489_v25  ;;  %v2462_v50 = vmul.f32 %v6416_v37, %v2440_v48  ;;  %v2485_v39 = vadd.f32 %v6420_v60, %v2463_v18  ;;  %v4389_v37 = vld [vmem:[#allocation21 + $0x68] sm:$0xff]  }
 0x9d1   : > { %2674 = vmatprep.mubr.bf16.mxu0 %v5135_v33  ;;  %3723 = vmatpush3.bf16.msra.mxu1 %v4386_v0 }
 0x9d2   : > { %v2484_v55 = vadd.f32 %v6420_v60, %v2462_v50  ;;  %3724 = vmatprep.subr.bf16.mxu1 %v4387_v43  ;;  %v4392_v60 = vld [vmem:[#allocation21 + $0x30] sm:$0xff]  }
 0x9d4   : > { %v2493_v56 = vpack.c.bf16 %v2485_v39, %v2484_v55 }
 0x9d5   : > { %3725 = vmatpush3.bf16.msra.mxu1 %v4388_v7 }
 0x9d6   : > { %3726 = vmatprep.subr.bf16.mxu1 %v4389_v37 }
 0x9d8   : > { %2675 = vmatmul.mubr.bf16.gmra.mrb[16].mxu0 %v2490_v41 }
 0x9d9   : > { %2684 = vmatprep.mubr.bf16.mxu0 %v5135_v33 }
 0x9e0   : > { %2685 = vmatmul.mubr.bf16.gmra.mrb[20].mxu0 %v2491_v29 }
 0x9e1   : > { %2694 = vmatprep.mubr.bf16.mxu0 %v5135_v33 }
 0x9e8   : > { %2695 = vmatmul.mubr.bf16.gmra.mrb[24].mxu0 %v2492_v49 }
 0x9e9   : > { %2704 = vmatprep.mubr.bf16.mxu0 %v5135_v33  ;;  %v4390_v33 = vld [vmem:[#allocation21 + $0x28] sm:$0xff]  }
 0x9ea   : > { %3727 = vmatpush3.bf16.msra.mxu1 %v4390_v33 }
 0x9eb   : > { %3728 = vmatprep.subr.bf16.mxu1 %v4391_v8 }
 0x9ee   : > { %3729 = vmatpush3.bf16.msra.mxu1 %v4392_v60 }
 0x9ef   : > { %3730 = vmatprep.subr.bf16.mxu1 %v4393_v57 }
 0x9f0   : > { %2705 = vmatmul.mubr.bf16.gmra.mrb[28].mxu0 %v2493_v56 }
 0x9f2   : > { %3731 = vmatpush3.bf16.msra.mxu1 %v4394_v58 }
 0xa8b   : > { %v2636_v23 = vpop.f32.mrb[0].mxu0 }
 0xa8c   : > { %v2637_v13 = vadd.f32 %v2636_v23, %v6474_v4  ;;  %v2638_v3 = vpop.f32.mrb[1].mxu0 }
 0xa8d   : > { %v2639_v17 = vadd.f32 %v2638_v3, %v6476_v53  ;;  %v2640_v6 = vpop.f32.mrb[2].mxu0 }
 0xa8e   : > { %v2748_v27 = vmul.f32 0.70710677, %v2637_v13  ;;  %v2641_v62 = vadd.f32 %v2640_v6, %v6474_v4  ;;  %v2642_v28 = vpop.f32.mrb[3].mxu0  ;;  %v2715_v12 = vmul.f32 0.5, %v2637_v13 }
 0xa8f   : > { %v2749_v44 = vmul.f32 0.70710677, %v2639_v17  ;;  %v2643_v25 = vadd.f32 %v2642_v28, %v6476_v53  ;;  %v2716_v48 = vmul.f32 0.5, %v2639_v17 }
 0xa90   : > { %4427 = verf.f32 %v2748_v27  ;;  %v2750_v5 = vmul.f32 0.70710677, %v2641_v62  ;;  %v2717_v2 = vmul.f32 0.5, %v2641_v62 }
 0xa91   : > { %4429 = verf.f32 %v2749_v44  ;;  %v2751_v34 = vmul.f32 0.70710677, %v2643_v25  ;;  %v2718_v56 = vmul.f32 0.5, %v2643_v25 }
 0xa92   : > { %4431 = verf.f32 %v2750_v5 }
 0xa93   : > { %4433 = verf.f32 %v2751_v34  ;;  %v2646_v26 = vpop.f32.mrb[4].mxu0 }
 0xa94   : > { %v2647_v1 = vadd.f32 %v2646_v26, %v6474_v4  ;;  %v2648_v31 = vpop.f32.mrb[5].mxu0 }
 0xa95   : > { %v2649_v38 = vadd.f32 %v2648_v31, %v6476_v53  ;;  %v2650_v54 = vpop.f32.mrb[6].mxu0 }
 0xa96   : > { %v2752_v36 = vmul.f32 0.70710677, %v2647_v1  ;;  %v2651_v51 = vadd.f32 %v2650_v54, %v6474_v4  ;;  %v2652_v10 = vpop.f32.mrb[7].mxu0  ;;  %v2719_v13 = vmul.f32 0.5, %v2647_v1 }
 0xa97   : > { %v2753_v40 = vmul.f32 0.70710677, %v2649_v38  ;;  %v2653_v41 = vadd.f32 %v2652_v10, %v6476_v53  ;;  %v2720_v62 = vmul.f32 0.5, %v2649_v38 }
 0xa98   : > { %4435 = verf.f32 %v2752_v36  ;;  %v2754_v30 = vmul.f32 0.70710677, %v2651_v51  ;;  %v2721_v3 = vmul.f32 0.5, %v2651_v51 }
 0xa99   : > { %4437 = verf.f32 %v2753_v40  ;;  %v2755_v42 = vmul.f32 0.70710677, %v2653_v41  ;;  %v2722_v28 = vmul.f32 0.5, %v2653_v41 }
 0xa9a   : > { %v4428_v32 = vpop.eup %4427  ;;  %4439 = verf.f32 %v2754_v30 }
 0xa9b   : > { %v4430_v35 = vpop.eup %4429  ;;  %4441 = verf.f32 %v2755_v42  ;;  %v2656_v46 = vpop.f32.mrb[8].mxu0  ;;  %v2812_v9 = vadd.f32 1.0, %v4428_v32 }
 0xa9c   : > { %v4432_v11 = vpop.eup %4431  ;;  %v6487_v29 = vadd.f32 %v2656_v46, %v6474_v4  ;;  %v2658_v45 = vpop.f32.mrb[9].mxu0  ;;  %v2813_v20 = vadd.f32 1.0, %v4430_v35 }
 0xa9d   : > { %v4434_v24 = vpop.eup %4433  ;;  %v2814_v47 = vadd.f32 1.0, %v4432_v11  ;;  %v6490_v52 = vadd.f32 %v2658_v45, %v6476_v53  ;;  %v2660_v21 = vpop.f32.mrb[10].mxu0  ;;  %v2844_v63 = vmul.f32 %v2812_v9, %v2715_v12 }
 0xa9e   : > { %v2756_v49 = vmul.f32 0.70710677, %v6487_v29  ;;  %v6494_v18 = vadd.f32 %v2660_v21, %v6474_v4  ;;  %v2662_v50 = vpop.f32.mrb[11].mxu0  ;;  %v2815_v39 = vadd.f32 1.0, %v4434_v24  ;;  %v2845_v7 = vmul.f32 %v2813_v20, %v2716_v48 }
 0xa9f   : > { %v2846_v55 = vmul.f32 %v2814_v47, %v2717_v2  ;;  %v2757_v19 = vmul.f32 0.70710677, %v6490_v52  ;;  %v6498_v22 = vadd.f32 %v2662_v50, %v6476_v53  ;;  %v2723_v24 = vmul.f32 0.5, %v6487_v29 }
 0xaa0   : > { %4443 = verf.f32 %v2756_v49  ;;  %v2758_v0 = vmul.f32 0.70710677, %v6494_v18  ;;  %v2847_v37 = vmul.f32 %v2815_v39, %v2718_v56  ;;  %v2725_v2 = vmul.f32 0.5, %v6494_v18 }
 0xaa1   : > { %4445 = verf.f32 %v2757_v19  ;;  %v2759_v43 = vmul.f32 0.70710677, %v6498_v22  ;;  %v2876_v8 = vpack.c.bf16 %v2846_v55, %v2844_v63  ;;  %v2724_v48 = vmul.f32 0.5, %v6490_v52 }
 0xaa2   : > { %v4436_v33 = vpop.eup %4435  ;;  %4447 = verf.f32 %v2758_v0  ;;  %v2877_v14 = vpack.c.bf16 %v2847_v37, %v2845_v7  ;;  %v2726_v49 = vmul.f32 0.5, %v6498_v22 }
 0xaa3   : > { %v4438_v60 = vpop.eup %4437  ;;  %v2816_v57 = vadd.f32 1.0, %v4436_v33  ;;  %4449 = verf.f32 %v2759_v43  ;;  %v2666_v58 = vpop.f32.mrb[12].mxu0 }
 0xaa4   : > { %v4440_v59 = vpop.eup %4439  ;;  %v2817_v15 = vadd.f32 1.0, %v4438_v60  ;;  %v6503_v61 = vadd.f32 %v2666_v58, %v6474_v4  ;;  %v2668_v16 = vpop.f32.mrb[13].mxu0  ;;  %3059 = vmatprep.mubr.bf16.mxu1 %v2877_v14 }
 0xaa5   : > { %v4442_v23 = vpop.eup %4441  ;;  %v2818_v17 = vadd.f32 1.0, %v4440_v59  ;;  %v6506_v6 = vadd.f32 %v2668_v16, %v6476_v53  ;;  %v2670_v27 = vpop.f32.mrb[14].mxu0  ;;  %3060 = vmatmul.mubr.bf16.vlgmr.msra.gmra.mrb[0].mxu1 %v2876_v8  ;;  %v2848_v34 = vmul.f32 %v2816_v57, %v2719_v13 }
 0xaa6   : > { %v2819_v44 = vadd.f32 1.0, %v4442_v23  ;;  %v2760_v25 = vmul.f32 0.70710677, %v6503_v61  ;;  %v2672_v5 = vpop.f32.mrb[15].mxu0  ;;  %v2671_v1 = vadd.f32 %v2670_v27, %v6474_v4  ;;  %v2849_v54 = vmul.f32 %v2817_v15, %v2720_v62 }
 0xaa7   : > { %v2850_v26 = vmul.f32 %v2818_v17, %v2721_v3  ;;  %v2761_v31 = vmul.f32 0.70710677, %v6506_v6  ;;  %v2673_v51 = vadd.f32 %v2672_v5, %v6476_v53  ;;  %v2727_v15 = vmul.f32 0.5, %v6503_v61 }
 0xaa8   : > { %v2851_v36 = vmul.f32 %v2819_v44, %v2722_v28  ;;  %4451 = verf.f32 %v2760_v25  ;;  %v2762_v10 = vmul.f32 0.70710677, %v2671_v1  ;;  %v2728_v17 = vmul.f32 0.5, %v6506_v6 }
 0xaa9   : > { %4453 = verf.f32 %v2761_v31  ;;  %v2878_v38 = vpack.c.bf16 %v2850_v26, %v2848_v34  ;;  %v2763_v41 = vmul.f32 0.70710677, %v2673_v51  ;;  %v2729_v27 = vmul.f32 0.5, %v2671_v1 }
 0xaaa   : > { %v4444_v40 = vpop.eup %4443  ;;  %v2879_v30 = vpack.c.bf16 %v2851_v36, %v2849_v54  ;;  %4455 = verf.f32 %v2762_v10  ;;  %v2730_v25 = vmul.f32 0.5, %v2673_v51 }
 0xaab   : > { %v4446_v42 = vpop.eup %4445  ;;  %v2820_v32 = vadd.f32 1.0, %v4444_v40  ;;  %v2676_v35 = vpop.f32.mrb[16].mxu0  ;;  %4457 = verf.f32 %v2763_v41 }
 0xaac   : > { %v4448_v46 = vpop.eup %4447  ;;  %v2821_v11 = vadd.f32 1.0, %v4446_v42  ;;  %v6513_v12 = vadd.f32 %v2676_v35, %v6474_v4  ;;  %v2678_v9 = vpop.f32.mrb[17].mxu0  ;;  %3067 = vmatprep.mubr.bf16.mxu1 %v2879_v30 }
 0xaad   : > { %v4450_v45 = vpop.eup %4449  ;;  %v2822_v47 = vadd.f32 1.0, %v4448_v46  ;;  %v6518_v21 = vadd.f32 %v2678_v9, %v6476_v53  ;;  %v2680_v20 = vpop.f32.mrb[18].mxu0  ;;  %3068 = vmatmul.mubr.bf16.gmra.mrb[4].mxu1 %v2878_v38  ;;  %v2852_v56 = vmul.f32 %v2820_v32, %v2723_v24 }
 0xaae   : > { %v2823_v50 = vadd.f32 1.0, %v4450_v45  ;;  %v2764_v39 = vmul.f32 0.70710677, %v6513_v12  ;;  %v2682_v55 = vpop.f32.mrb[19].mxu0  ;;  %v2681_v18 = vadd.f32 %v2680_v20, %v6474_v4  ;;  %v2853_v63 = vmul.f32 %v2821_v11, %v2724_v48 }
 0xaaf   : > { %v2854_v19 = vmul.f32 %v2822_v47, %v2725_v2  ;;  %v2765_v29 = vmul.f32 0.70710677, %v6518_v21  ;;  %v2683_v43 = vadd.f32 %v2682_v55, %v6476_v53  ;;  %v2731_v11 = vmul.f32 0.5, %v6513_v12 }
 0xab0   : > { %v2855_v0 = vmul.f32 %v2823_v50, %v2726_v49  ;;  %4459 = verf.f32 %v2764_v39  ;;  %v2766_v52 = vmul.f32 0.70710677, %v2681_v18  ;;  %v2732_v47 = vmul.f32 0.5, %v6518_v21 }
 0xab1   : > { %4461 = verf.f32 %v2765_v29  ;;  %v2880_v7 = vpack.c.bf16 %v2854_v19, %v2852_v56  ;;  %v2767_v37 = vmul.f32 0.70710677, %v2683_v43  ;;  %v2733_v20 = vmul.f32 0.5, %v2681_v18 }
 0xab2   : > { %v4452_v22 = vpop.eup %4451  ;;  %v2881_v33 = vpack.c.bf16 %v2855_v0, %v2853_v63  ;;  %4463 = verf.f32 %v2766_v52  ;;  %v2734_v39 = vmul.f32 0.5, %v2683_v43 }
 0xab3   : > { %v4454_v8 = vpop.eup %4453  ;;  %v2686_v60 = vpop.f32.mrb[20].mxu0  ;;  %v2824_v57 = vadd.f32 1.0, %v4452_v22  ;;  %4465 = verf.f32 %v2767_v37 }
 0xab4   : > { %v6527_v58 = vadd.f32 %v2686_v60, %v6474_v4  ;;  %v2688_v14 = vpop.f32.mrb[21].mxu0  ;;  %3075 = vmatprep.mubr.bf16.mxu1 %v2881_v33  ;;  %v4456_v59 = vpop.eup %4455  ;;  %v2825_v16 = vadd.f32 1.0, %v4454_v8 }
 0xab5   : > { %v6531_v23 = vadd.f32 %v2688_v14, %v6476_v53  ;;  %v2690_v13 = vpop.f32.mrb[22].mxu0  ;;  %v4458_v3 = vpop.eup %4457  ;;  %v2826_v62 = vadd.f32 1.0, %v4456_v59  ;;  %3076 = vmatmul.mubr.bf16.gmra.mrb[8].mxu1 %v2880_v7  ;;  %v2856_v26 = vmul.f32 %v2824_v57, %v2727_v15 }
 0xab6   : > { %v2768_v28 = vmul.f32 0.70710677, %v6527_v58  ;;  %v2692_v44 = vpop.f32.mrb[23].mxu0  ;;  %v2827_v5 = vadd.f32 1.0, %v4458_v3  ;;  %v6537_v61 = vadd.f32 %v2690_v13, %v6474_v4  ;;  %v2857_v6 = vmul.f32 %v2825_v16, %v2728_v17 }
 0xab7   : > { %v2769_v34 = vmul.f32 0.70710677, %v6531_v23  ;;  %v2858_v31 = vmul.f32 %v2826_v62, %v2729_v27  ;;  %v6540_v54 = vadd.f32 %v2692_v44, %v6476_v53  ;;  %v2735_v59 = vmul.f32 0.5, %v6527_v58 }
 0xab8   : > { %4467 = verf.f32 %v2768_v28  ;;  %v2859_v1 = vmul.f32 %v2827_v5, %v2730_v25  ;;  %v2770_v36 = vmul.f32 0.70710677, %v6537_v61  ;;  %v2736_v17 = vmul.f32 0.5, %v6531_v23 }
 0xab9   : > { %4469 = verf.f32 %v2769_v34  ;;  %v2771_v51 = vmul.f32 0.70710677, %v6540_v54  ;;  %v2882_v38 = vpack.c.bf16 %v2858_v31, %v2856_v26  ;;  %v2737_v27 = vmul.f32 0.5, %v6537_v61 }
 0xaba   : > { %v4460_v10 = vpop.eup %4459  ;;  %4471 = verf.f32 %v2770_v36  ;;  %v2883_v30 = vpack.c.bf16 %v2859_v1, %v2857_v6  ;;  %v2738_v25 = vmul.f32 0.5, %v6540_v54 }
 0xabb   : > { %v4462_v40 = vpop.eup %4461  ;;  %v2696_v41 = vpop.f32.mrb[24].mxu0  ;;  %v2828_v42 = vadd.f32 1.0, %v4460_v10  ;;  %4473 = verf.f32 %v2771_v51 }
 0xabc   : > { %v6545_v32 = vadd.f32 %v2696_v41, %v6474_v4  ;;  %v2698_v35 = vpop.f32.mrb[25].mxu0  ;;  %v4464_v46 = vpop.eup %4463  ;;  %v2829_v9 = vadd.f32 1.0, %v4462_v40  ;;  %3083 = vmatprep.mubr.bf16.mxu1 %v2883_v30 }
 0xabd   : > { %v6549_v45 = vadd.f32 %v2698_v35, %v6476_v53  ;;  %v2700_v24 = vpop.f32.mrb[26].mxu0  ;;  %v4466_v2 = vpop.eup %4465  ;;  %v2830_v48 = vadd.f32 1.0, %v4464_v46  ;;  %3084 = vmatmul.mubr.bf16.gmra.mrb[12].mxu1 %v2882_v38  ;;  %v2860_v19 = vmul.f32 %v2828_v42, %v2731_v11 }
 0xabe   : > { %v2772_v49 = vmul.f32 0.70710677, %v6545_v32  ;;  %v2702_v50 = vpop.f32.mrb[27].mxu0  ;;  %v2831_v55 = vadd.f32 1.0, %v4466_v2  ;;  %v2701_v12 = vadd.f32 %v2700_v24, %v6474_v4  ;;  %v2861_v0 = vmul.f32 %v2829_v9, %v2732_v47 }
 0xabf   : > { %v2773_v56 = vmul.f32 0.70710677, %v6549_v45  ;;  %v2862_v29 = vmul.f32 %v2830_v48, %v2733_v20  ;;  %v2703_v63 = vadd.f32 %v2702_v50, %v6476_v53  ;;  %v2739_v42 = vmul.f32 0.5, %v6545_v32 }
 0xac0   : > { %4475 = verf.f32 %v2772_v49  ;;  %v2863_v52 = vmul.f32 %v2831_v55, %v2734_v39  ;;  %v2774_v21 = vmul.f32 0.70710677, %v2701_v12  ;;  %v2741_v35 = vmul.f32 0.5, %v2701_v12 }
 0xac1   : > { %4477 = verf.f32 %v2773_v56  ;;  %v2775_v7 = vmul.f32 0.70710677, %v2703_v63  ;;  %v2884_v22 = vpack.c.bf16 %v2862_v29, %v2860_v19  ;;  %v2740_v46 = vmul.f32 0.5, %v6549_v45 }
 0xac2   : > { %v4468_v18 = vpop.eup %4467  ;;  %4479 = verf.f32 %v2774_v21  ;;  %v2885_v33 = vpack.c.bf16 %v2863_v52, %v2861_v0  ;;  %v2742_v11 = vmul.f32 0.5, %v2703_v63 }
 0xac3   : > { %v4470_v37 = vpop.eup %4469  ;;  %v2706_v43 = vpop.f32.mrb[28].mxu0  ;;  %v2832_v8 = vadd.f32 1.0, %v4468_v18  ;;  %4481 = verf.f32 %v2775_v7 }
 0xac4   : > { %v2707_v60 = vadd.f32 %v2706_v43, %v6474_v4  ;;  %v2708_v57 = vpop.f32.mrb[29].mxu0  ;;  %v4472_v14 = vpop.eup %4471  ;;  %v2833_v15 = vadd.f32 1.0, %v4470_v37  ;;  %3091 = vmatprep.mubr.bf16.mxu1 %v2885_v33 }
 0xac5   : > { %v2709_v16 = vadd.f32 %v2708_v57, %v6476_v53  ;;  %v2710_v13 = vpop.f32.mrb[30].mxu0  ;;  %v4474_v3 = vpop.eup %4473  ;;  %v2834_v62 = vadd.f32 1.0, %v4472_v14  ;;  %3092 = vmatmul.mubr.bf16.gmra.mrb[16].mxu1 %v2884_v22  ;;  %v2864_v26 = vmul.f32 %v2832_v8, %v2735_v59  ;;  %v6566_v8 = vld [vmem:[#allocation22] ss:$0 sm:$0xff] }
 0xac6   : > { %v2776_v28 = vmul.f32 0.70710677, %v2707_v60  ;;  %v2712_v44 = vpop.f32.mrb[31].mxu0  ;;  %v2835_v5 = vadd.f32 1.0, %v4474_v3  ;;  %v2711_v58 = vadd.f32 %v2710_v13, %v6474_v4  ;;  %v2865_v1 = vmul.f32 %v2833_v15, %v2736_v17  ;;  %v4491_v13 = vld [vmem:[#allocation3] sm:$0xff] }
 0xac7   : > { %v2777_v34 = vmul.f32 0.70710677, %v2709_v16  ;;  %v2866_v31 = vmul.f32 %v2834_v62, %v2737_v27  ;;  %v2713_v6 = vadd.f32 %v2712_v44, %v6476_v53  ;;  %v2743_v12 = vmul.f32 0.5, %v2707_v60  ;;  %v4492_v27 = vld [vmem:[#allocation3 + $0x8] sm:$0xff] }
 0xac8   : > { %4483 = verf.f32 %v2776_v28  ;;  %v2867_v36 = vmul.f32 %v2835_v5, %v2738_v25  ;;  %v2778_v23 = vmul.f32 0.70710677, %v2711_v58  ;;  %v2745_v29 = vmul.f32 0.5, %v2711_v58 }
 0xac9   : > { %4485 = verf.f32 %v2777_v34  ;;  %v2779_v10 = vmul.f32 0.70710677, %v2713_v6  ;;  %v2886_v51 = vpack.c.bf16 %v2866_v31, %v2864_v26  ;;  %v2744_v45 = vmul.f32 0.5, %v2709_v16  ;;  %v4493_v31 = vld [vmem:[#allocation3 + $0x10] sm:$0xff] }
 0xaca   : > { %v4476_v61 = vpop.eup %4475  ;;  %4487 = verf.f32 %v2778_v23  ;;  %v2887_v40 = vpack.c.bf16 %v2867_v36, %v2865_v1  ;;  %v2746_v63 = vmul.f32 0.5, %v2713_v6  ;;  %v4494_v36 = vld [vmem:[#allocation3 + $0x18] sm:$0xff] }
 0xacb   : > { %v4478_v38 = vpop.eup %4477  ;;  %v2836_v54 = vadd.f32 1.0, %v4476_v61  ;;  %4489 = verf.f32 %v2779_v10 }
 0xacc   : > { %v4480_v41 = vpop.eup %4479  ;;  %v2837_v30 = vadd.f32 1.0, %v4478_v38  ;;  %3099 = vmatprep.mubr.bf16.mxu1 %v2887_v40 }
 0xacd   : > { %v4482_v4 = vpop.eup %4481  ;;  %v2838_v53 = vadd.f32 1.0, %v4480_v41  ;;  %3100 = vmatmul.mubr.bf16.gmra.mrb[20].mxu1 %v2886_v51  ;;  %v2868_v24 = vmul.f32 %v2836_v54, %v2739_v42 }
 0xace   : > { %v2839_v9 = vadd.f32 1.0, %v4482_v4  ;;  %v2869_v47 = vmul.f32 %v2837_v30, %v2740_v46  ;;  %v4495_v30 = vld [vmem:[#allocation3 + $0x20] sm:$0xff] }
 0xacf   : > { %v2870_v2 = vmul.f32 %v2838_v53, %v2741_v35  ;;  %v4496_v35 = vld [vmem:[#allocation3 + $0x28] sm:$0xff] }
 0xad0   : > { %v2871_v20 = vmul.f32 %v2839_v9, %v2742_v11 }
 0xad1   : > { %v2888_v49 = vpack.c.bf16 %v2870_v2, %v2868_v24 }
 0xad2   : > { %v4484_v48 = vpop.eup %4483  ;;  %v2889_v39 = vpack.c.bf16 %v2871_v20, %v2869_v47 }
 0xad3   : > { %v4486_v50 = vpop.eup %4485  ;;  %v2840_v55 = vadd.f32 1.0, %v4484_v48  ;;  %v4497_v48 = vld [vmem:[#allocation3 + $0x30] sm:$0xff] }
 0xad4   : > { %v4488_v56 = vpop.eup %4487  ;;  %v2841_v19 = vadd.f32 1.0, %v4486_v50  ;;  %3107 = vmatprep.mubr.bf16.mxu1 %v2889_v39  ;;  %v4498_v39 = vld [vmem:[#allocation3 + $0x38] sm:$0xff] }
 0xad5   : > { %v4490_v32 = vpop.eup %4489  ;;  %v2842_v0 = vadd.f32 1.0, %v4488_v56  ;;  %3108 = vmatmul.mubr.bf16.gmra.mrb[24].mxu1 %v2888_v49  ;;  %v2872_v21 = vmul.f32 %v2840_v55, %v2743_v12 }
 0xad6   : > { %v2843_v52 = vadd.f32 1.0, %v4490_v32  ;;  %v2873_v7 = vmul.f32 %v2841_v19, %v2744_v45 }
 0xad7   : > { %v2874_v18 = vmul.f32 %v2842_v0, %v2745_v29 }
 0xad8   : > { %v2875_v22 = vmul.f32 %v2843_v52, %v2746_v63  ;;  %v4499_v63 = vld [vmem:[#allocation3 + $0x40] sm:$0xff] }
 0xad9   : > { %v2890_v37 = vpack.c.bf16 %v2874_v18, %v2872_v21  ;;  %v4500_v18 = vld [vmem:[#allocation3 + $0x48] sm:$0xff] }
 0xada   : > { %v2891_v43 = vpack.c.bf16 %v2875_v22, %v2873_v7 }
 0xadc   : > { %3115 = vmatprep.mubr.bf16.mxu1 %v2891_v43 }
 0xadd   : > { %3116 = vmatmul.mubr.bf16.gmra.mrb[28].mxu1 %v2890_v37 }
 0xb78   : > { %v3732_v33 = vpop.f32.mrb[0].mxu1 }
 0xb79   : > { %v3733_v60 = vpop.f32.mrb[1].mxu1 }
 0xb7a   : > { %v3734_v57 = vadd.f32 %v3733_v60, %v3732_v33  ;;  %v3735_v14 = vpop.f32.mrb[2].mxu1 }
 0xb7b   : > { %v3736_v59 = vpop.f32.mrb[3].mxu1 }
 0xb7c   : > { %v3062_v15 = vadd.f32 %v3734_v57, %v6566_v8  ;;  %v3737_v16 = vadd.f32 %v3736_v59, %v3735_v14  ;;  %v4501_v59 = vld [vmem:[#allocation3 + $0x50] sm:$0xff] }
 0xb7e   : > { %v3124_v3 = vadd.f32 %v4491_v13, %v3062_v15  ;;  %v3065_v17 = vadd.f32 %v3737_v16, %v6566_v8  ;;  %v4502_v13 = vld [vmem:[#allocation3 + $0x58] sm:$0xff] }
 0xb80   : > { %3140 = vst [vmem:[%s5885_s22] sm:$0xff] %v3124_v3  ;;  %v3125_v62 = vadd.f32 %v4492_v27, %v3065_v17  ;;  %v3738_v28 = vpop.f32.mrb[4].mxu1 }
 0xb81   : > { %v3739_v44 = vpop.f32.mrb[5].mxu1 }
 0xb82   : > { %3141 = vst [vmem:[%s5885_s22 + $0x8] sm:$0xff] %v3125_v62  ;;  %v3740_v25 = vadd.f32 %v3739_v44, %v3738_v28  ;;  %v3741_v5 = vpop.f32.mrb[6].mxu1 }
 0xb83   : > { %v3742_v34 = vpop.f32.mrb[7].mxu1 }
 0xb84   : > { %v3070_v58 = vadd.f32 %v3740_v25, %v6566_v8  ;;  %v3743_v26 = vadd.f32 %v3742_v34, %v3741_v5  ;;  %v4503_v34 = vld [vmem:[#allocation3 + $0x60] sm:$0xff] }
 0xb86   : > { %v3126_v6 = vadd.f32 %v4493_v31, %v3070_v58  ;;  %v3073_v1 = vadd.f32 %v3743_v26, %v6566_v8  ;;  %v4504_v31 = vld [vmem:[#allocation3 + $0x68] sm:$0xff] }
 0xb88   : > { %3142 = vst [vmem:[%s5885_s22 + $0x10] sm:$0xff] %v3126_v6  ;;  %v3127_v23 = vadd.f32 %v4494_v36, %v3073_v1  ;;  %v3744_v61 = vpop.f32.mrb[8].mxu1 }
 0xb89   : > { %v3745_v10 = vpop.f32.mrb[9].mxu1 }
 0xb8a   : > { %3143 = vst [vmem:[%s5885_s22 + $0x18] sm:$0xff] %v3127_v23  ;;  %v3746_v51 = vadd.f32 %v3745_v10, %v3744_v61  ;;  %v3747_v38 = vpop.f32.mrb[10].mxu1 }
 0xb8b   : > { %v3748_v40 = vpop.f32.mrb[11].mxu1 }
 0xb8c   : > { %v3078_v54 = vadd.f32 %v3746_v51, %v6566_v8  ;;  %v3749_v41 = vadd.f32 %v3748_v40, %v3747_v38  ;;  %v4505_v40 = vld [vmem:[#allocation3 + $0x70] sm:$0xff] }
 0xb8e   : > { %v3128_v4 = vadd.f32 %v4495_v30, %v3078_v54  ;;  %v3081_v42 = vadd.f32 %v3749_v41, %v6566_v8  ;;  %v4506_v30 = vld [vmem:[#allocation3 + $0x78] sm:$0xff] }
 0xb90   : > { %3144 = vst [vmem:[%s5885_s22 + $0x20] sm:$0xff] %v3128_v4  ;;  %v3129_v53 = vadd.f32 %v4496_v35, %v3081_v42  ;;  %v3750_v46 = vpop.f32.mrb[12].mxu1 }
 0xb91   : > { %v3751_v11 = vpop.f32.mrb[13].mxu1 }
 0xb92   : > { %3145 = vst [vmem:[%s5885_s22 + $0x28] sm:$0xff] %v3129_v53  ;;  %v3752_v9 = vadd.f32 %v3751_v11, %v3750_v46  ;;  %v3753_v24 = vpop.f32.mrb[14].mxu1 }
 0xb93   : > { %v3754_v2 = vpop.f32.mrb[15].mxu1 }
 0xb94   : > { %v3086_v47 = vadd.f32 %v3752_v9, %v6566_v8  ;;  %v3755_v20 = vadd.f32 %v3754_v2, %v3753_v24 }
 0xb96   : > { %v3130_v49 = vadd.f32 %v4497_v48, %v3086_v47  ;;  %v3089_v50 = vadd.f32 %v3755_v20, %v6566_v8 }
 0xb98   : > { %3146 = vst [vmem:[%s5885_s22 + $0x30] sm:$0xff] %v3130_v49  ;;  %v3131_v55 = vadd.f32 %v4498_v39, %v3089_v50  ;;  %v3756_v56 = vpop.f32.mrb[16].mxu1 }
 0xb99   : > { %v3757_v19 = vpop.f32.mrb[17].mxu1 }
 0xb9a   : > { %3147 = vst [vmem:[%s5885_s22 + $0x38] sm:$0xff] %v3131_v55  ;;  %v3758_v32 = vadd.f32 %v3757_v19, %v3756_v56  ;;  %v3759_v12 = vpop.f32.mrb[18].mxu1 }
 0xb9b   : > { %v3760_v29 = vpop.f32.mrb[19].mxu1 }
 0xb9c   : > { %v3094_v0 = vadd.f32 %v3758_v32, %v6566_v8  ;;  %v3761_v45 = vadd.f32 %v3760_v29, %v3759_v12 }
 0xb9e   : > { %v3132_v52 = vadd.f32 %v4499_v63, %v3094_v0  ;;  %v3097_v21 = vadd.f32 %v3761_v45, %v6566_v8 }
 0xba0   : > { %3148 = vst [vmem:[%s5885_s22 + $0x40] sm:$0xff] %v3132_v52  ;;  %v3133_v7 = vadd.f32 %v4500_v18, %v3097_v21  ;;  %v3762_v22 = vpop.f32.mrb[20].mxu1 }
 0xba1   : > { %v3763_v37 = vpop.f32.mrb[21].mxu1 }
 0xba2   : > { %3149 = vst [vmem:[%s5885_s22 + $0x48] sm:$0xff] %v3133_v7  ;;  %v3764_v43 = vadd.f32 %v3763_v37, %v3762_v22  ;;  %v3765_v33 = vpop.f32.mrb[22].mxu1 }
 0xba3   : > { %v3766_v60 = vpop.f32.mrb[23].mxu1 }
 0xba4   : > { %v3102_v57 = vadd.f32 %v3764_v43, %v6566_v8  ;;  %v3767_v14 = vadd.f32 %v3766_v60, %v3765_v33 }
 0xba6   : > { %v3134_v15 = vadd.f32 %v4501_v59, %v3102_v57  ;;  %v3105_v16 = vadd.f32 %v3767_v14, %v6566_v8 }
 0xba8   : > { %3150 = vst [vmem:[%s5885_s22 + $0x50] sm:$0xff] %v3134_v15  ;;  %v3135_v3 = vadd.f32 %v4502_v13, %v3105_v16  ;;  %v3768_v17 = vpop.f32.mrb[24].mxu1 }
 0xba9   : > { %v3769_v27 = vpop.f32.mrb[25].mxu1 }
 0xbaa   : > { %3151 = vst [vmem:[%s5885_s22 + $0x58] sm:$0xff] %v3135_v3  ;;  %v3770_v62 = vadd.f32 %v3769_v27, %v3768_v17  ;;  %v3771_v28 = vpop.f32.mrb[26].mxu1 }
 0xbab   : > { %v3772_v44 = vpop.f32.mrb[27].mxu1 }
 0xbac   : > { %v3110_v25 = vadd.f32 %v3770_v62, %v6566_v8  ;;  %v3773_v5 = vadd.f32 %v3772_v44, %v3771_v28 }
 0xbae   : > { %v3136_v58 = vadd.f32 %v4503_v34, %v3110_v25  ;;  %v3113_v26 = vadd.f32 %v3773_v5, %v6566_v8 }
 0xbb0   : > { %3152 = vst [vmem:[%s5885_s22 + $0x60] sm:$0xff] %v3136_v58  ;;  %v3137_v6 = vadd.f32 %v4504_v31, %v3113_v26  ;;  %v3774_v1 = vpop.f32.mrb[28].mxu1 }
 0xbb1   : > { %v3775_v36 = vpop.f32.mrb[29].mxu1 }
 0xbb2   : > { %3153 = vst [vmem:[%s5885_s22 + $0x68] sm:$0xff] %v3137_v6  ;;  %v3776_v23 = vadd.f32 %v3775_v36, %v3774_v1  ;;  %v3777_v61 = vpop.f32.mrb[30].mxu1 }
 0xbb3   : > { %v3778_v10 = vpop.f32.mrb[31].mxu1 }
 0xbb4   : > { %v3118_v51 = vadd.f32 %v3776_v23, %v6566_v8  ;;  %v3779_v38 = vadd.f32 %v3778_v10, %v3777_v61 }
 0xbb6   : > { %v3138_v54 = vadd.f32 %v4505_v40, %v3118_v51  ;;  %v3121_v41 = vadd.f32 %v3779_v38, %v6566_v8 }
 0xbb8   : > { %3154 = vst [vmem:[%s5885_s22 + $0x70] sm:$0xff] %v3138_v54  ;;  %v3139_v4 = vadd.f32 %v4506_v30, %v3121_v41 }
 0xbba   : > { %3155 = vst [vmem:[%s5885_s22 + $0x78] sm:$0xff] %v3139_v4 }
 0xbbb PF: > { %s6911_s18 = sld [smem:[#allocation48_spill]]  ;;  %s6912_s30 = sld [smem:[#allocation72_spill]] }
 0xbbc   : > { %s3175_s28 = sshll.u32 %s5885_s22, 4  ;;  %s3157_s19 = scalar_lea.sflag [#allocation6], %s5829_s12  ;;  %s6607_s28 = int_to_ptr.vmem [resolvable:$true] %s3175_s28 }
 0xbbd   : > { %s4909_s25 = scalar_lea.vmem %s6607_s28, 2048  ;;  %p6914_p10 = scmp.ne.s32.totalorder %s6872_s8, 0 }
 0xbbe   : > { %p4910_p4 = scmp.ne.s32.totalorder %s6607_s28, %s4909_s25  ;;  %s5136_s20 = smov [#allocation27]  }
 0xbbf   : > { %s4913_s24 = sshll.u32 %s5136_s20, 4  ;;  %s4914_s24 = int_to_ptr.vmem [resolvable:$false] %s4913_s24 }
 0xbc0   : > { %p4911_p3 = pnand %p4910_p4, %p6914_p10  ;;  %s4915_s10 = scalar_lea.vmem %s4914_s24, 4096 }
 0xbc1   : > { %s3625_s15 = sshll.u32 %s6911_s18, 11  ;;  %s6913_s4 = smov %s6912_s30 }
 0xbc2   : > { %s6604_s5 = scalar_lea.hbm %s6912_s30, %s3625_s15  ;;  %p4912_p9 = pneg %p4911_p3 }
 0xbc3   : > { %p4916_p0 = scmp.lt.s32.totalorder %s6607_s28, %s4914_s24  ;;  %p4917_p8 = scmp.lt.s32.totalorder %s4915_s10, %s4909_s25 }
 0xbc5   : > { %p4918_p2 = por %p4917_p8, %p4916_p0 }
 0xbc7   : > { %p4919_p5 = pnand %p4918_p2, %p4912_p9 }
 0xbc9   : > { %4922 = shalt.err (!%p4919_p5)
}
 0xbca   : > { %s4923_s22 = scalar_lea.hbm %s6604_s5, 2048  ;;  %s4927_s15 = scalar_lea.hbm %s6913_s4, 4096 }
 0xbcb   : > { %p4924_p7 = scmp.ne.s32.totalorder %s6604_s5, %s4923_s22  ;;  %p4928_p6 = scmp.lt.u32.totalorder %s6604_s5, %s6913_s4 }
 0xbcc   : > { %p4929_p12 = scmp.lt.u32.totalorder %s4927_s15, %s4923_s22  ;;  %p4931_p4 = scmp.lt.u32.totalorder %s4923_s22, %s6604_s5 }
 0xbcd   : > { %p4925_p1 = pnand %p4924_p7, %p6914_p10 }
 0xbce   : > { %p4930_p11 = por %p4929_p12, %p4928_p6 }
 0xbcf   : > { %p4926_p13 = pneg %p4925_p1 }
 0xbd0   : > { %p4932_p3 = por %p4931_p4, %p4930_p11 }
 0xbd2   : > { %p4933_p9 = pnand %p4932_p3, %p4926_p13 }
 0xbd4   : > { %4936 = shalt.err (!%p4933_p9)
}
 0xbd5   : > { %s5137_s30 = smov 128   ;;  %s6915_s25 = sld [smem:[#allocation47_spill]] }
 0xbd6   : > { %s6916_s20 = sld [smem:[#allocation41_spill]]  ;;  %s5138_s24 = smov 8  }
 0xbd7   : > { %4030 = dma.vmem_to_hbm [thread:$0]  (%p6914_p10), %s6607_s28, 2048, %s6604_s5, %s3157_s19, %s5137_s30, %s5137_s30, %s5138_s24  }
 0xbd8   : > { %s3616_s22 = sshll.u32 %s6911_s18, 6  ;;  %s3193_s17 = sshll.u32 %s5887_s11, 4  ;;  %s6639_s17 = int_to_ptr.vmem [resolvable:$true] %s3193_s17 }
 0xbd9   : > { %s6917_s14 = sld [smem:[#allocation73_spill]]  ;;  %s4937_s12 = scalar_lea.vmem %s6639_s17, 2048 }
 0xbda   : > { %p4938_p10 = scmp.ne.s32.totalorder %s6639_s17, %s4937_s12  ;;  %p6919_p0 = scmp.ne.s32.totalorder %s6874_s0, 0 }
 0xbdb   : > { %s3615_s10 = sshll.u32 %s6915_s25, 4  ;;  %s5139_s11 = smov [#allocation28]  }
 0xbdc   : > { %s3190_s26 = sadd.s32 %s3616_s22, %s3615_s10  ;;  %s6918_s8 = sand.u32 1, %s6916_s20  }
 0xbdd   : > { %s3617_s15 = sshll.u32 %s3190_s26, 7  ;;  %s6648_s6 = scalar_lea.sflag [#allocation29], %s6918_s8 }
 0xbde   : > { %p4939_p8 = pnand %p4938_p10, %p6919_p0  ;;  %s4941_s18 = sshll.u32 %s5139_s11, 4  ;;  %s4942_s18 = int_to_ptr.vmem [resolvable:$false] %s4941_s18 }
 0xbdf   : > { %s6644_s4 = scalar_lea.hbm %s6917_s14, %s3617_s15  ;;  %s4943_s5 = scalar_lea.vmem %s4942_s18, 4096 }
 0xbe0   : > { %p4940_p2 = pneg %p4939_p8  ;;  %p4944_p5 = scmp.lt.s32.totalorder %s6639_s17, %s4942_s18 }
 0xbe1   : > { %p4945_p7 = scmp.lt.s32.totalorder %s4943_s5, %s4937_s12 }
 0xbe3   : > { %p4946_p1 = por %p4945_p7, %p4944_p5 }
 0xbe5   : > { %p4947_p13 = pnand %p4946_p1, %p4940_p2 }
 0xbe7   : > { %4950 = shalt.err (!%p4947_p13)
}
 0xbe8   : > { %s4951_s28 = scalar_lea.hbm %s6644_s4, 2048  ;;  %s4955_s20 = scalar_lea.hbm %s6917_s14, 16384 }
 0xbe9   : > { %p4952_p6 = scmp.ne.s32.totalorder %s6644_s4, %s4951_s28  ;;  %p4956_p4 = scmp.lt.u32.totalorder %s6644_s4, %s6917_s14 }
 0xbea   : > { %p4957_p3 = scmp.lt.u32.totalorder %s4955_s20, %s4951_s28  ;;  %p4959_p10 = scmp.lt.u32.totalorder %s4951_s28, %s6644_s4 }
 0xbeb   : > { %p4953_p12 = pnand %p4952_p6, %p6919_p0 }
 0xbec   : > { %p4958_p9 = por %p4957_p3, %p4956_p4 }
 0xbed   : > { %p4954_p11 = pneg %p4953_p12 }
 0xbee   : > { %p4960_p8 = por %p4959_p10, %p4958_p9 }
 0xbf0   : > { %p4961_p2 = pnand %p4960_p8, %p4954_p11 }
 0xbf2   : > { %4964 = shalt.err (!%p4961_p2)
}
 0xbf3   : > { %4031 = dma.vmem_to_hbm [thread:$0]  (%p6919_p0), %s6639_s17, 2048, %s6644_s4, %s6648_s6, %s5137_s30, %s5137_s30, %s5138_s24  }
 0xbf4 PF: > { %s6920_s26 = sld [smem:[#allocation44_spill]]  ;;  %p4104_p5 = scmp.ge.s32.totalorder %s5115_s16, 2 }
 0xbf5   : > { %p6921_p7 = scmp.ne.s32.totalorder %s6873_s2, 0 }
 0xbf7   : > { %p4079_p1 = pnand %p4104_p5, %p6921_p7 }
 0xbfa   : > { %s3208_s15 = sand.u32 1, %s6920_s26  }
 0xbfb   : > { %s3209_s7 = scalar_lea.sflag [#allocation6], %s3208_s15 }
 0xbfc   : > { %5054 = dma.done.wait (!%p4079_p1), %s3209_s7, 2048  }
 0xbfd   : > { %5056 = vsyncadd (!%p4079_p1), %s3209_s7, 4294965248  ;;  %s6922_s3 = sld [smem:[#allocation40_spill]]  ;;  %p6923_p13 = scmp.ne.s32.totalorder %s6875_s27, 0 }
 0xbff   : > { %p4082_p6 = pnand %p4104_p5, %p6923_p13 }
 0xc03   : > { %s3217_s0 = sand.u32 1, %s6922_s3  }
 0xc04   : > { %s3218_s8 = scalar_lea.sflag [#allocation29], %s3217_s0 }
 0xc05   : > { %5058 = dma.done.wait (!%p4082_p6), %s3218_s8, 2048  }
 0xc06   : > { %5060 = vsyncadd (!%p4082_p6), %s3218_s8, 4294965248  ;;  %s46_s16 = sadd.s32 1, %s5115_s16   ;;  %s6925_s18 = sld [smem:[#allocation41_spill]] }
 0xc07   : > { %p6683_p0 = scmp.ge.s32.totalorder %s46_s16, 10   ;;  %s6926_s19 = sld [smem:[#allocation42_spill]] }
 0xc08   : > { %s6927_s2 = sld [smem:[#allocation43_spill]]  ;;  %s6928_s4 = smov %s5660_s21 }
 0xc09   : > { %s6929_s24 = sld [smem:[#allocation45_spill]]  ;;  %s6930_s25 = sld [smem:[#allocation46_spill]] }
 0xc0a   : > { %s6931_s28 = sld [smem:[#allocation49_spill]]  ;;  %s6932_s30 = sld [smem:[#allocation51_spill]] }
 0xc0b   : > { %s6933_s17 = sld [smem:[#allocation57_spill]]  ;;  %s6934_s20 = smov %s6949_s1 }
 0xc0c   : > { %s6936_s22 = smov %s5083_s23  ;;  %s6937_s23 = smov %s6928_s4 }
 0xc0d   : > { %s6938_s26 = smov %s5663_s9  ;;  %s6939_s27 = smov %s5107_s29 }
 0xc0e   : > { %s6935_s21 = smov %s6927_s2  ;;  %45 = sbr.rel (!%p6683_p0) target bundleno = 38 (0x26), region = 230 }
 0xc10   : > { %s6940_s29 = smov %s6932_s30 }
 0xc11   : > { %s6941_s30 = smov %s6933_s17 }
 0xc15   :  { %3223 = vsyncpa [#allocation5], 1 }
 0xc16   :  { %3225 = vsyncpa [#allocation5 + $0x1], 1 }
 0xc17   :  { %3226 = vsyncpa [#allocation8], 1 }
 0xc18   :  { %3228 = vsyncpa [#allocation8 + $0x1], 1 }
 0xc19   :  { %3229 = vsyncpa [#allocation11], 1 }
 0xc1a   :  { %3231 = vsyncpa [#allocation11 + $0x1], 1 }
 0xc1b   :  { %3232 = vsyncpa [#allocation14], 1 }
 0xc1c   :  { %3233 = vsyncpa [#allocation17], 1 }
 0xc1d   :  { %3234 = vsyncpa [#allocation20], 1 }
 0xc1e   :  { %3235 = vsyncpa [#allocation23], 1 }
 0xc1f   :  { %3236 = vsyncpa [#allocation26], 1 }
 0xc20   :  { %3237 = vsyncpa [#allocation6], 1 }
 0xc21   :  { %3239 = vsyncpa [#allocation6 + $0x1], 1 }
 0xc22   :  { %3240 = vsyncpa [#allocation29], 1 }
 0xc23   :  { %3242 = vsyncpa [#allocation29 + $0x1], 1 }

</bundles_post_ra>
